<compile_context>
chip_gen: v7x
topology: tpu7x:2x2x1
jax: 0.10.0
libtpu: 0.0.40
codegen_flags: <defaults>
</compile_context>

<pallas_src>
import math

import jax
import jax.numpy as jnp
from jax.experimental import pallas as pl
from jax.experimental.pallas import tpu as pltpu

# ---------------- model config (small, synthetic) ----------------
VOCAB = 128
HIDDEN = 64
N_LAYERS = 2
N_HEADS = 4
HEAD_DIM = HIDDEN // N_HEADS      # 16
HALF = HEAD_DIM // 2              # 8
INTERMEDIATE = 128
RMS_EPS = 1e-6
ROPE_THETA = 10000.0
NEG_INF = -1e9


def _rmsnorm(x, w):
    # x: (R, D) f32, w: (1, D) f32
    var = jnp.mean(x * x, axis=-1, keepdims=True)
    return x * jax.lax.rsqrt(var + RMS_EPS) * w


# ---------------- fused whole-forward Pallas kernel ----------------
def fused_forward_kernel(x_ref, bias_ref, cos_ref, sin_ref,
                         ln1_ref, wqkv_ref, wo_ref, ln2_ref, wgu_ref, wd_ref,
                         fln_ref, wlm_ref, o_ref):
    # x_ref:  (Bt, S, D) f32          bias_ref: (Bt, 1, S) additive padding bias
    # cos/sin: (S, D) f32             ln1/ln2:  (L, 1, D) f32
    # wqkv: (L, D, 3D) bf16   wo: (L, D, D) bf16   wgu: (L, D, 2I) bf16   wd: (L, I, D) bf16
    # fln:  (1, D) f32        wlm: (D, V) bf16     o_ref: (Bt, S, V) f32
    Bt, S, D = x_ref.shape
    R = Bt * S
    bf16 = jnp.bfloat16

    x = x_ref[...].reshape(R, D)                                   # residual stream (rows flat)

    # combined causal + padding bias (Bt, S, S), built ONCE per grid step, clamped.
    row = jax.lax.broadcasted_iota(jnp.int32, (S, S), 0)
    col = jax.lax.broadcasted_iota(jnp.int32, (S, S), 1)
    causal = jnp.where(col <= row, 0.0, NEG_INF)
    bias = jnp.maximum(causal[None, :, :] + bias_ref[...], NEG_INF)

    cos = cos_ref[...]                                             # (S, D)
    sin = sin_ref[...]                                             # (S, D), sign-folded [-sin,sin]

    # per-head half-swap as a (D, D) permutation matrix (built from iota, no HBM weight bytes):
    #   swap(x)[:, j] = x[:, partner(j)]  ==  x @ P  with  P[i, j] = (j == partner(i))
    i_idx = jax.lax.broadcasted_iota(jnp.int32, (D, D), 0)
    j_idx = jax.lax.broadcasted_iota(jnp.int32, (D, D), 1)
    partner = i_idx + jnp.where((i_idx % HEAD_DIM) < HALF, HALF, -HALF)
    p_swap = (j_idx == partner).astype(jnp.float32)                # (D, D)

    scale = 1.0 / math.sqrt(HEAD_DIM)

    for l in range(N_LAYERS):                                      # static unroll, L=2
        # -------- attention block --------
        xn = _rmsnorm(x, ln1_ref[l])                               # (R, D) f32
        qkv = jnp.dot(xn.astype(bf16), wqkv_ref[l],
                      preferred_element_type=jnp.float32)          # (R, 3D)
        q = qkv[:, 0 * D:1 * D]
        k = qkv[:, 1 * D:2 * D]
        v = qkv[:, 2 * D:3 * D]

        # in-kernel rotate-half: swap folded into a permutation matmul (exact, f32)
        qs = jnp.dot(q, p_swap, preferred_element_type=jnp.float32)
        ks = jnp.dot(k, p_swap, preferred_element_type=jnp.float32)

        qb = q.reshape(Bt, S, D) * cos[None] + qs.reshape(Bt, S, D) * sin[None]
        kb = k.reshape(Bt, S, D) * cos[None] + ks.reshape(Bt, S, D) * sin[None]
        vb = v.reshape(Bt, S, D)

        attn_proj = jnp.zeros((R, D), jnp.float32)
        wo_l = wo_ref[l]                                           # (D, D) bf16
        for h in range(N_HEADS):
            lo = h * HEAD_DIM
            qh = qb[:, :, lo:lo + HEAD_DIM].astype(bf16)           # (Bt, S, hd)
            kh = kb[:, :, lo:lo + HEAD_DIM].astype(bf16)
            vh = vb[:, :, lo:lo + HEAD_DIM].astype(bf16)
            s_h = jnp.einsum('bqd,bkd->bqk', qh, kh,
                             preferred_element_type=jnp.float32) * scale + bias
            m = jnp.max(s_h, axis=-1, keepdims=True)
            e = jnp.exp(s_h - m)
            p = e * pl.reciprocal(jnp.sum(e, axis=-1, keepdims=True), approx=True)
            ctx = jnp.einsum('bqk,bkd->bqd', p.astype(bf16), vh,
                             preferred_element_type=jnp.float32)   # (Bt, S, hd)
            # fold Wo into the head loop: no head concat, accumulate the projection directly
            attn_proj += jnp.dot(ctx.reshape(R, HEAD_DIM).astype(bf16),
                                 wo_l[lo:lo + HEAD_DIM, :],
                                 preferred_element_type=jnp.float32)
        x = x + attn_proj

        # -------- SwiGLU MLP block --------
        xn2 = _rmsnorm(x, ln2_ref[l])
        gu = jnp.dot(xn2.astype(bf16), wgu_ref[l],
                     preferred_element_type=jnp.float32)           # (R, 2I)
        g = gu[:, :INTERMEDIATE]                                   # clean 128-lane split
        u = gu[:, INTERMEDIATE:]
        hmid = (g * jax.nn.sigmoid(g)) * u                         # f32 elementwise
        x = x + jnp.dot(hmid.astype(bf16), wd_ref[l],
                        preferred_element_type=jnp.float32)

    # -------- final norm + LM head (lane-dense V=128 output) --------
    xf = _rmsnorm(x, fln_ref[...])
    logits = jnp.dot(xf.astype(bf16), wlm_ref[...],
                     preferred_element_type=jnp.float32)           # (R, V)
    o_ref[...] = logits.reshape(Bt, S, VOCAB)


# ---------------- pallas_call wrapper ----------------
def _full_spec(shape):
    return pl.BlockSpec(shape, lambda b: tuple(0 for _ in shape))


def _pick_block_b(B, max_bt=16):
    # largest divisor of B that keeps >=2 grid steps (v7x megacore) and <=max_bt batches/step
    best = 1
    for c in range(1, min(B, max_bt) + 1):
        if B % c == 0 and (B // c >= 2 or B == 1):
            best = c
    return best


def fused_forward(x_emb, pad_bias, fused):
    B, S, D = x_emb.shape
    V = fused["w_lm"].shape[1]
    Bt = _pick_block_b(B)
    cos, sin = fused["rope_cos"], fused["rope_sin"]
    return pl.pallas_call(
        fused_forward_kernel,
        out_shape=jax.ShapeDtypeStruct((B, S, V), jnp.float32),
        grid=(B // Bt,),
        in_specs=[
            pl.BlockSpec((Bt, S, D), lambda b: (b, 0, 0)),
            pl.BlockSpec((Bt, 1, S), lambda b: (b, 0, 0)),
            _full_spec(cos.shape), _full_spec(sin.shape),
            _full_spec(fused["ln1"].shape), _full_spec(fused["w_qkv"].shape),
            _full_spec(fused["wo"].shape), _full_spec(fused["ln2"].shape),
            _full_spec(fused["w_gu"].shape), _full_spec(fused["wd"].shape),
            _full_spec(fused["final_ln"].shape), _full_spec(fused["w_lm"].shape),
        ],
        out_specs=pl.BlockSpec((Bt, S, V), lambda b: (b, 0, 0)),
        compiler_params=pltpu.CompilerParams(dimension_semantics=("parallel",)),
    )(x_emb, pad_bias, cos, sin,
      fused["ln1"], fused["w_qkv"], fused["wo"], fused["ln2"],
      fused["w_gu"], fused["wd"], fused["final_ln"], fused["w_lm"])


# ---------------- parameter init & fusion prep ----------------
def init_params(key):
    def normal(k, shape, scale=0.02):
        return (scale * jax.random.normal(k, shape)).astype(jnp.float32)

    keys = jax.random.split(key, 3 + 9 * N_LAYERS)
    params = {
        "embed": normal(keys[0], (VOCAB, HIDDEN)),
        "final_ln": jnp.ones((1, HIDDEN), jnp.float32),
        "lm_head": normal(keys[1], (HIDDEN, VOCAB)),
        "layers": [],
    }
    idx = 2
    for _ in range(N_LAYERS):
        lk = keys[idx:idx + 9]
        idx += 9
        params["layers"].append({
            "ln1": jnp.ones((1, HIDDEN), jnp.float32),
            "wq": normal(lk[0], (HIDDEN, HIDDEN)),
            "wk": normal(lk[1], (HIDDEN, HIDDEN)),
            "wv": normal(lk[2], (HIDDEN, HIDDEN)),
            "wo": normal(lk[3], (HIDDEN, HIDDEN)),
            "ln2": jnp.ones((1, HIDDEN), jnp.float32),
            "wg": normal(lk[4], (HIDDEN, INTERMEDIATE)),
            "wu": normal(lk[5], (HIDDEN, INTERMEDIATE)),
            "wd": normal(lk[6], (INTERMEDIATE, HIDDEN)),
        })
    return params


def rope_tables_full(seq_len):
    inv_freq = 1.0 / (ROPE_THETA ** (jnp.arange(0, HALF, dtype=jnp.float32) * 2.0 / HEAD_DIM))
    pos = jnp.arange(seq_len, dtype=jnp.float32)
    freqs = pos[:, None] * inv_freq[None, :]                               # (S, HALF)
    cos, sin = jnp.cos(freqs), jnp.sin(freqs)
    cos_full = jnp.tile(jnp.concatenate([cos, cos], axis=-1), (1, N_HEADS))      # (S, D)
    sin_signed = jnp.tile(jnp.concatenate([-sin, sin], axis=-1), (1, N_HEADS))   # (S, D)
    return cos_full, sin_signed


def prepare_fused_params(params, seq_len):
    layers = params["layers"]
    bf16 = jnp.bfloat16
    cos_full, sin_signed = rope_tables_full(seq_len)      # precomputed once (review item)
    return {
        "embed": params["embed"],
        "ln1": jnp.stack([l["ln1"] for l in layers]),                      # (L, 1, D) f32
        "w_qkv": jnp.stack([jnp.concatenate([l["wq"], l["wk"], l["wv"]], axis=1)
                            for l in layers]).astype(bf16),                # (L, D, 3D) bf16
        "wo": jnp.stack([l["wo"] for l in layers]).astype(bf16),           # (L, D, D) bf16
        "ln2": jnp.stack([l["ln2"] for l in layers]),                      # (L, 1, D) f32
        "w_gu": jnp.stack([jnp.concatenate([l["wg"], l["wu"]], axis=1)
                           for l in layers]).astype(bf16),                 # (L, D, 2I) bf16
        "wd": jnp.stack([l["wd"] for l in layers]).astype(bf16),           # (L, I, D) bf16
        "final_ln": params["final_ln"],                                    # (1, D) f32
        "w_lm": params["lm_head"].astype(bf16),                            # (D, V) bf16
        "rope_cos": cos_full,                                              # (S, D) f32
        "rope_sin": sin_signed,                                            # (S, D) f32
    }


# ---------------- full forward (embedding + kernel + loss glue) ----------------
@jax.jit
def forward(fused, input_ids, attention_mask, labels):
    B, S = input_ids.shape
    x = jnp.take(fused["embed"], input_ids, axis=0)                        # (B, S, D) glue
    mask_f = attention_mask.astype(jnp.float32)
    pad_bias = ((1.0 - mask_f) * NEG_INF).reshape(B, 1, S)

    logits = fused_forward(x, pad_bias, fused)                             # (B, S, V) f32

    # HF-style shifted cross-entropy; ignore label==-100 AND padded positions.
    shift_logits = logits[:, :-1, :]
    shift_labels = labels[:, 1:]
    shift_mask = mask_f[:, 1:]
    valid = ((shift_labels != -100).astype(jnp.float32)) * shift_mask
    safe_labels = jnp.where(shift_labels < 0, 0, shift_labels)
    logz = jax.nn.logsumexp(shift_logits, axis=-1)
    tok_logp = jnp.take_along_axis(shift_logits, safe_labels[..., None], axis=-1)[..., 0]
    loss = jnp.sum((logz - tok_logp) * valid) / jnp.maximum(jnp.sum(valid), 1.0)
    return logits, loss


if __name__ == "__main__":
    key = jax.random.PRNGKey(0)
    k_param, k_ids = jax.random.split(key)

    B, S = 8, 8
    params = init_params(k_param)
    fused = prepare_fused_params(params, seq_len=S)
    input_ids = jax.random.randint(k_ids, (B, S), 0, VOCAB, dtype=jnp.int32)
    attention_mask = jnp.ones((B, S), jnp.int32).at[1, -2:].set(0)         # pad last 2 of seq 1
    labels = input_ids

    logits, loss = forward(fused, input_ids, attention_mask, labels)
    jax.block_until_ready((logits, loss))

    assert logits.shape == (B, S, VOCAB)
    assert jnp.isfinite(loss)
    print("KERNEL_OK")
</pallas_src>

<mosaic_0001>
module attributes {stable_mosaic.version = 11 : i64} {
  func.func @fused_forward_kernel(%arg0: i32, %arg1: memref<4x8x64xf32, #tpu.memory_space<vmem>>, %arg2: memref<4x1x8xf32, #tpu.memory_space<vmem>>, %arg3: memref<8x64xf32, #tpu.memory_space<vmem>>, %arg4: memref<8x64xf32, #tpu.memory_space<vmem>>, %arg5: memref<2x1x64xf32, #tpu.memory_space<vmem>>, %arg6: memref<2x64x192xbf16, #tpu.memory_space<vmem>>, %arg7: memref<2x64x64xbf16, #tpu.memory_space<vmem>>, %arg8: memref<2x1x64xf32, #tpu.memory_space<vmem>>, %arg9: memref<2x64x256xbf16, #tpu.memory_space<vmem>>, %arg10: memref<2x128x64xbf16, #tpu.memory_space<vmem>>, %arg11: memref<1x64xf32, #tpu.memory_space<vmem>>, %arg12: memref<64x128xbf16, #tpu.memory_space<vmem>>, %arg13: memref<4x8x128xf32, #tpu.memory_space<vmem>>) attributes {dimension_semantics = [#tpu.dimension_semantics<parallel>], iteration_bounds = array<i64: 2>, scalar_prefetch = 0 : i64, scratch_operands = 0 : i64, tpu.core_type = #tpu.core_type<tc>, window_params = [{transform_indices = @transform_0, window_bounds = array<i64: 4, 8, 64>}, {transform_indices = @transform_1, window_bounds = array<i64: 4, 1, 8>}, {pipeline_mode = #tpu.pipeline_mode<synchronous>, transform_indices = @transform_2, window_bounds = array<i64: 8, 64>}, {pipeline_mode = #tpu.pipeline_mode<synchronous>, transform_indices = @transform_3, window_bounds = array<i64: 8, 64>}, {pipeline_mode = #tpu.pipeline_mode<synchronous>, transform_indices = @transform_4, window_bounds = array<i64: 2, 1, 64>}, {pipeline_mode = #tpu.pipeline_mode<synchronous>, transform_indices = @transform_5, window_bounds = array<i64: 2, 64, 192>}, {pipeline_mode = #tpu.pipeline_mode<synchronous>, transform_indices = @transform_6, window_bounds = array<i64: 2, 64, 64>}, {pipeline_mode = #tpu.pipeline_mode<synchronous>, transform_indices = @transform_7, window_bounds = array<i64: 2, 1, 64>}, {pipeline_mode = #tpu.pipeline_mode<synchronous>, transform_indices = @transform_8, window_bounds = array<i64: 2, 64, 256>}, {pipeline_mode = #tpu.pipeline_mode<synchronous>, transform_indices = @transform_9, window_bounds = array<i64: 2, 128, 64>}, {pipeline_mode = #tpu.pipeline_mode<synchronous>, transform_indices = @transform_10, window_bounds = array<i64: 1, 64>}, {pipeline_mode = #tpu.pipeline_mode<synchronous>, transform_indices = @transform_11, window_bounds = array<i64: 64, 128>}, {transform_indices = @transform_12, window_bounds = array<i64: 4, 8, 128>}]} {
    %c0 = arith.constant 0 : index
    %c0_0 = arith.constant 0 : index
    %c0_1 = arith.constant 0 : index
    %0 = vector.load %arg1[%c0, %c0_0, %c0_1] : memref<4x8x64xf32, #tpu.memory_space<vmem>>, vector<4x8x64xf32>
    %1 = vector.shape_cast %0 : vector<4x8x64xf32> to vector<32x64xf32>
    %2 = tpu.iota {dimensions = array<i32: 0>} : vector<8x8xi32>
    %3 = tpu.iota {dimensions = array<i32: 1>} : vector<8x8xi32>
    %4 = arith.cmpi sle, %3, %2 : vector<8x8xi32>
    %cst = arith.constant 0.000000e+00 : f32
    %cst_2 = arith.constant -1.000000e+09 : f32
    %5 = vector.broadcast %cst : f32 to vector<8x8xf32>
    %6 = vector.broadcast %cst_2 : f32 to vector<8x8xf32>
    %7 = arith.select %4, %5, %6 : vector<8x8xi1>, vector<8x8xf32>
    %8 = vector.shape_cast %7 : vector<8x8xf32> to vector<1x8x8xf32>
    %c0_3 = arith.constant 0 : index
    %c0_4 = arith.constant 0 : index
    %c0_5 = arith.constant 0 : index
    %9 = vector.load %arg2[%c0_3, %c0_4, %c0_5] : memref<4x1x8xf32, #tpu.memory_space<vmem>>, vector<4x1x8xf32>
    %10 = vector.broadcast %8 : vector<1x8x8xf32> to vector<4x8x8xf32>
    %11 = vector.broadcast %9 : vector<4x1x8xf32> to vector<4x8x8xf32>
    %12 = arith.addf %10, %11 : vector<4x8x8xf32>
    %cst_6 = arith.constant -1.000000e+09 : f32
    %13 = vector.broadcast %cst_6 : f32 to vector<4x8x8xf32>
    %14 = arith.maximumf %12, %13 : vector<4x8x8xf32>
    %c0_7 = arith.constant 0 : index
    %c0_8 = arith.constant 0 : index
    %15 = vector.load %arg3[%c0_7, %c0_8] : memref<8x64xf32, #tpu.memory_space<vmem>>, vector<8x64xf32>
    %c0_9 = arith.constant 0 : index
    %c0_10 = arith.constant 0 : index
    %16 = vector.load %arg4[%c0_9, %c0_10] : memref<8x64xf32, #tpu.memory_space<vmem>>, vector<8x64xf32>
    %17 = tpu.iota {dimensions = array<i32: 0>} : vector<64x64xi32>
    %18 = tpu.iota {dimensions = array<i32: 1>} : vector<64x64xi32>
    %c16_i32 = arith.constant 16 : i32
    %c0_i32 = arith.constant 0 : i32
    %19 = arith.cmpi eq, %c16_i32, %c0_i32 : i32
    %c1_i32 = arith.constant 1 : i32
    %20 = arith.select %19, %c1_i32, %c16_i32 : i32
    %21 = vector.broadcast %20 : i32 to vector<64x64xi32>
    %22 = arith.remsi %17, %21 : vector<64x64xi32>
    %c0_i32_11 = arith.constant 0 : i32
    %23 = vector.broadcast %c0_i32_11 : i32 to vector<64x64xi32>
    %24 = arith.cmpi ne, %22, %23 : vector<64x64xi32>
    %c0_i32_12 = arith.constant 0 : i32
    %25 = vector.broadcast %c0_i32_12 : i32 to vector<64x64xi32>
    %26 = arith.cmpi slt, %22, %25 : vector<64x64xi32>
    %c0_i32_13 = arith.constant 0 : i32
    %27 = arith.cmpi slt, %20, %c0_i32_13 : i32
    %28 = vector.broadcast %27 : i1 to vector<64x64xi1>
    %29 = vector.broadcast %28 : vector<64x64xi1> to vector<64x64xi1>
    %30 = arith.xori %26, %29 : vector<64x64xi1>
    %31 = arith.andi %30, %24 : vector<64x64xi1>
    %32 = vector.broadcast %20 : i32 to vector<64x64xi32>
    %33 = arith.addi %22, %32 : vector<64x64xi32>
    %34 = arith.select %31, %33, %22 : vector<64x64xi1>, vector<64x64xi32>
    %c8_i32 = arith.constant 8 : i32
    %35 = vector.broadcast %c8_i32 : i32 to vector<64x64xi32>
    %36 = arith.cmpi slt, %34, %35 : vector<64x64xi32>
    %c8_i32_14 = arith.constant 8 : i32
    %c-8_i32 = arith.constant -8 : i32
    %37 = vector.broadcast %c8_i32_14 : i32 to vector<64x64xi32>
    %38 = vector.broadcast %c-8_i32 : i32 to vector<64x64xi32>
    %39 = arith.select %36, %37, %38 : vector<64x64xi1>, vector<64x64xi32>
    %40 = arith.addi %17, %39 : vector<64x64xi32>
    %41 = arith.cmpi eq, %18, %40 : vector<64x64xi32>
    %42 = arith.extui %41 : vector<64x64xi1> to vector<64x64xi32>
    %43 = arith.sitofp %42 : vector<64x64xi32> to vector<64x64xf32>
    %c0_15 = arith.constant 0 : index
    %c0_16 = arith.constant 0 : index
    %c0_17 = arith.constant 0 : index
    %44 = vector.load %arg5[%c0_15, %c0_16, %c0_17] : memref<2x1x64xf32, #tpu.memory_space<vmem>>, vector<1x1x64xf32>
    %45 = vector.shape_cast %44 : vector<1x1x64xf32> to vector<1x64xf32>
    %46 = arith.mulf %1, %1 : vector<32x64xf32>
    %cst_18 = arith.constant dense<0.000000e+00> : vector<32xf32>
    %47 = vector.multi_reduction <add>, %46, %cst_18 [1] : vector<32x64xf32> to vector<32xf32>
    %48 = vector.shape_cast %47 : vector<32xf32> to vector<32x1xf32>
    %cst_19 = arith.constant 6.400000e+01 : f32
    %49 = vector.broadcast %cst_19 : f32 to vector<32x1xf32>
    %50 = arith.divf %48, %49 : vector<32x1xf32>
    %cst_20 = arith.constant 9.99999997E-7 : f32
    %51 = vector.broadcast %cst_20 : f32 to vector<32x1xf32>
    %52 = arith.addf %50, %51 : vector<32x1xf32>
    %53 = math.rsqrt %52 : vector<32x1xf32>
    %54 = vector.broadcast %53 : vector<32x1xf32> to vector<32x64xf32>
    %55 = arith.mulf %1, %54 : vector<32x64xf32>
    %56 = vector.broadcast %45 : vector<1x64xf32> to vector<32x64xf32>
    %57 = arith.mulf %55, %56 : vector<32x64xf32>
    %58 = arith.truncf %57 : vector<32x64xf32> to vector<32x64xbf16>
    %c0_21 = arith.constant 0 : index
    %c0_22 = arith.constant 0 : index
    %c0_23 = arith.constant 0 : index
    %59 = vector.load %arg6[%c0_21, %c0_22, %c0_23] : memref<2x64x192xbf16, #tpu.memory_space<vmem>>, vector<1x64x192xbf16>
    %60 = vector.shape_cast %59 : vector<1x64x192xbf16> to vector<64x192xbf16>
    %cst_24 = arith.constant dense<0.000000e+00> : vector<32x192xf32>
    %61 = tpu.matmul %58, %60, %cst_24 {dimension_numbers = #tpu.dot_dimension_numbers<[1], [0], [0], [1], [0, 0, 1, 1], [], []>} : vector<32x64xbf16>, vector<64x192xbf16>, vector<32x192xf32> -> vector<32x192xf32>
    %62 = vector.extract_strided_slice %61 {offsets = [0, 0], sizes = [32, 64], strides = [1, 1]} : vector<32x192xf32> to vector<32x64xf32>
    %63 = vector.extract_strided_slice %61 {offsets = [0, 64], sizes = [32, 64], strides = [1, 1]} : vector<32x192xf32> to vector<32x64xf32>
    %64 = vector.extract_strided_slice %61 {offsets = [0, 128], sizes = [32, 64], strides = [1, 1]} : vector<32x192xf32> to vector<32x64xf32>
    %cst_25 = arith.constant dense<0.000000e+00> : vector<32x64xf32>
    %65 = tpu.matmul %62, %43, %cst_25 {dimension_numbers = #tpu.dot_dimension_numbers<[1], [0], [0], [1], [0, 0, 1, 1], [], []>} : vector<32x64xf32>, vector<64x64xf32>, vector<32x64xf32> -> vector<32x64xf32>
    %cst_26 = arith.constant dense<0.000000e+00> : vector<32x64xf32>
    %66 = tpu.matmul %63, %43, %cst_26 {dimension_numbers = #tpu.dot_dimension_numbers<[1], [0], [0], [1], [0, 0, 1, 1], [], []>} : vector<32x64xf32>, vector<64x64xf32>, vector<32x64xf32> -> vector<32x64xf32>
    %67 = vector.shape_cast %62 : vector<32x64xf32> to vector<4x8x64xf32>
    %68 = vector.shape_cast %15 : vector<8x64xf32> to vector<1x8x64xf32>
    %69 = vector.broadcast %68 : vector<1x8x64xf32> to vector<4x8x64xf32>
    %70 = arith.mulf %67, %69 : vector<4x8x64xf32>
    %71 = vector.shape_cast %65 : vector<32x64xf32> to vector<4x8x64xf32>
    %72 = vector.shape_cast %16 : vector<8x64xf32> to vector<1x8x64xf32>
    %73 = vector.broadcast %72 : vector<1x8x64xf32> to vector<4x8x64xf32>
    %74 = arith.mulf %71, %73 : vector<4x8x64xf32>
    %75 = arith.addf %70, %74 : vector<4x8x64xf32>
    %76 = vector.shape_cast %63 : vector<32x64xf32> to vector<4x8x64xf32>
    %77 = vector.shape_cast %15 : vector<8x64xf32> to vector<1x8x64xf32>
    %78 = vector.broadcast %77 : vector<1x8x64xf32> to vector<4x8x64xf32>
    %79 = arith.mulf %76, %78 : vector<4x8x64xf32>
    %80 = vector.shape_cast %66 : vector<32x64xf32> to vector<4x8x64xf32>
    %81 = vector.shape_cast %16 : vector<8x64xf32> to vector<1x8x64xf32>
    %82 = vector.broadcast %81 : vector<1x8x64xf32> to vector<4x8x64xf32>
    %83 = arith.mulf %80, %82 : vector<4x8x64xf32>
    %84 = arith.addf %79, %83 : vector<4x8x64xf32>
    %85 = vector.shape_cast %64 : vector<32x64xf32> to vector<4x8x64xf32>
    %cst_27 = arith.constant 0.000000e+00 : f32
    %86 = vector.broadcast %cst_27 : f32 to vector<32x64xf32>
    %c0_28 = arith.constant 0 : index
    %c0_29 = arith.constant 0 : index
    %c0_30 = arith.constant 0 : index
    %87 = vector.load %arg7[%c0_28, %c0_29, %c0_30] : memref<2x64x64xbf16, #tpu.memory_space<vmem>>, vector<1x64x64xbf16>
    %88 = vector.shape_cast %87 : vector<1x64x64xbf16> to vector<64x64xbf16>
    %89 = vector.extract_strided_slice %75 {offsets = [0, 0, 0], sizes = [4, 8, 16], strides = [1, 1, 1]} : vector<4x8x64xf32> to vector<4x8x16xf32>
    %90 = arith.truncf %89 : vector<4x8x16xf32> to vector<4x8x16xbf16>
    %91 = vector.extract_strided_slice %84 {offsets = [0, 0, 0], sizes = [4, 8, 16], strides = [1, 1, 1]} : vector<4x8x64xf32> to vector<4x8x16xf32>
    %92 = arith.truncf %91 : vector<4x8x16xf32> to vector<4x8x16xbf16>
    %93 = vector.extract_strided_slice %85 {offsets = [0, 0, 0], sizes = [4, 8, 16], strides = [1, 1, 1]} : vector<4x8x64xf32> to vector<4x8x16xf32>
    %94 = arith.truncf %93 : vector<4x8x16xf32> to vector<4x8x16xbf16>
    "tpu.trace_start"() <{level = 10 : i32, message = "bqd,bkd->bqk"}> : () -> ()
    %cst_31 = arith.constant dense<0.000000e+00> : vector<4x8x8xf32>
    %95 = tpu.matmul %90, %92, %cst_31 {dimension_numbers = #tpu.dot_dimension_numbers<[2], [2], [1], [1], [0, 0, 0, 1, 1, 1], [0], [0]>} : vector<4x8x16xbf16>, vector<4x8x16xbf16>, vector<4x8x8xf32> -> vector<4x8x8xf32>
    "tpu.trace_stop"() : () -> ()
    %cst_32 = arith.constant 2.500000e-01 : f32
    %96 = vector.broadcast %cst_32 : f32 to vector<4x8x8xf32>
    %97 = arith.mulf %95, %96 : vector<4x8x8xf32>
    %98 = arith.addf %97, %14 : vector<4x8x8xf32>
    %cst_33 = arith.constant dense<0xFF800000> : vector<4x8xf32>
    %99 = vector.multi_reduction <maximumf>, %98, %cst_33 [2] : vector<4x8x8xf32> to vector<4x8xf32>
    %100 = vector.shape_cast %99 : vector<4x8xf32> to vector<4x8x1xf32>
    %101 = vector.broadcast %100 : vector<4x8x1xf32> to vector<4x8x8xf32>
    %102 = arith.subf %98, %101 : vector<4x8x8xf32>
    %103 = math.exp %102 : vector<4x8x8xf32>
    %cst_34 = arith.constant dense<0.000000e+00> : vector<4x8xf32>
    %104 = vector.multi_reduction <add>, %103, %cst_34 [2] : vector<4x8x8xf32> to vector<4x8xf32>
    %105 = vector.shape_cast %104 : vector<4x8xf32> to vector<4x8x1xf32>
    %106 = tpu.reciprocal %105 {approx = true} : vector<4x8x1xf32> -> vector<4x8x1xf32>
    %107 = vector.broadcast %106 : vector<4x8x1xf32> to vector<4x8x8xf32>
    %108 = arith.mulf %103, %107 : vector<4x8x8xf32>
    %109 = arith.truncf %108 : vector<4x8x8xf32> to vector<4x8x8xbf16>
    "tpu.trace_start"() <{level = 10 : i32, message = "bqk,bkd->bqd"}> : () -> ()
    %cst_35 = arith.constant dense<0.000000e+00> : vector<4x8x16xf32>
    %110 = tpu.matmul %109, %94, %cst_35 {dimension_numbers = #tpu.dot_dimension_numbers<[2], [1], [1], [2], [0, 0, 0, 1, 1, 2], [0], [0]>} : vector<4x8x8xbf16>, vector<4x8x16xbf16>, vector<4x8x16xf32> -> vector<4x8x16xf32>
    "tpu.trace_stop"() : () -> ()
    %111 = vector.shape_cast %110 : vector<4x8x16xf32> to vector<32x16xf32>
    %112 = arith.truncf %111 : vector<32x16xf32> to vector<32x16xbf16>
    %113 = vector.extract_strided_slice %88 {offsets = [0, 0], sizes = [16, 64], strides = [1, 1]} : vector<64x64xbf16> to vector<16x64xbf16>
    %cst_36 = arith.constant dense<0.000000e+00> : vector<32x64xf32>
    %114 = tpu.matmul %112, %113, %cst_36 {dimension_numbers = #tpu.dot_dimension_numbers<[1], [0], [0], [1], [0, 0, 1, 1], [], []>} : vector<32x16xbf16>, vector<16x64xbf16>, vector<32x64xf32> -> vector<32x64xf32>
    %115 = arith.addf %86, %114 : vector<32x64xf32>
    %116 = vector.extract_strided_slice %75 {offsets = [0, 0, 16], sizes = [4, 8, 16], strides = [1, 1, 1]} : vector<4x8x64xf32> to vector<4x8x16xf32>
    %117 = arith.truncf %116 : vector<4x8x16xf32> to vector<4x8x16xbf16>
    %118 = vector.extract_strided_slice %84 {offsets = [0, 0, 16], sizes = [4, 8, 16], strides = [1, 1, 1]} : vector<4x8x64xf32> to vector<4x8x16xf32>
    %119 = arith.truncf %118 : vector<4x8x16xf32> to vector<4x8x16xbf16>
    %120 = vector.extract_strided_slice %85 {offsets = [0, 0, 16], sizes = [4, 8, 16], strides = [1, 1, 1]} : vector<4x8x64xf32> to vector<4x8x16xf32>
    %121 = arith.truncf %120 : vector<4x8x16xf32> to vector<4x8x16xbf16>
    "tpu.trace_start"() <{level = 10 : i32, message = "bqd,bkd->bqk"}> : () -> ()
    %cst_37 = arith.constant dense<0.000000e+00> : vector<4x8x8xf32>
    %122 = tpu.matmul %117, %119, %cst_37 {dimension_numbers = #tpu.dot_dimension_numbers<[2], [2], [1], [1], [0, 0, 0, 1, 1, 1], [0], [0]>} : vector<4x8x16xbf16>, vector<4x8x16xbf16>, vector<4x8x8xf32> -> vector<4x8x8xf32>
    "tpu.trace_stop"() : () -> ()
    %cst_38 = arith.constant 2.500000e-01 : f32
    %123 = vector.broadcast %cst_38 : f32 to vector<4x8x8xf32>
    %124 = arith.mulf %122, %123 : vector<4x8x8xf32>
    %125 = arith.addf %124, %14 : vector<4x8x8xf32>
    %cst_39 = arith.constant dense<0xFF800000> : vector<4x8xf32>
    %126 = vector.multi_reduction <maximumf>, %125, %cst_39 [2] : vector<4x8x8xf32> to vector<4x8xf32>
    %127 = vector.shape_cast %126 : vector<4x8xf32> to vector<4x8x1xf32>
    %128 = vector.broadcast %127 : vector<4x8x1xf32> to vector<4x8x8xf32>
    %129 = arith.subf %125, %128 : vector<4x8x8xf32>
    %130 = math.exp %129 : vector<4x8x8xf32>
    %cst_40 = arith.constant dense<0.000000e+00> : vector<4x8xf32>
    %131 = vector.multi_reduction <add>, %130, %cst_40 [2] : vector<4x8x8xf32> to vector<4x8xf32>
    %132 = vector.shape_cast %131 : vector<4x8xf32> to vector<4x8x1xf32>
    %133 = tpu.reciprocal %132 {approx = true} : vector<4x8x1xf32> -> vector<4x8x1xf32>
    %134 = vector.broadcast %133 : vector<4x8x1xf32> to vector<4x8x8xf32>
    %135 = arith.mulf %130, %134 : vector<4x8x8xf32>
    %136 = arith.truncf %135 : vector<4x8x8xf32> to vector<4x8x8xbf16>
    "tpu.trace_start"() <{level = 10 : i32, message = "bqk,bkd->bqd"}> : () -> ()
    %cst_41 = arith.constant dense<0.000000e+00> : vector<4x8x16xf32>
    %137 = tpu.matmul %136, %121, %cst_41 {dimension_numbers = #tpu.dot_dimension_numbers<[2], [1], [1], [2], [0, 0, 0, 1, 1, 2], [0], [0]>} : vector<4x8x8xbf16>, vector<4x8x16xbf16>, vector<4x8x16xf32> -> vector<4x8x16xf32>
    "tpu.trace_stop"() : () -> ()
    %138 = vector.shape_cast %137 : vector<4x8x16xf32> to vector<32x16xf32>
    %139 = arith.truncf %138 : vector<32x16xf32> to vector<32x16xbf16>
    %140 = vector.extract_strided_slice %88 {offsets = [16, 0], sizes = [16, 64], strides = [1, 1]} : vector<64x64xbf16> to vector<16x64xbf16>
    %cst_42 = arith.constant dense<0.000000e+00> : vector<32x64xf32>
    %141 = tpu.matmul %139, %140, %cst_42 {dimension_numbers = #tpu.dot_dimension_numbers<[1], [0], [0], [1], [0, 0, 1, 1], [], []>} : vector<32x16xbf16>, vector<16x64xbf16>, vector<32x64xf32> -> vector<32x64xf32>
    %142 = arith.addf %115, %141 : vector<32x64xf32>
    %143 = vector.extract_strided_slice %75 {offsets = [0, 0, 32], sizes = [4, 8, 16], strides = [1, 1, 1]} : vector<4x8x64xf32> to vector<4x8x16xf32>
    %144 = arith.truncf %143 : vector<4x8x16xf32> to vector<4x8x16xbf16>
    %145 = vector.extract_strided_slice %84 {offsets = [0, 0, 32], sizes = [4, 8, 16], strides = [1, 1, 1]} : vector<4x8x64xf32> to vector<4x8x16xf32>
    %146 = arith.truncf %145 : vector<4x8x16xf32> to vector<4x8x16xbf16>
    %147 = vector.extract_strided_slice %85 {offsets = [0, 0, 32], sizes = [4, 8, 16], strides = [1, 1, 1]} : vector<4x8x64xf32> to vector<4x8x16xf32>
    %148 = arith.truncf %147 : vector<4x8x16xf32> to vector<4x8x16xbf16>
    "tpu.trace_start"() <{level = 10 : i32, message = "bqd,bkd->bqk"}> : () -> ()
    %cst_43 = arith.constant dense<0.000000e+00> : vector<4x8x8xf32>
    %149 = tpu.matmul %144, %146, %cst_43 {dimension_numbers = #tpu.dot_dimension_numbers<[2], [2], [1], [1], [0, 0, 0, 1, 1, 1], [0], [0]>} : vector<4x8x16xbf16>, vector<4x8x16xbf16>, vector<4x8x8xf32> -> vector<4x8x8xf32>
    "tpu.trace_stop"() : () -> ()
    %cst_44 = arith.constant 2.500000e-01 : f32
    %150 = vector.broadcast %cst_44 : f32 to vector<4x8x8xf32>
    %151 = arith.mulf %149, %150 : vector<4x8x8xf32>
    %152 = arith.addf %151, %14 : vector<4x8x8xf32>
    %cst_45 = arith.constant dense<0xFF800000> : vector<4x8xf32>
    %153 = vector.multi_reduction <maximumf>, %152, %cst_45 [2] : vector<4x8x8xf32> to vector<4x8xf32>
    %154 = vector.shape_cast %153 : vector<4x8xf32> to vector<4x8x1xf32>
    %155 = vector.broadcast %154 : vector<4x8x1xf32> to vector<4x8x8xf32>
    %156 = arith.subf %152, %155 : vector<4x8x8xf32>
    %157 = math.exp %156 : vector<4x8x8xf32>
    %cst_46 = arith.constant dense<0.000000e+00> : vector<4x8xf32>
    %158 = vector.multi_reduction <add>, %157, %cst_46 [2] : vector<4x8x8xf32> to vector<4x8xf32>
    %159 = vector.shape_cast %158 : vector<4x8xf32> to vector<4x8x1xf32>
    %160 = tpu.reciprocal %159 {approx = true} : vector<4x8x1xf32> -> vector<4x8x1xf32>
    %161 = vector.broadcast %160 : vector<4x8x1xf32> to vector<4x8x8xf32>
    %162 = arith.mulf %157, %161 : vector<4x8x8xf32>
    %163 = arith.truncf %162 : vector<4x8x8xf32> to vector<4x8x8xbf16>
    "tpu.trace_start"() <{level = 10 : i32, message = "bqk,bkd->bqd"}> : () -> ()
    %cst_47 = arith.constant dense<0.000000e+00> : vector<4x8x16xf32>
    %164 = tpu.matmul %163, %148, %cst_47 {dimension_numbers = #tpu.dot_dimension_numbers<[2], [1], [1], [2], [0, 0, 0, 1, 1, 2], [0], [0]>} : vector<4x8x8xbf16>, vector<4x8x16xbf16>, vector<4x8x16xf32> -> vector<4x8x16xf32>
    "tpu.trace_stop"() : () -> ()
    %165 = vector.shape_cast %164 : vector<4x8x16xf32> to vector<32x16xf32>
    %166 = arith.truncf %165 : vector<32x16xf32> to vector<32x16xbf16>
    %167 = vector.extract_strided_slice %88 {offsets = [32, 0], sizes = [16, 64], strides = [1, 1]} : vector<64x64xbf16> to vector<16x64xbf16>
    %cst_48 = arith.constant dense<0.000000e+00> : vector<32x64xf32>
    %168 = tpu.matmul %166, %167, %cst_48 {dimension_numbers = #tpu.dot_dimension_numbers<[1], [0], [0], [1], [0, 0, 1, 1], [], []>} : vector<32x16xbf16>, vector<16x64xbf16>, vector<32x64xf32> -> vector<32x64xf32>
    %169 = arith.addf %142, %168 : vector<32x64xf32>
    %170 = vector.extract_strided_slice %75 {offsets = [0, 0, 48], sizes = [4, 8, 16], strides = [1, 1, 1]} : vector<4x8x64xf32> to vector<4x8x16xf32>
    %171 = arith.truncf %170 : vector<4x8x16xf32> to vector<4x8x16xbf16>
    %172 = vector.extract_strided_slice %84 {offsets = [0, 0, 48], sizes = [4, 8, 16], strides = [1, 1, 1]} : vector<4x8x64xf32> to vector<4x8x16xf32>
    %173 = arith.truncf %172 : vector<4x8x16xf32> to vector<4x8x16xbf16>
    %174 = vector.extract_strided_slice %85 {offsets = [0, 0, 48], sizes = [4, 8, 16], strides = [1, 1, 1]} : vector<4x8x64xf32> to vector<4x8x16xf32>
    %175 = arith.truncf %174 : vector<4x8x16xf32> to vector<4x8x16xbf16>
    "tpu.trace_start"() <{level = 10 : i32, message = "bqd,bkd->bqk"}> : () -> ()
    %cst_49 = arith.constant dense<0.000000e+00> : vector<4x8x8xf32>
    %176 = tpu.matmul %171, %173, %cst_49 {dimension_numbers = #tpu.dot_dimension_numbers<[2], [2], [1], [1], [0, 0, 0, 1, 1, 1], [0], [0]>} : vector<4x8x16xbf16>, vector<4x8x16xbf16>, vector<4x8x8xf32> -> vector<4x8x8xf32>
    "tpu.trace_stop"() : () -> ()
    %cst_50 = arith.constant 2.500000e-01 : f32
    %177 = vector.broadcast %cst_50 : f32 to vector<4x8x8xf32>
    %178 = arith.mulf %176, %177 : vector<4x8x8xf32>
    %179 = arith.addf %178, %14 : vector<4x8x8xf32>
    %cst_51 = arith.constant dense<0xFF800000> : vector<4x8xf32>
    %180 = vector.multi_reduction <maximumf>, %179, %cst_51 [2] : vector<4x8x8xf32> to vector<4x8xf32>
    %181 = vector.shape_cast %180 : vector<4x8xf32> to vector<4x8x1xf32>
    %182 = vector.broadcast %181 : vector<4x8x1xf32> to vector<4x8x8xf32>
    %183 = arith.subf %179, %182 : vector<4x8x8xf32>
    %184 = math.exp %183 : vector<4x8x8xf32>
    %cst_52 = arith.constant dense<0.000000e+00> : vector<4x8xf32>
    %185 = vector.multi_reduction <add>, %184, %cst_52 [2] : vector<4x8x8xf32> to vector<4x8xf32>
    %186 = vector.shape_cast %185 : vector<4x8xf32> to vector<4x8x1xf32>
    %187 = tpu.reciprocal %186 {approx = true} : vector<4x8x1xf32> -> vector<4x8x1xf32>
    %188 = vector.broadcast %187 : vector<4x8x1xf32> to vector<4x8x8xf32>
    %189 = arith.mulf %184, %188 : vector<4x8x8xf32>
    %190 = arith.truncf %189 : vector<4x8x8xf32> to vector<4x8x8xbf16>
    "tpu.trace_start"() <{level = 10 : i32, message = "bqk,bkd->bqd"}> : () -> ()
    %cst_53 = arith.constant dense<0.000000e+00> : vector<4x8x16xf32>
    %191 = tpu.matmul %190, %175, %cst_53 {dimension_numbers = #tpu.dot_dimension_numbers<[2], [1], [1], [2], [0, 0, 0, 1, 1, 2], [0], [0]>} : vector<4x8x8xbf16>, vector<4x8x16xbf16>, vector<4x8x16xf32> -> vector<4x8x16xf32>
    "tpu.trace_stop"() : () -> ()
    %192 = vector.shape_cast %191 : vector<4x8x16xf32> to vector<32x16xf32>
    %193 = arith.truncf %192 : vector<32x16xf32> to vector<32x16xbf16>
    %194 = vector.extract_strided_slice %88 {offsets = [48, 0], sizes = [16, 64], strides = [1, 1]} : vector<64x64xbf16> to vector<16x64xbf16>
    %cst_54 = arith.constant dense<0.000000e+00> : vector<32x64xf32>
    %195 = tpu.matmul %193, %194, %cst_54 {dimension_numbers = #tpu.dot_dimension_numbers<[1], [0], [0], [1], [0, 0, 1, 1], [], []>} : vector<32x16xbf16>, vector<16x64xbf16>, vector<32x64xf32> -> vector<32x64xf32>
    %196 = arith.addf %169, %195 : vector<32x64xf32>
    %197 = arith.addf %1, %196 : vector<32x64xf32>
    %c0_55 = arith.constant 0 : index
    %c0_56 = arith.constant 0 : index
    %c0_57 = arith.constant 0 : index
    %198 = vector.load %arg8[%c0_55, %c0_56, %c0_57] : memref<2x1x64xf32, #tpu.memory_space<vmem>>, vector<1x1x64xf32>
    %199 = vector.shape_cast %198 : vector<1x1x64xf32> to vector<1x64xf32>
    %200 = arith.mulf %197, %197 : vector<32x64xf32>
    %cst_58 = arith.constant dense<0.000000e+00> : vector<32xf32>
    %201 = vector.multi_reduction <add>, %200, %cst_58 [1] : vector<32x64xf32> to vector<32xf32>
    %202 = vector.shape_cast %201 : vector<32xf32> to vector<32x1xf32>
    %cst_59 = arith.constant 6.400000e+01 : f32
    %203 = vector.broadcast %cst_59 : f32 to vector<32x1xf32>
    %204 = arith.divf %202, %203 : vector<32x1xf32>
    %cst_60 = arith.constant 9.99999997E-7 : f32
    %205 = vector.broadcast %cst_60 : f32 to vector<32x1xf32>
    %206 = arith.addf %204, %205 : vector<32x1xf32>
    %207 = math.rsqrt %206 : vector<32x1xf32>
    %208 = vector.broadcast %207 : vector<32x1xf32> to vector<32x64xf32>
    %209 = arith.mulf %197, %208 : vector<32x64xf32>
    %210 = vector.broadcast %199 : vector<1x64xf32> to vector<32x64xf32>
    %211 = arith.mulf %209, %210 : vector<32x64xf32>
    %212 = arith.truncf %211 : vector<32x64xf32> to vector<32x64xbf16>
    %c0_61 = arith.constant 0 : index
    %c0_62 = arith.constant 0 : index
    %c0_63 = arith.constant 0 : index
    %213 = vector.load %arg9[%c0_61, %c0_62, %c0_63] : memref<2x64x256xbf16, #tpu.memory_space<vmem>>, vector<1x64x256xbf16>
    %214 = vector.shape_cast %213 : vector<1x64x256xbf16> to vector<64x256xbf16>
    %cst_64 = arith.constant dense<0.000000e+00> : vector<32x256xf32>
    %215 = tpu.matmul %212, %214, %cst_64 {dimension_numbers = #tpu.dot_dimension_numbers<[1], [0], [0], [1], [0, 0, 1, 1], [], []>} : vector<32x64xbf16>, vector<64x256xbf16>, vector<32x256xf32> -> vector<32x256xf32>
    %216 = vector.extract_strided_slice %215 {offsets = [0, 0], sizes = [32, 128], strides = [1, 1]} : vector<32x256xf32> to vector<32x128xf32>
    %217 = vector.extract_strided_slice %215 {offsets = [0, 128], sizes = [32, 128], strides = [1, 1]} : vector<32x256xf32> to vector<32x128xf32>
    %218 = arith.negf %216 : vector<32x128xf32>
    %219 = math.exp %218 : vector<32x128xf32>
    %cst_65 = arith.constant 1.000000e+00 : f32
    %220 = vector.broadcast %cst_65 : f32 to vector<32x128xf32>
    %221 = arith.addf %220, %219 : vector<32x128xf32>
    %222 = arith.divf %220, %221 : vector<32x128xf32>
    %223 = arith.mulf %216, %222 : vector<32x128xf32>
    %224 = arith.mulf %223, %217 : vector<32x128xf32>
    %225 = arith.truncf %224 : vector<32x128xf32> to vector<32x128xbf16>
    %c0_66 = arith.constant 0 : index
    %c0_67 = arith.constant 0 : index
    %c0_68 = arith.constant 0 : index
    %226 = vector.load %arg10[%c0_66, %c0_67, %c0_68] : memref<2x128x64xbf16, #tpu.memory_space<vmem>>, vector<1x128x64xbf16>
    %227 = vector.shape_cast %226 : vector<1x128x64xbf16> to vector<128x64xbf16>
    %cst_69 = arith.constant dense<0.000000e+00> : vector<32x64xf32>
    %228 = tpu.matmul %225, %227, %cst_69 {dimension_numbers = #tpu.dot_dimension_numbers<[1], [0], [0], [1], [0, 0, 1, 1], [], []>} : vector<32x128xbf16>, vector<128x64xbf16>, vector<32x64xf32> -> vector<32x64xf32>
    %229 = arith.addf %197, %228 : vector<32x64xf32>
    %c1 = arith.constant 1 : index
    %c0_70 = arith.constant 0 : index
    %c0_71 = arith.constant 0 : index
    %230 = vector.load %arg5[%c1, %c0_70, %c0_71] : memref<2x1x64xf32, #tpu.memory_space<vmem>>, vector<1x1x64xf32>
    %231 = vector.shape_cast %230 : vector<1x1x64xf32> to vector<1x64xf32>
    %232 = arith.mulf %229, %229 : vector<32x64xf32>
    %cst_72 = arith.constant dense<0.000000e+00> : vector<32xf32>
    %233 = vector.multi_reduction <add>, %232, %cst_72 [1] : vector<32x64xf32> to vector<32xf32>
    %234 = vector.shape_cast %233 : vector<32xf32> to vector<32x1xf32>
    %cst_73 = arith.constant 6.400000e+01 : f32
    %235 = vector.broadcast %cst_73 : f32 to vector<32x1xf32>
    %236 = arith.divf %234, %235 : vector<32x1xf32>
    %cst_74 = arith.constant 9.99999997E-7 : f32
    %237 = vector.broadcast %cst_74 : f32 to vector<32x1xf32>
    %238 = arith.addf %236, %237 : vector<32x1xf32>
    %239 = math.rsqrt %238 : vector<32x1xf32>
    %240 = vector.broadcast %239 : vector<32x1xf32> to vector<32x64xf32>
    %241 = arith.mulf %229, %240 : vector<32x64xf32>
    %242 = vector.broadcast %231 : vector<1x64xf32> to vector<32x64xf32>
    %243 = arith.mulf %241, %242 : vector<32x64xf32>
    %244 = arith.truncf %243 : vector<32x64xf32> to vector<32x64xbf16>
    %c1_75 = arith.constant 1 : index
    %c0_76 = arith.constant 0 : index
    %c0_77 = arith.constant 0 : index
    %245 = vector.load %arg6[%c1_75, %c0_76, %c0_77] : memref<2x64x192xbf16, #tpu.memory_space<vmem>>, vector<1x64x192xbf16>
    %246 = vector.shape_cast %245 : vector<1x64x192xbf16> to vector<64x192xbf16>
    %cst_78 = arith.constant dense<0.000000e+00> : vector<32x192xf32>
    %247 = tpu.matmul %244, %246, %cst_78 {dimension_numbers = #tpu.dot_dimension_numbers<[1], [0], [0], [1], [0, 0, 1, 1], [], []>} : vector<32x64xbf16>, vector<64x192xbf16>, vector<32x192xf32> -> vector<32x192xf32>
    %248 = vector.extract_strided_slice %247 {offsets = [0, 0], sizes = [32, 64], strides = [1, 1]} : vector<32x192xf32> to vector<32x64xf32>
    %249 = vector.extract_strided_slice %247 {offsets = [0, 64], sizes = [32, 64], strides = [1, 1]} : vector<32x192xf32> to vector<32x64xf32>
    %250 = vector.extract_strided_slice %247 {offsets = [0, 128], sizes = [32, 64], strides = [1, 1]} : vector<32x192xf32> to vector<32x64xf32>
    %cst_79 = arith.constant dense<0.000000e+00> : vector<32x64xf32>
    %251 = tpu.matmul %248, %43, %cst_79 {dimension_numbers = #tpu.dot_dimension_numbers<[1], [0], [0], [1], [0, 0, 1, 1], [], []>} : vector<32x64xf32>, vector<64x64xf32>, vector<32x64xf32> -> vector<32x64xf32>
    %cst_80 = arith.constant dense<0.000000e+00> : vector<32x64xf32>
    %252 = tpu.matmul %249, %43, %cst_80 {dimension_numbers = #tpu.dot_dimension_numbers<[1], [0], [0], [1], [0, 0, 1, 1], [], []>} : vector<32x64xf32>, vector<64x64xf32>, vector<32x64xf32> -> vector<32x64xf32>
    %253 = vector.shape_cast %248 : vector<32x64xf32> to vector<4x8x64xf32>
    %254 = vector.shape_cast %15 : vector<8x64xf32> to vector<1x8x64xf32>
    %255 = vector.broadcast %254 : vector<1x8x64xf32> to vector<4x8x64xf32>
    %256 = arith.mulf %253, %255 : vector<4x8x64xf32>
    %257 = vector.shape_cast %251 : vector<32x64xf32> to vector<4x8x64xf32>
    %258 = vector.shape_cast %16 : vector<8x64xf32> to vector<1x8x64xf32>
    %259 = vector.broadcast %258 : vector<1x8x64xf32> to vector<4x8x64xf32>
    %260 = arith.mulf %257, %259 : vector<4x8x64xf32>
    %261 = arith.addf %256, %260 : vector<4x8x64xf32>
    %262 = vector.shape_cast %249 : vector<32x64xf32> to vector<4x8x64xf32>
    %263 = vector.shape_cast %15 : vector<8x64xf32> to vector<1x8x64xf32>
    %264 = vector.broadcast %263 : vector<1x8x64xf32> to vector<4x8x64xf32>
    %265 = arith.mulf %262, %264 : vector<4x8x64xf32>
    %266 = vector.shape_cast %252 : vector<32x64xf32> to vector<4x8x64xf32>
    %267 = vector.shape_cast %16 : vector<8x64xf32> to vector<1x8x64xf32>
    %268 = vector.broadcast %267 : vector<1x8x64xf32> to vector<4x8x64xf32>
    %269 = arith.mulf %266, %268 : vector<4x8x64xf32>
    %270 = arith.addf %265, %269 : vector<4x8x64xf32>
    %271 = vector.shape_cast %250 : vector<32x64xf32> to vector<4x8x64xf32>
    %cst_81 = arith.constant 0.000000e+00 : f32
    %272 = vector.broadcast %cst_81 : f32 to vector<32x64xf32>
    %c1_82 = arith.constant 1 : index
    %c0_83 = arith.constant 0 : index
    %c0_84 = arith.constant 0 : index
    %273 = vector.load %arg7[%c1_82, %c0_83, %c0_84] : memref<2x64x64xbf16, #tpu.memory_space<vmem>>, vector<1x64x64xbf16>
    %274 = vector.shape_cast %273 : vector<1x64x64xbf16> to vector<64x64xbf16>
    %275 = vector.extract_strided_slice %261 {offsets = [0, 0, 0], sizes = [4, 8, 16], strides = [1, 1, 1]} : vector<4x8x64xf32> to vector<4x8x16xf32>
    %276 = arith.truncf %275 : vector<4x8x16xf32> to vector<4x8x16xbf16>
    %277 = vector.extract_strided_slice %270 {offsets = [0, 0, 0], sizes = [4, 8, 16], strides = [1, 1, 1]} : vector<4x8x64xf32> to vector<4x8x16xf32>
    %278 = arith.truncf %277 : vector<4x8x16xf32> to vector<4x8x16xbf16>
    %279 = vector.extract_strided_slice %271 {offsets = [0, 0, 0], sizes = [4, 8, 16], strides = [1, 1, 1]} : vector<4x8x64xf32> to vector<4x8x16xf32>
    %280 = arith.truncf %279 : vector<4x8x16xf32> to vector<4x8x16xbf16>
    "tpu.trace_start"() <{level = 10 : i32, message = "bqd,bkd->bqk"}> : () -> ()
    %cst_85 = arith.constant dense<0.000000e+00> : vector<4x8x8xf32>
    %281 = tpu.matmul %276, %278, %cst_85 {dimension_numbers = #tpu.dot_dimension_numbers<[2], [2], [1], [1], [0, 0, 0, 1, 1, 1], [0], [0]>} : vector<4x8x16xbf16>, vector<4x8x16xbf16>, vector<4x8x8xf32> -> vector<4x8x8xf32>
    "tpu.trace_stop"() : () -> ()
    %cst_86 = arith.constant 2.500000e-01 : f32
    %282 = vector.broadcast %cst_86 : f32 to vector<4x8x8xf32>
    %283 = arith.mulf %281, %282 : vector<4x8x8xf32>
    %284 = arith.addf %283, %14 : vector<4x8x8xf32>
    %cst_87 = arith.constant dense<0xFF800000> : vector<4x8xf32>
    %285 = vector.multi_reduction <maximumf>, %284, %cst_87 [2] : vector<4x8x8xf32> to vector<4x8xf32>
    %286 = vector.shape_cast %285 : vector<4x8xf32> to vector<4x8x1xf32>
    %287 = vector.broadcast %286 : vector<4x8x1xf32> to vector<4x8x8xf32>
    %288 = arith.subf %284, %287 : vector<4x8x8xf32>
    %289 = math.exp %288 : vector<4x8x8xf32>
    %cst_88 = arith.constant dense<0.000000e+00> : vector<4x8xf32>
    %290 = vector.multi_reduction <add>, %289, %cst_88 [2] : vector<4x8x8xf32> to vector<4x8xf32>
    %291 = vector.shape_cast %290 : vector<4x8xf32> to vector<4x8x1xf32>
    %292 = tpu.reciprocal %291 {approx = true} : vector<4x8x1xf32> -> vector<4x8x1xf32>
    %293 = vector.broadcast %292 : vector<4x8x1xf32> to vector<4x8x8xf32>
    %294 = arith.mulf %289, %293 : vector<4x8x8xf32>
    %295 = arith.truncf %294 : vector<4x8x8xf32> to vector<4x8x8xbf16>
    "tpu.trace_start"() <{level = 10 : i32, message = "bqk,bkd->bqd"}> : () -> ()
    %cst_89 = arith.constant dense<0.000000e+00> : vector<4x8x16xf32>
    %296 = tpu.matmul %295, %280, %cst_89 {dimension_numbers = #tpu.dot_dimension_numbers<[2], [1], [1], [2], [0, 0, 0, 1, 1, 2], [0], [0]>} : vector<4x8x8xbf16>, vector<4x8x16xbf16>, vector<4x8x16xf32> -> vector<4x8x16xf32>
    "tpu.trace_stop"() : () -> ()
    %297 = vector.shape_cast %296 : vector<4x8x16xf32> to vector<32x16xf32>
    %298 = arith.truncf %297 : vector<32x16xf32> to vector<32x16xbf16>
    %299 = vector.extract_strided_slice %274 {offsets = [0, 0], sizes = [16, 64], strides = [1, 1]} : vector<64x64xbf16> to vector<16x64xbf16>
    %cst_90 = arith.constant dense<0.000000e+00> : vector<32x64xf32>
    %300 = tpu.matmul %298, %299, %cst_90 {dimension_numbers = #tpu.dot_dimension_numbers<[1], [0], [0], [1], [0, 0, 1, 1], [], []>} : vector<32x16xbf16>, vector<16x64xbf16>, vector<32x64xf32> -> vector<32x64xf32>
    %301 = arith.addf %272, %300 : vector<32x64xf32>
    %302 = vector.extract_strided_slice %261 {offsets = [0, 0, 16], sizes = [4, 8, 16], strides = [1, 1, 1]} : vector<4x8x64xf32> to vector<4x8x16xf32>
    %303 = arith.truncf %302 : vector<4x8x16xf32> to vector<4x8x16xbf16>
    %304 = vector.extract_strided_slice %270 {offsets = [0, 0, 16], sizes = [4, 8, 16], strides = [1, 1, 1]} : vector<4x8x64xf32> to vector<4x8x16xf32>
    %305 = arith.truncf %304 : vector<4x8x16xf32> to vector<4x8x16xbf16>
    %306 = vector.extract_strided_slice %271 {offsets = [0, 0, 16], sizes = [4, 8, 16], strides = [1, 1, 1]} : vector<4x8x64xf32> to vector<4x8x16xf32>
    %307 = arith.truncf %306 : vector<4x8x16xf32> to vector<4x8x16xbf16>
    "tpu.trace_start"() <{level = 10 : i32, message = "bqd,bkd->bqk"}> : () -> ()
    %cst_91 = arith.constant dense<0.000000e+00> : vector<4x8x8xf32>
    %308 = tpu.matmul %303, %305, %cst_91 {dimension_numbers = #tpu.dot_dimension_numbers<[2], [2], [1], [1], [0, 0, 0, 1, 1, 1], [0], [0]>} : vector<4x8x16xbf16>, vector<4x8x16xbf16>, vector<4x8x8xf32> -> vector<4x8x8xf32>
    "tpu.trace_stop"() : () -> ()
    %cst_92 = arith.constant 2.500000e-01 : f32
    %309 = vector.broadcast %cst_92 : f32 to vector<4x8x8xf32>
    %310 = arith.mulf %308, %309 : vector<4x8x8xf32>
    %311 = arith.addf %310, %14 : vector<4x8x8xf32>
    %cst_93 = arith.constant dense<0xFF800000> : vector<4x8xf32>
    %312 = vector.multi_reduction <maximumf>, %311, %cst_93 [2] : vector<4x8x8xf32> to vector<4x8xf32>
    %313 = vector.shape_cast %312 : vector<4x8xf32> to vector<4x8x1xf32>
    %314 = vector.broadcast %313 : vector<4x8x1xf32> to vector<4x8x8xf32>
    %315 = arith.subf %311, %314 : vector<4x8x8xf32>
    %316 = math.exp %315 : vector<4x8x8xf32>
    %cst_94 = arith.constant dense<0.000000e+00> : vector<4x8xf32>
    %317 = vector.multi_reduction <add>, %316, %cst_94 [2] : vector<4x8x8xf32> to vector<4x8xf32>
    %318 = vector.shape_cast %317 : vector<4x8xf32> to vector<4x8x1xf32>
    %319 = tpu.reciprocal %318 {approx = true} : vector<4x8x1xf32> -> vector<4x8x1xf32>
    %320 = vector.broadcast %319 : vector<4x8x1xf32> to vector<4x8x8xf32>
    %321 = arith.mulf %316, %320 : vector<4x8x8xf32>
    %322 = arith.truncf %321 : vector<4x8x8xf32> to vector<4x8x8xbf16>
    "tpu.trace_start"() <{level = 10 : i32, message = "bqk,bkd->bqd"}> : () -> ()
    %cst_95 = arith.constant dense<0.000000e+00> : vector<4x8x16xf32>
    %323 = tpu.matmul %322, %307, %cst_95 {dimension_numbers = #tpu.dot_dimension_numbers<[2], [1], [1], [2], [0, 0, 0, 1, 1, 2], [0], [0]>} : vector<4x8x8xbf16>, vector<4x8x16xbf16>, vector<4x8x16xf32> -> vector<4x8x16xf32>
    "tpu.trace_stop"() : () -> ()
    %324 = vector.shape_cast %323 : vector<4x8x16xf32> to vector<32x16xf32>
    %325 = arith.truncf %324 : vector<32x16xf32> to vector<32x16xbf16>
    %326 = vector.extract_strided_slice %274 {offsets = [16, 0], sizes = [16, 64], strides = [1, 1]} : vector<64x64xbf16> to vector<16x64xbf16>
    %cst_96 = arith.constant dense<0.000000e+00> : vector<32x64xf32>
    %327 = tpu.matmul %325, %326, %cst_96 {dimension_numbers = #tpu.dot_dimension_numbers<[1], [0], [0], [1], [0, 0, 1, 1], [], []>} : vector<32x16xbf16>, vector<16x64xbf16>, vector<32x64xf32> -> vector<32x64xf32>
    %328 = arith.addf %301, %327 : vector<32x64xf32>
    %329 = vector.extract_strided_slice %261 {offsets = [0, 0, 32], sizes = [4, 8, 16], strides = [1, 1, 1]} : vector<4x8x64xf32> to vector<4x8x16xf32>
    %330 = arith.truncf %329 : vector<4x8x16xf32> to vector<4x8x16xbf16>
    %331 = vector.extract_strided_slice %270 {offsets = [0, 0, 32], sizes = [4, 8, 16], strides = [1, 1, 1]} : vector<4x8x64xf32> to vector<4x8x16xf32>
    %332 = arith.truncf %331 : vector<4x8x16xf32> to vector<4x8x16xbf16>
    %333 = vector.extract_strided_slice %271 {offsets = [0, 0, 32], sizes = [4, 8, 16], strides = [1, 1, 1]} : vector<4x8x64xf32> to vector<4x8x16xf32>
    %334 = arith.truncf %333 : vector<4x8x16xf32> to vector<4x8x16xbf16>
    "tpu.trace_start"() <{level = 10 : i32, message = "bqd,bkd->bqk"}> : () -> ()
    %cst_97 = arith.constant dense<0.000000e+00> : vector<4x8x8xf32>
    %335 = tpu.matmul %330, %332, %cst_97 {dimension_numbers = #tpu.dot_dimension_numbers<[2], [2], [1], [1], [0, 0, 0, 1, 1, 1], [0], [0]>} : vector<4x8x16xbf16>, vector<4x8x16xbf16>, vector<4x8x8xf32> -> vector<4x8x8xf32>
    "tpu.trace_stop"() : () -> ()
    %cst_98 = arith.constant 2.500000e-01 : f32
    %336 = vector.broadcast %cst_98 : f32 to vector<4x8x8xf32>
    %337 = arith.mulf %335, %336 : vector<4x8x8xf32>
    %338 = arith.addf %337, %14 : vector<4x8x8xf32>
    %cst_99 = arith.constant dense<0xFF800000> : vector<4x8xf32>
    %339 = vector.multi_reduction <maximumf>, %338, %cst_99 [2] : vector<4x8x8xf32> to vector<4x8xf32>
    %340 = vector.shape_cast %339 : vector<4x8xf32> to vector<4x8x1xf32>
    %341 = vector.broadcast %340 : vector<4x8x1xf32> to vector<4x8x8xf32>
    %342 = arith.subf %338, %341 : vector<4x8x8xf32>
    %343 = math.exp %342 : vector<4x8x8xf32>
    %cst_100 = arith.constant dense<0.000000e+00> : vector<4x8xf32>
    %344 = vector.multi_reduction <add>, %343, %cst_100 [2] : vector<4x8x8xf32> to vector<4x8xf32>
    %345 = vector.shape_cast %344 : vector<4x8xf32> to vector<4x8x1xf32>
    %346 = tpu.reciprocal %345 {approx = true} : vector<4x8x1xf32> -> vector<4x8x1xf32>
    %347 = vector.broadcast %346 : vector<4x8x1xf32> to vector<4x8x8xf32>
    %348 = arith.mulf %343, %347 : vector<4x8x8xf32>
    %349 = arith.truncf %348 : vector<4x8x8xf32> to vector<4x8x8xbf16>
    "tpu.trace_start"() <{level = 10 : i32, message = "bqk,bkd->bqd"}> : () -> ()
    %cst_101 = arith.constant dense<0.000000e+00> : vector<4x8x16xf32>
    %350 = tpu.matmul %349, %334, %cst_101 {dimension_numbers = #tpu.dot_dimension_numbers<[2], [1], [1], [2], [0, 0, 0, 1, 1, 2], [0], [0]>} : vector<4x8x8xbf16>, vector<4x8x16xbf16>, vector<4x8x16xf32> -> vector<4x8x16xf32>
    "tpu.trace_stop"() : () -> ()
    %351 = vector.shape_cast %350 : vector<4x8x16xf32> to vector<32x16xf32>
    %352 = arith.truncf %351 : vector<32x16xf32> to vector<32x16xbf16>
    %353 = vector.extract_strided_slice %274 {offsets = [32, 0], sizes = [16, 64], strides = [1, 1]} : vector<64x64xbf16> to vector<16x64xbf16>
    %cst_102 = arith.constant dense<0.000000e+00> : vector<32x64xf32>
    %354 = tpu.matmul %352, %353, %cst_102 {dimension_numbers = #tpu.dot_dimension_numbers<[1], [0], [0], [1], [0, 0, 1, 1], [], []>} : vector<32x16xbf16>, vector<16x64xbf16>, vector<32x64xf32> -> vector<32x64xf32>
    %355 = arith.addf %328, %354 : vector<32x64xf32>
    %356 = vector.extract_strided_slice %261 {offsets = [0, 0, 48], sizes = [4, 8, 16], strides = [1, 1, 1]} : vector<4x8x64xf32> to vector<4x8x16xf32>
    %357 = arith.truncf %356 : vector<4x8x16xf32> to vector<4x8x16xbf16>
    %358 = vector.extract_strided_slice %270 {offsets = [0, 0, 48], sizes = [4, 8, 16], strides = [1, 1, 1]} : vector<4x8x64xf32> to vector<4x8x16xf32>
    %359 = arith.truncf %358 : vector<4x8x16xf32> to vector<4x8x16xbf16>
    %360 = vector.extract_strided_slice %271 {offsets = [0, 0, 48], sizes = [4, 8, 16], strides = [1, 1, 1]} : vector<4x8x64xf32> to vector<4x8x16xf32>
    %361 = arith.truncf %360 : vector<4x8x16xf32> to vector<4x8x16xbf16>
    "tpu.trace_start"() <{level = 10 : i32, message = "bqd,bkd->bqk"}> : () -> ()
    %cst_103 = arith.constant dense<0.000000e+00> : vector<4x8x8xf32>
    %362 = tpu.matmul %357, %359, %cst_103 {dimension_numbers = #tpu.dot_dimension_numbers<[2], [2], [1], [1], [0, 0, 0, 1, 1, 1], [0], [0]>} : vector<4x8x16xbf16>, vector<4x8x16xbf16>, vector<4x8x8xf32> -> vector<4x8x8xf32>
    "tpu.trace_stop"() : () -> ()
    %cst_104 = arith.constant 2.500000e-01 : f32
    %363 = vector.broadcast %cst_104 : f32 to vector<4x8x8xf32>
    %364 = arith.mulf %362, %363 : vector<4x8x8xf32>
    %365 = arith.addf %364, %14 : vector<4x8x8xf32>
    %cst_105 = arith.constant dense<0xFF800000> : vector<4x8xf32>
    %366 = vector.multi_reduction <maximumf>, %365, %cst_105 [2] : vector<4x8x8xf32> to vector<4x8xf32>
    %367 = vector.shape_cast %366 : vector<4x8xf32> to vector<4x8x1xf32>
    %368 = vector.broadcast %367 : vector<4x8x1xf32> to vector<4x8x8xf32>
    %369 = arith.subf %365, %368 : vector<4x8x8xf32>
    %370 = math.exp %369 : vector<4x8x8xf32>
    %cst_106 = arith.constant dense<0.000000e+00> : vector<4x8xf32>
    %371 = vector.multi_reduction <add>, %370, %cst_106 [2] : vector<4x8x8xf32> to vector<4x8xf32>
    %372 = vector.shape_cast %371 : vector<4x8xf32> to vector<4x8x1xf32>
    %373 = tpu.reciprocal %372 {approx = true} : vector<4x8x1xf32> -> vector<4x8x1xf32>
    %374 = vector.broadcast %373 : vector<4x8x1xf32> to vector<4x8x8xf32>
    %375 = arith.mulf %370, %374 : vector<4x8x8xf32>
    %376 = arith.truncf %375 : vector<4x8x8xf32> to vector<4x8x8xbf16>
    "tpu.trace_start"() <{level = 10 : i32, message = "bqk,bkd->bqd"}> : () -> ()
    %cst_107 = arith.constant dense<0.000000e+00> : vector<4x8x16xf32>
    %377 = tpu.matmul %376, %361, %cst_107 {dimension_numbers = #tpu.dot_dimension_numbers<[2], [1], [1], [2], [0, 0, 0, 1, 1, 2], [0], [0]>} : vector<4x8x8xbf16>, vector<4x8x16xbf16>, vector<4x8x16xf32> -> vector<4x8x16xf32>
    "tpu.trace_stop"() : () -> ()
    %378 = vector.shape_cast %377 : vector<4x8x16xf32> to vector<32x16xf32>
    %379 = arith.truncf %378 : vector<32x16xf32> to vector<32x16xbf16>
    %380 = vector.extract_strided_slice %274 {offsets = [48, 0], sizes = [16, 64], strides = [1, 1]} : vector<64x64xbf16> to vector<16x64xbf16>
    %cst_108 = arith.constant dense<0.000000e+00> : vector<32x64xf32>
    %381 = tpu.matmul %379, %380, %cst_108 {dimension_numbers = #tpu.dot_dimension_numbers<[1], [0], [0], [1], [0, 0, 1, 1], [], []>} : vector<32x16xbf16>, vector<16x64xbf16>, vector<32x64xf32> -> vector<32x64xf32>
    %382 = arith.addf %355, %381 : vector<32x64xf32>
    %383 = arith.addf %229, %382 : vector<32x64xf32>
    %c1_109 = arith.constant 1 : index
    %c0_110 = arith.constant 0 : index
    %c0_111 = arith.constant 0 : index
    %384 = vector.load %arg8[%c1_109, %c0_110, %c0_111] : memref<2x1x64xf32, #tpu.memory_space<vmem>>, vector<1x1x64xf32>
    %385 = vector.shape_cast %384 : vector<1x1x64xf32> to vector<1x64xf32>
    %386 = arith.mulf %383, %383 : vector<32x64xf32>
    %cst_112 = arith.constant dense<0.000000e+00> : vector<32xf32>
    %387 = vector.multi_reduction <add>, %386, %cst_112 [1] : vector<32x64xf32> to vector<32xf32>
    %388 = vector.shape_cast %387 : vector<32xf32> to vector<32x1xf32>
    %cst_113 = arith.constant 6.400000e+01 : f32
    %389 = vector.broadcast %cst_113 : f32 to vector<32x1xf32>
    %390 = arith.divf %388, %389 : vector<32x1xf32>
    %cst_114 = arith.constant 9.99999997E-7 : f32
    %391 = vector.broadcast %cst_114 : f32 to vector<32x1xf32>
    %392 = arith.addf %390, %391 : vector<32x1xf32>
    %393 = math.rsqrt %392 : vector<32x1xf32>
    %394 = vector.broadcast %393 : vector<32x1xf32> to vector<32x64xf32>
    %395 = arith.mulf %383, %394 : vector<32x64xf32>
    %396 = vector.broadcast %385 : vector<1x64xf32> to vector<32x64xf32>
    %397 = arith.mulf %395, %396 : vector<32x64xf32>
    %398 = arith.truncf %397 : vector<32x64xf32> to vector<32x64xbf16>
    %c1_115 = arith.constant 1 : index
    %c0_116 = arith.constant 0 : index
    %c0_117 = arith.constant 0 : index
    %399 = vector.load %arg9[%c1_115, %c0_116, %c0_117] : memref<2x64x256xbf16, #tpu.memory_space<vmem>>, vector<1x64x256xbf16>
    %400 = vector.shape_cast %399 : vector<1x64x256xbf16> to vector<64x256xbf16>
    %cst_118 = arith.constant dense<0.000000e+00> : vector<32x256xf32>
    %401 = tpu.matmul %398, %400, %cst_118 {dimension_numbers = #tpu.dot_dimension_numbers<[1], [0], [0], [1], [0, 0, 1, 1], [], []>} : vector<32x64xbf16>, vector<64x256xbf16>, vector<32x256xf32> -> vector<32x256xf32>
    %402 = vector.extract_strided_slice %401 {offsets = [0, 0], sizes = [32, 128], strides = [1, 1]} : vector<32x256xf32> to vector<32x128xf32>
    %403 = vector.extract_strided_slice %401 {offsets = [0, 128], sizes = [32, 128], strides = [1, 1]} : vector<32x256xf32> to vector<32x128xf32>
    %404 = arith.negf %402 : vector<32x128xf32>
    %405 = math.exp %404 : vector<32x128xf32>
    %cst_119 = arith.constant 1.000000e+00 : f32
    %406 = vector.broadcast %cst_119 : f32 to vector<32x128xf32>
    %407 = arith.addf %406, %405 : vector<32x128xf32>
    %408 = arith.divf %406, %407 : vector<32x128xf32>
    %409 = arith.mulf %402, %408 : vector<32x128xf32>
    %410 = arith.mulf %409, %403 : vector<32x128xf32>
    %411 = arith.truncf %410 : vector<32x128xf32> to vector<32x128xbf16>
    %c1_120 = arith.constant 1 : index
    %c0_121 = arith.constant 0 : index
    %c0_122 = arith.constant 0 : index
    %412 = vector.load %arg10[%c1_120, %c0_121, %c0_122] : memref<2x128x64xbf16, #tpu.memory_space<vmem>>, vector<1x128x64xbf16>
    %413 = vector.shape_cast %412 : vector<1x128x64xbf16> to vector<128x64xbf16>
    %cst_123 = arith.constant dense<0.000000e+00> : vector<32x64xf32>
    %414 = tpu.matmul %411, %413, %cst_123 {dimension_numbers = #tpu.dot_dimension_numbers<[1], [0], [0], [1], [0, 0, 1, 1], [], []>} : vector<32x128xbf16>, vector<128x64xbf16>, vector<32x64xf32> -> vector<32x64xf32>
    %415 = arith.addf %383, %414 : vector<32x64xf32>
    %c0_124 = arith.constant 0 : index
    %c0_125 = arith.constant 0 : index
    %416 = vector.load %arg11[%c0_124, %c0_125] : memref<1x64xf32, #tpu.memory_space<vmem>>, vector<1x64xf32>
    %417 = arith.mulf %415, %415 : vector<32x64xf32>
    %cst_126 = arith.constant dense<0.000000e+00> : vector<32xf32>
    %418 = vector.multi_reduction <add>, %417, %cst_126 [1] : vector<32x64xf32> to vector<32xf32>
    %419 = vector.shape_cast %418 : vector<32xf32> to vector<32x1xf32>
    %cst_127 = arith.constant 6.400000e+01 : f32
    %420 = vector.broadcast %cst_127 : f32 to vector<32x1xf32>
    %421 = arith.divf %419, %420 : vector<32x1xf32>
    %cst_128 = arith.constant 9.99999997E-7 : f32
    %422 = vector.broadcast %cst_128 : f32 to vector<32x1xf32>
    %423 = arith.addf %421, %422 : vector<32x1xf32>
    %424 = math.rsqrt %423 : vector<32x1xf32>
    %425 = vector.broadcast %424 : vector<32x1xf32> to vector<32x64xf32>
    %426 = arith.mulf %415, %425 : vector<32x64xf32>
    %427 = vector.broadcast %416 : vector<1x64xf32> to vector<32x64xf32>
    %428 = arith.mulf %426, %427 : vector<32x64xf32>
    %429 = arith.truncf %428 : vector<32x64xf32> to vector<32x64xbf16>
    %c0_129 = arith.constant 0 : index
    %c0_130 = arith.constant 0 : index
    %430 = vector.load %arg12[%c0_129, %c0_130] : memref<64x128xbf16, #tpu.memory_space<vmem>>, vector<64x128xbf16>
    %cst_131 = arith.constant dense<0.000000e+00> : vector<32x128xf32>
    %431 = tpu.matmul %429, %430, %cst_131 {dimension_numbers = #tpu.dot_dimension_numbers<[1], [0], [0], [1], [0, 0, 1, 1], [], []>} : vector<32x64xbf16>, vector<64x128xbf16>, vector<32x128xf32> -> vector<32x128xf32>
    %432 = vector.shape_cast %431 : vector<32x128xf32> to vector<4x8x128xf32>
    %c0_132 = arith.constant 0 : index
    %c0_133 = arith.constant 0 : index
    %c0_134 = arith.constant 0 : index
    %433 = vector.load %arg13[%c0_132, %c0_133, %c0_134] : memref<4x8x128xf32, #tpu.memory_space<vmem>>, vector<4x8x128xf32>
    tpu.vector_store %arg13[%c0_132, %c0_133, %c0_134], %432 {strides = array<i32>} : memref<4x8x128xf32, #tpu.memory_space<vmem>>, vector<4x8x128xf32>,
    return
  }
  func.func @transform_0(%arg0: i32) -> (i32, i32, i32) {
    %c0_i32 = arith.constant 0 : i32
    %c0_i32_0 = arith.constant 0 : i32
    %c0_i32_1 = arith.constant 0 : i32
    return %arg0, %c0_i32, %c0_i32_0 : i32, i32, i32
  }
  func.func @transform_1(%arg0: i32) -> (i32, i32, i32) {
    %c0_i32 = arith.constant 0 : i32
    %c0_i32_0 = arith.constant 0 : i32
    %c0_i32_1 = arith.constant 0 : i32
    return %arg0, %c0_i32, %c0_i32_0 : i32, i32, i32
  }
  func.func @transform_2(%arg0: i32) -> (i32, i32) {
    %c0_i32 = arith.constant 0 : i32
    %c0_i32_0 = arith.constant 0 : i32
    %c0_i32_1 = arith.constant 0 : i32
    return %c0_i32, %c0_i32_0 : i32, i32
  }
  func.func @transform_3(%arg0: i32) -> (i32, i32) {
    %c0_i32 = arith.constant 0 : i32
    %c0_i32_0 = arith.constant 0 : i32
    %c0_i32_1 = arith.constant 0 : i32
    return %c0_i32, %c0_i32_0 : i32, i32
  }
  func.func @transform_4(%arg0: i32) -> (i32, i32, i32) {
    %c0_i32 = arith.constant 0 : i32
    %c0_i32_0 = arith.constant 0 : i32
    %c0_i32_1 = arith.constant 0 : i32
    %c0_i32_2 = arith.constant 0 : i32
    return %c0_i32, %c0_i32_0, %c0_i32_1 : i32, i32, i32
  }
  func.func @transform_5(%arg0: i32) -> (i32, i32, i32) {
    %c0_i32 = arith.constant 0 : i32
    %c0_i32_0 = arith.constant 0 : i32
    %c0_i32_1 = arith.constant 0 : i32
    %c0_i32_2 = arith.constant 0 : i32
    return %c0_i32, %c0_i32_0, %c0_i32_1 : i32, i32, i32
  }
  func.func @transform_6(%arg0: i32) -> (i32, i32, i32) {
    %c0_i32 = arith.constant 0 : i32
    %c0_i32_0 = arith.constant 0 : i32
    %c0_i32_1 = arith.constant 0 : i32
    %c0_i32_2 = arith.constant 0 : i32
    return %c0_i32, %c0_i32_0, %c0_i32_1 : i32, i32, i32
  }
  func.func @transform_7(%arg0: i32) -> (i32, i32, i32) {
    %c0_i32 = arith.constant 0 : i32
    %c0_i32_0 = arith.constant 0 : i32
    %c0_i32_1 = arith.constant 0 : i32
    %c0_i32_2 = arith.constant 0 : i32
    return %c0_i32, %c0_i32_0, %c0_i32_1 : i32, i32, i32
  }
  func.func @transform_8(%arg0: i32) -> (i32, i32, i32) {
    %c0_i32 = arith.constant 0 : i32
    %c0_i32_0 = arith.constant 0 : i32
    %c0_i32_1 = arith.constant 0 : i32
    %c0_i32_2 = arith.constant 0 : i32
    return %c0_i32, %c0_i32_0, %c0_i32_1 : i32, i32, i32
  }
  func.func @transform_9(%arg0: i32) -> (i32, i32, i32) {
    %c0_i32 = arith.constant 0 : i32
    %c0_i32_0 = arith.constant 0 : i32
    %c0_i32_1 = arith.constant 0 : i32
    %c0_i32_2 = arith.constant 0 : i32
    return %c0_i32, %c0_i32_0, %c0_i32_1 : i32, i32, i32
  }
  func.func @transform_10(%arg0: i32) -> (i32, i32) {
    %c0_i32 = arith.constant 0 : i32
    %c0_i32_0 = arith.constant 0 : i32
    %c0_i32_1 = arith.constant 0 : i32
    return %c0_i32, %c0_i32_0 : i32, i32
  }
  func.func @transform_11(%arg0: i32) -> (i32, i32) {
    %c0_i32 = arith.constant 0 : i32
    %c0_i32_0 = arith.constant 0 : i32
    %c0_i32_1 = arith.constant 0 : i32
    return %c0_i32, %c0_i32_0 : i32, i32
  }
  func.func @transform_12(%arg0: i32) -> (i32, i32, i32) {
    %c0_i32 = arith.constant 0 : i32
    %c0_i32_0 = arith.constant 0 : i32
    %c0_i32_1 = arith.constant 0 : i32
    return %arg0, %c0_i32, %c0_i32_0 : i32, i32, i32
  }
}

</mosaic_0001>

<bundles_post_ra>
// kernel: forward.1
= control target key start
LH: loop header
LB: loop body
LE: loop exit
PB: predicated region body
PF: predicated region fallthrough
CT: control target
= control target key end

     0   :  { %s7932_s21 = smov 0   ;;  %s9233_s0 = inlined_call_operand.vmem [shape: f32[8,8,64], index: 0, kind: input, shape index: {}]   ;;  %s9234_s1 = inlined_call_operand.vmem [shape: f32[8,1,8], index: 1, kind: input, shape index: {}]   ;;  %s9235_s2 = inlined_call_operand.vmem [shape: f32[8,64], index: 2, kind: input, shape index: {}]   ;;  %s9236_s3 = inlined_call_operand.vmem [shape: f32[8,64], index: 3, kind: input, shape index: {}]   ;;  %s9237_s4 = inlined_call_operand.vmem [shape: f32[2,1,64], index: 4, kind: input, shape index: {}]   ;;  %s9238_s5 = inlined_call_operand.vmem [shape: bf16[2,64,192], index: 5, kind: input, shape index: {}]   ;;  %s9239_s6 = inlined_call_operand.vmem [shape: bf16[2,64,64], index: 6, kind: input, shape index: {}]   ;;  %s9240_s7 = inlined_call_operand.vmem [shape: f32[2,1,64], index: 7, kind: input, shape index: {}]   ;;  %s9241_s8 = inlined_call_operand.vmem [shape: bf16[2,64,256], index: 8, kind: input, shape index: {}]   ;;  %s9242_s9 = inlined_call_operand.vmem [shape: bf16[2,128,64], index: 9, kind: input, shape index: {}]   ;;  %s9243_s10 = inlined_call_operand.vmem [shape: f32[1,64], index: 10, kind: input, shape index: {}]   ;;  %s9244_s11 = inlined_call_operand.vmem [shape: bf16[64,128], index: 11, kind: input, shape index: {}]   ;;  %s9245_s12 = inlined_call_operand.vmem [shape: f32[8,8,128], index: 12, kind: output, shape index: {}]  }
   0x1 LB: > { %s6382_s22 = sadd.s32 4294967295, %s7853_s21   ;;  %p6386_p0 = scmp.ge.s32.totalorder %s7853_s21, 1  ;;  %s7853_s21 = sphi %s7932_s21, %s22_s21  }
   0x2   : > { %p373_p1 = scmp.lt.s32.totalorder %s7853_s21, 3 }
   0x4   : > { %p374_p2 = pnand %p6386_p0, %p373_p1 }
   0x5   : > { %s6387_s23 = sshll.u32 (!%p374_p2), %s6382_s22, 2  ;;  %v441_v0 = vlaneseq (!%p374_p2)  ;;  %v7855_v3 = vmov (!%p374_p2), -1e+09   ;;  %vm641_vm1 = vcmask (!%p374_p2), 523264   ;;  %v7565_v25 = vld [vmem:[%s9238_s5 + $0x4] ss:$8 sps:$4 sm:$0xff] (!%p374_p2)  }
   0x6   : > { %377 = sbr.rel (%p374_p2) target bundleno = 9791 (0x263f), region = 68  ;;  %p420_p3 = scmp.lt.s32.totalorder (!%p374_p2), %s6387_s23, 7  ;;  %v7567_v26 = vld [vmem:[%s9238_s5] ss:$8 sps:$4 sm:$0xff] (!%p374_p2)   ;;  %737 = vmatprep.subr.bf16.mxu0 (!%p374_p2), %v7565_v25  ;;  %v7568_v27 = vld [vmem:[%s9238_s5 + $0x14] ss:$8 sps:$4 sm:$0xff] (!%p374_p2)  }
   0x7   : > { %v442_v1 = vshrl.u32 (!%p374_p2), %v441_v0, 7  ;;  %v7940_v2 = vand.u32 (!%p374_p2), 127, %v441_v0  ;;  %738 = vmatpush1.bf16.msra.mxu0 (!%p374_p2), %v7567_v26  ;;  %v7570_v28 = vld [vmem:[%s9238_s5 + $0x10] ss:$8 sps:$4 sm:$0xff] (!%p374_p2)   ;;  %v7571_v29 = vld [vmem:[%s9238_s5 + $0x24] ss:$8 sps:$4 sm:$0xff] (!%p374_p2)  }
   0x8   : > { %739 = vmatprep.subr.bf16.mxu0 (!%p374_p2), %v7568_v27  ;;  %v7856_v30 = vmov (!%p374_p2), 0   ;;  %v7573_v31 = vld [vmem:[%s9238_s5 + $0x20] ss:$8 sps:$4 sm:$0xff] (!%p374_p2)   ;;  %v7574_v32 = vld [vmem:[%s9238_s5 + $0x34] ss:$8 sps:$4 sm:$0xff] (!%p374_p2)   ;;  %s7859_s17 = smov (!%p374_p2), 64  }
   0x9   : > { %vm445_vm0 = vcmp.le.s32.totalorder (!%p374_p2), %v7940_v2, %v442_v1  ;;  %769 = vmatprep.mubr.bf16.mxu0 (!%p374_p2), %v7856_v30  ;;  %v7576_v33 = vld [vmem:[%s9238_s5 + $0x30] ss:$8 sps:$4 sm:$0xff] (!%p374_p2)   ;;  %v485_v34 = vadd.s32 (!%p374_p2), 8, %v442_v1  ;;  %v486_v35 = vadd.s32 (!%p374_p2), 16, %v442_v1  ;;  %v487_v36 = vadd.s32 (!%p374_p2), 24, %v442_v1  ;;  %v483_v25 = vld [vmem:[%s9235_s2] sm:$0xff] (!%p374_p2) }
   0xa   : > { %v446_v4 = vsel (!%p374_p2), %vm445_vm0, 0.0, %v7855_v3  ;;  %v488_v37 = vadd.s32 (!%p374_p2), 32, %v442_v1  ;;  %v489_v38 = vadd.s32 (!%p374_p2), 40, %v442_v1  ;;  %v490_v39 = vadd.s32 (!%p374_p2), 48, %v442_v1  ;;  %s7861_s25 = smov (!%p374_p2), 48   ;;  %s7862_s26 = smov (!%p374_p2), 112  }
   0xb   : > { %740 = vmatpush1.bf16.msra.mxu0 (!%p374_p2), %v7570_v28  ;;  %v491_v40 = vadd.s32 (!%p374_p2), 56, %v442_v1  ;;  %v605_v41 = vadd.s32 (!%p374_p2), 4294967288, %v485_v34  ;;  %vm612_vm2 = vcmp.eq.s32.totalorder (!%p374_p2), %v7940_v2, %v485_v34  ;;  %v606_v42 = vadd.s32 (!%p374_p2), 8, %v486_v35  ;;  %s7864_s28 = smov (!%p374_p2), 96   ;;  %s7865_s16 = smov (!%p374_p2), 16  }
   0xc   : > { %741 = vmatprep.subr.bf16.mxu0 (!%p374_p2), %v7571_v29  ;;  %v607_v43 = vadd.s32 (!%p374_p2), 4294967288, %v487_v36  ;;  %v608_v44 = vadd.s32 (!%p374_p2), 8, %v488_v37  ;;  %v609_v45 = vadd.s32 (!%p374_p2), 4294967288, %v489_v38  ;;  %v7857_v47 = vmov (!%p374_p2), 1.0|1.0   ;;  %v484_v37 = vld [vmem:[%s9236_s3] sm:$0xff] (!%p374_p2) }
   0xd   : > { %s9260_s23 = smov (!%p420_p3, %s6387_s23), 7  ;;  %vm613_vm3 = vcmp.eq.s32.totalorder %v7940_v2, %v605_v41  ;;  %vm614_vm4 = vcmp.eq.s32.totalorder %v7940_v2, %v606_v42  ;;  %v610_v49 = vadd.s32 8, %v490_v39  ;;  %v611_v50 = vadd.s32 4294967288, %v491_v40  ;;  %s9247_s18 = smov 80  }
   0xe   : > { %s9246_s24 = sshll.u32 %s9260_s23, 3  ;;  %s428_s27 = scalar_lea.vmem %s9234_s1, %s9260_s23  ;;  %vm615_vm5 = vcmp.eq.s32.totalorder %v7940_v2, %v607_v43  ;;  %vm8018_vm6 = vmpackc.low %vm613_vm3, %vm612_vm2  ;;  %vm616_vm8 = vcmp.eq.s32.totalorder %v7940_v2, %v608_v44  ;;  %vm617_vm9 = vcmp.eq.s32.totalorder %v7940_v2, %v609_v45  ;;  %vm1309_vm14 = vcmask 1043456  }
   0xf   : > { %s7955_s30 = scalar_lea.vmem %s9233_s0, %s9246_s24  ;;  %v6392_v5 = vld [vmem:[%s428_s27] ss:$0 sm:$0xff]  ;;  %v6393_v6 = vld [vmem:[%s428_s27 + $0x1] ss:$0 sm:$0xff]  ;;  %v6394_v7 = vld [vmem:[%s428_s27 + $0x2] ss:$0 sm:$0xff]  ;;  %742 = vmatpush1.bf16.msra.mxu0 %v7573_v31  ;;  %7458 = vmatprep.subr.msk.bf16.mxu1 %vm8018_vm6, %v7857_v47  ;;  %vm618_vm11 = vcmp.eq.s32.totalorder %v7940_v2, %v610_v49  ;;  %vm619_vm12 = vcmp.eq.s32.totalorder %v7940_v2, %v611_v50 }
  0x10   : > { %v7958_v8 = vld [vmem:[%s7955_s30] sm:$0xff]  ;;  %v7960_v10 = vadd.f32 %v6392_v5, %v446_v4  ;;  %v7962_v11 = vadd.f32 %v6393_v6, %v446_v4  ;;  %v7964_v12 = vadd.f32 %v6394_v7, %v446_v4  ;;  %v7967_v13 = vld [vmem:[%s7955_s30 + $0x8] sm:$0xff]  ;;  %v7976_v17 = vld [vmem:[%s7955_s30 + $0x10] sm:$0xff]  ;;  %743 = vmatprep.subr.bf16.mxu0 %v7574_v32  ;;  %7460 = vmatpush3.bf16.msk.msra.mxu1 %vm8018_vm6, %v7857_v47  ;;  %vm7860_vm15 = vmmov 0   ;;  %s9257_s24 = smov 80  }
  0x11   : > { %v6395_v9 = vld [vmem:[%s428_s27 + $0x3] ss:$0 sm:$0xff]  ;;  %v637_v15 = vmul.f32 %v7958_v8, %v7958_v8  ;;  %v638_v16 = vmul.f32 %v7967_v13, %v7967_v13  ;;  %v7979_v18 = vld [vmem:[%s7955_s30 + $0x18] sm:$0xff]  ;;  %v639_v19 = vmul.f32 %v7976_v17, %v7976_v17  ;;  %vm8025_vm7 = vmpackc.low %vm615_vm5, %vm614_vm4  ;;  %vm1055_vm0 = vcmask 130048   ;;  %s7863_s27 = smov 32  }
  0x12   : > { %v7969_v14 = vadd.f32 %v6395_v9, %v446_v4  ;;  %v640_v21 = vmul.f32 %v7979_v18, %v7979_v18  ;;  %7462 = vmatprep.subr.msk.bf16.mxu1 %vm8025_vm7, %v7857_v47  ;;  %vm8040_vm10 = vmpackc.low %vm617_vm9, %vm616_vm8  ;;  %v6404_v5 = vld [vmem:[%s9237_s4] ss:$0 sm:$0xff]  ;;  %vm1257_vm2 = vcmask 64512  }
  0x13   : > { %v642_v20 = vsel %vm641_vm1, %v637_v15, 0.0  ;;  %v648_v22 = vsel %vm641_vm1, %v639_v19, 0.0  ;;  %v645_v23 = vsel %vm641_vm1, %v638_v16, 0.0  ;;  %744 = vmatpush1.bf16.msra.mxu0 %v7576_v33  ;;  %vm8052_vm13 = vmpackc.low %vm619_vm12, %vm618_vm11 }
  0x14   : > { %643 = vadd.xlane.f32.xlu0 %v642_v20  ;;  %649 = vadd.xlane.f32.xlu1 %v648_v22  ;;  %v651_v24 = vsel %vm641_vm1, %v640_v21, 0.0 }
  0x15   : > { %7474 = vmatprep.subr.msk.bf16.mxu0 %vm8018_vm6, %v7857_v47  ;;  %7464 = vmatpush3.bf16.msk.msra.mxu1 %vm8025_vm7, %v7857_v47 }
  0x16   : > { %7466 = vmatprep.subr.msk.bf16.mxu1 %vm8040_vm10, %v7857_v47 }
  0x18   : > { %646 = vadd.xlane.f32.xlu0 %v645_v23  ;;  %652 = vadd.xlane.f32.xlu1 %v651_v24 }
  0x19   : > { %7468 = vmatpush3.bf16.msk.msra.mxu1 %vm8040_vm10, %v7857_v47 }
  0x1a   : > { %7470 = vmatprep.subr.msk.bf16.mxu1 %vm8052_vm13, %v7857_v47 }
  0x1d   : > { %7472 = vmatpush3.bf16.msk.msra.mxu1 %vm8052_vm13, %v7857_v47 }
  0xa1   : > { %v644_v53 = vpop.xlane.xlu0 %643  ;;  %v650_v55 = vpop.xlane.xlu1 %649 }
  0xa2   : > { %v655_v54 = vmul.f32 0.015625, %v644_v53  ;;  %v657_v56 = vmul.f32 0.015625, %v650_v55 }
  0xa4   : > { %v659_v57 = vadd.f32 1e-06, %v655_v54  ;;  %v661_v59 = vadd.f32 1e-06, %v657_v56 }
  0xa5   : > { %v647_v58 = vpop.xlane.xlu0 %646  ;;  %v653_v61 = vpop.xlane.xlu1 %652 }
  0xa6   : > { %7641 = vrsqrt.f32 %v659_v57  ;;  %v656_v60 = vmul.f32 0.015625, %v647_v58  ;;  %v658_v62 = vmul.f32 0.015625, %v653_v61 }
  0xa7   : > { %7643 = vrsqrt.f32 %v661_v59 }
  0xa8   : > { %v660_v63 = vadd.f32 1e-06, %v656_v60  ;;  %v662_v0 = vadd.f32 1e-06, %v658_v62 }
  0xaa   : > { %7645 = vrsqrt.f32 %v660_v63 }
  0xab   : > { %7647 = vrsqrt.f32 %v662_v0 }
  0xb0   : > { %v7642_v1 = vpop.eup %7641 }
  0xb1   : > { %v7644_v2 = vpop.eup %7643  ;;  %v667_v3 = vmul.f32 %v7642_v1, %v7958_v8 }
  0xb2   : > { %v669_v16 = vmul.f32 %v7644_v2, %v7976_v17 }
  0xb3   : > { %v677_v9 = vmul.f32 %v6404_v5, %v667_v3 }
  0xb4   : > { %v7646_v4 = vpop.eup %7645  ;;  %v679_v21 = vmul.f32 %v6404_v5, %v669_v16 }
  0xb5   : > { %v7648_v6 = vpop.eup %7647  ;;  %v668_v7 = vmul.f32 %v7646_v4, %v7967_v13  ;;  %v7858_v13 = vmov 0.0  }
  0xb6   : > { %v670_v19 = vmul.f32 %v7648_v6, %v7979_v18  ;;  %6929 = vmatprep.subr.bf16.mxu1 %v7858_v13 }
  0xb7   : > { %v678_v15 = vmul.f32 %v6404_v5, %v668_v7 }
  0xb8   : > { %v680_v22 = vmul.f32 %v6404_v5, %v670_v19 }
  0xb9   : > { %v681_v20 = vpack.c.bf16 %v678_v15, %v677_v9 }
  0xba   : > { %v682_v8 = vpack.c.bf16 %v680_v22, %v679_v21 }
  0xbb   : > { %6413 = vmatmul.mubr.msk.bf16.vlgmr.msra.gmra.mrb[0].mxu0 %vm641_vm1, %v681_v20 }
  0xbc   : > { %779 = vmatprep.mubr.bf16.mxu0 %v7856_v30  ;;  %7476 = vmatpush3.bf16.msk.msra.mxu0 %vm8018_vm6, %v7857_v47 }
  0xbd   : > { %7478 = vmatprep.subr.msk.bf16.mxu0 %vm8025_vm7, %v7857_v47 }
  0xc0   : > { %7480 = vmatpush3.bf16.msk.msra.mxu0 %vm8025_vm7, %v7857_v47 }
  0xc1   : > { %7482 = vmatprep.subr.msk.bf16.mxu0 %vm8040_vm10, %v7857_v47 }
  0xc3   : > { %6414 = vmatmul.mubr.msk.bf16.gmra.mrb[4].mxu0 %vm641_vm1, %v682_v8 }
  0xc4   : > { %7484 = vmatpush3.bf16.msk.msra.mxu0 %vm8040_vm10, %v7857_v47 }
  0xc5   : > { %7486 = vmatprep.subr.msk.bf16.mxu0 %vm8052_vm13, %v7857_v47 }
  0xc8   : > { %7488 = vmatpush3.bf16.msk.msra.mxu0 %vm8052_vm13, %v7857_v47 }
  0xc9   : > { %6953 = vmatprep.subr.bf16.mxu0 %v7858_v13 }
 0x18e   : > { %v8098_v17 = vpop.f32.mrb[0].mxu0 }
 0x18f   : > { %887 = vrot.lane.b32.xlu0 %v8098_v17, %s7859_s17  ;;  %v773_v18 = vpop.f32.mrb[1].mxu0  ;;  %6901 = vmatprep.mubr.msk.f32.mxu1 %vm641_vm1, %v8098_v17  ;;  %v988_v42 = vmul.f32 %v8098_v17, %v483_v25 }
 0x190   : > { %v775_v23 = vpop.f32.mrb[2].mxu0  ;;  %v8124_v31 = vpack.c.bf16 %v773_v18, %v773_v18 }
 0x191   : > { %889 = vrot.lane.b32.xlu1 %v775_v23, %s7859_s17  ;;  %v8105_v24 = vpop.f32.mrb[3].mxu0  ;;  %6902 = vmatmul.mubr.msk.f32.vlgmr.msra.gmra.mrb[0].mxu1 %vm641_vm1, %v775_v23  ;;  %v989_v39 = vmul.f32 %v775_v23, %v483_v25 }
 0x192   : > { %v1311_v34 = vsel %vm1309_vm14, %v8124_v31, 0 }
 0x193   : > { %1001 = vrot.lane.b32.xlu0 %v483_v25, %s7859_s17 }
 0x196   : > { %v8112_v26 = vpop.f32.mrb[4].mxu0 }
 0x197   : > { %891 = vrot.lane.b32.xlu1 %v8112_v26, %s7859_s17  ;;  %v8116_v27 = vpop.f32.mrb[5].mxu0  ;;  %6904 = vmatprep.mubr.msk.f32.mxu1 %vm641_vm1, %v8112_v26  ;;  %v990_v55 = vmul.f32 %v8112_v26, %v483_v25 }
 0x198   : > { %v785_v28 = vpop.f32.mrb[6].mxu0 }
 0x199   : > { %6905 = vmatmul.mubr.msk.f32.gmra.mrb[2].mxu1 %vm641_vm1, %v785_v28  ;;  %v8121_v29 = vpop.f32.mrb[7].mxu0  ;;  %v991_v50 = vmul.f32 %v785_v28, %v483_v25 }
 0x19a   : > { %6931 = vmatprep.mubr.msk.bf16.mxu1 %vm7860_vm15, %v7858_v13 }
 0x19b   : > { %893 = vrot.lane.b32.xlu1 %v785_v28, %s7859_s17 }
 0x201   : > { %v888_v32 = vpop.permute.xlu0 %887 }
 0x202   : > { %6923 = vmatprep.mubr.msk.f32.mxu0 %vm641_vm1, %v888_v32 }
 0x203   : > { %v890_v33 = vpop.permute.xlu1 %889 }
 0x204   : > { %6924 = vmatmul.mubr.msk.f32.vlgmr.msra.gmra.mrb[8].mxu0 %vm641_vm1, %v890_v33 }
 0x205   : > { %6954 = vmatpush3.bf16.msra.mxu0 %v1311_v34  ;;  %v8148_v3 = vpop.permute.xlu0 %1001 }
 0x206   : > { %6965 = vmatprep.subr.bf16.mxu0 %v7858_v13  ;;  %v1005_v4 = vmul.f32 %v8148_v3, %v775_v23  ;;  %v1004_v6 = vmul.f32 %v8148_v3, %v8098_v17  ;;  %v1007_v20 = vmul.f32 %v8148_v3, %v785_v28  ;;  %v1006_v22 = vmul.f32 %v8148_v3, %v8112_v26 }
 0x209   : > { %v892_v35 = vpop.permute.xlu1 %891 }
 0x20a   : > { %6926 = vmatprep.mubr.msk.f32.mxu0 %vm641_vm1, %v892_v35 }
 0x20d   : > { %v894_v36 = vpop.permute.xlu1 %893 }
 0x20e   : > { %6927 = vmatmul.mubr.msk.f32.gmra.mrb[10].mxu0 %vm641_vm1, %v894_v36 }
 0x20f   : > { %6955 = vmatprep.mubr.msk.bf16.mxu0 %vm7860_vm15, %v7858_v13 }
 0x264   : > { %v6903_v38 = vpop.f32.mrb[0].mxu1 }
 0x265   : > { %v993_v40 = vmul.f32 %v6903_v38, %v484_v37  ;;  %v868_v41 = vpop.f32.mrb[1].mxu1 }
 0x266   : > { %v992_v43 = vmul.f32 %v868_v41, %v484_v37  ;;  %v8200_v41 = vpack.c.bf16 %v8105_v24, %v8105_v24 }
 0x267   : > { %v997_v44 = vadd.f32 %v993_v40, %v989_v39 }
 0x268   : > { %v996_v45 = vadd.f32 %v992_v43, %v988_v42  ;;  %v1357_v43 = vsel %vm1309_vm14, %v8200_v41, 0 }
 0x269   : > { %v8182_v36 = vpack.c.bf16 %v997_v44, %v997_v44  ;;  %v8214_v44 = vmax.f32 %v7960_v10, -1e+09 }
 0x26a   : > { %v8174_v33 = vpack.c.bf16 %v996_v45, %v996_v45 }
 0x26c   : > { %v6906_v49 = vpop.f32.mrb[2].mxu1 }
 0x26d   : > { %v995_v53 = vmul.f32 %v6906_v49, %v484_v37  ;;  %v878_v54 = vpop.f32.mrb[3].mxu1 }
 0x26e   : > { %v994_v56 = vmul.f32 %v878_v54, %v484_v37 }
 0x26f   : > { %v8138_v57 = vadd.f32 %v995_v53, %v991_v50 }
 0x270   : > { %v998_v58 = vadd.f32 %v994_v56, %v990_v55  ;;  %v8219_v56 = vmax.f32 %v7962_v11, -1e+09 }
 0x271   : > { %v8204_v42 = vpack.c.bf16 %v8138_v57, %v8138_v57 }
 0x272   : > { %v8190_v39 = vpack.c.bf16 %v998_v58, %v998_v58 }
 0x2d7   : > { %v6925_v59 = vpop.f32.mrb[8].mxu0 }
 0x2d8   : > { %v1009_v60 = vmul.f32 %v6925_v59, %v484_v37  ;;  %v969_v61 = vpop.f32.mrb[9].mxu0 }
 0x2d9   : > { %v1008_v62 = vmul.f32 %v969_v61, %v484_v37 }
 0x2da   : > { %1018 = vrot.lane.b32.xlu0 %v1009_v60, %s7859_s17 }
 0x2db   : > { %1016 = vrot.lane.b32.xlu1 %v1008_v62, %s7859_s17 }
 0x2e1   : > { %v6928_v63 = vpop.f32.mrb[10].mxu0 }
 0x2e2   : > { %v1011_v0 = vmul.f32 %v6928_v63, %v484_v37  ;;  %v979_v1 = vpop.f32.mrb[11].mxu0  ;;  %v8224_v63 = vmax.f32 %v7964_v12, -1e+09 }
 0x2e3   : > { %v1010_v2 = vmul.f32 %v979_v1, %v484_v37 }
 0x2e4   : > { %1022 = vrot.lane.b32.xlu0 %v1011_v0, %s7859_s17 }
 0x2e5   : > { %1020 = vrot.lane.b32.xlu1 %v1010_v2, %s7859_s17 }
 0x34c   : > { %v1019_v5 = vpop.permute.xlu0 %1018 }
 0x34d   : > { %v1029_v7 = vadd.f32 %v1019_v5, %v1005_v4  ;;  %v1017_v9 = vpop.permute.xlu1 %1016 }
 0x34e   : > { %v1028_v15 = vadd.f32 %v1017_v9, %v1004_v6 }
 0x34f   : > { %v8153_v16 = vpack.c.bf16 %v1029_v7, %v1029_v7  ;;  %v8229_v7 = vmax.f32 %v7969_v14, -1e+09 }
 0x350   : > { %v8155_v19 = vpack.c.bf16 %v1028_v15, %v1028_v15 }
 0x351   : > { %1103 = vrot.lane.b32.xlu0 %v8153_v16, %s7859_s17 }
 0x352   : > { %1053 = vrot.lane.b32.xlu1 %v8155_v19, %s7859_s17 }
 0x356   : > { %v1023_v21 = vpop.permute.xlu0 %1022 }
 0x357   : > { %v1031_v8 = vadd.f32 %v1023_v21, %v1007_v20  ;;  %v1021_v17 = vpop.permute.xlu1 %1020 }
 0x358   : > { %v1030_v18 = vadd.f32 %v1021_v17, %v1006_v22 }
 0x359   : > { %v8164_v23 = vpack.c.bf16 %v1031_v8, %v1031_v8 }
 0x35a   : > { %v8166_v25 = vpack.c.bf16 %v1030_v18, %v1030_v18 }
 0x35b   : > { %1201 = vrot.lane.b32.xlu0 %v8164_v23, %s7859_s17 }
 0x35c   : > { %1152 = vrot.lane.b32.xlu1 %v8166_v25, %s7859_s17 }
 0x3c3   : > { %v1104_v26 = vpop.permute.xlu0 %1103 }
 0x3c4   : > { %v1054_v32 = vpop.permute.xlu1 %1053  ;;  %v1109_v34 = vsel %vm1055_vm0, %v1104_v26, 0 }
 0x3c5   : > { %v1060_v28 = vsel %vm1055_vm0, %v1054_v32, 0 }
 0x3c6   : > { %6930 = vmatpush3.bf16.xpose.msra.mxu1 %v1060_v28 }
 0x3c7   : > { %6935 = vmatprep.subr.bf16.mxu1 %v7858_v13 }
 0x3cd   : > { %6932 = vmatmul.mubr.msk.bf16.vlgmr.msra.gmra.mrb[4].mxu1 %vm1055_vm0, %v8174_v33  ;;  %v1202_v38 = vpop.permute.xlu0 %1201 }
 0x3ce   : > { %6936 = vmatpush3.bf16.xpose.msra.mxu1 %v1109_v34  ;;  %6937 = vmatprep.mubr.msk.bf16.mxu1 %vm7860_vm15, %v7858_v13  ;;  %v1153_v35 = vpop.permute.xlu1 %1152  ;;  %v1207_v40 = vsel %vm1055_vm0, %v1202_v38, 0 }
 0x3cf   : > { %6941 = vmatprep.subr.bf16.mxu1 %v7858_v13  ;;  %v1158_v37 = vsel %vm1055_vm0, %v1153_v35, 0 }
 0x3d5   : > { %6938 = vmatmul.mubr.msk.bf16.vlgmr.msra.gmra.mrb[8].mxu1 %vm1055_vm0, %v8182_v36 }
 0x3d6   : > { %6942 = vmatpush3.bf16.xpose.msra.mxu1 %v1158_v37  ;;  %6943 = vmatprep.mubr.msk.bf16.mxu1 %vm7860_vm15, %v7858_v13 }
 0x3d7   : > { %6947 = vmatprep.subr.bf16.mxu1 %v7858_v13 }
 0x3dd   : > { %6944 = vmatmul.mubr.msk.bf16.vlgmr.msra.gmra.mrb[12].mxu1 %vm1055_vm0, %v8190_v39 }
 0x3de   : > { %6948 = vmatpush3.bf16.xpose.msra.mxu1 %v1207_v40  ;;  %6949 = vmatprep.mubr.msk.bf16.mxu1 %vm7860_vm15, %v7858_v13 }
 0x3df   : > { %6959 = vmatprep.subr.bf16.mxu1 %v7858_v13 }
 0x3e5   : > { %6950 = vmatmul.mubr.msk.bf16.vlgmr.msra.gmra.mrb[16].mxu1 %vm1055_vm0, %v8204_v42 }
 0x3e6   : > { %6960 = vmatpush3.bf16.msra.mxu1 %v1357_v43  ;;  %6961 = vmatprep.mubr.msk.bf16.mxu1 %vm7860_vm15, %v7858_v13 }
 0x3e7   : > { %6971 = vmatprep.subr.bf16.mxu1 %v7858_v13 }
 0x4a0   : > { %v1096_v24 = vpop.f32.mrb[4].mxu1 }
 0x4a1   : > { %v1249_v45 = vmul.f32 0.25, %v1096_v24  ;;  %v6933_v49 = vpop.f32.mrb[5].mxu1 }
 0x4a2   : > { %v1099_v50 = vpop.f32.mrb[6].mxu1 }
 0x4a3   : > { %v6934_v53 = vpop.f32.mrb[7].mxu1  ;;  %v1253_v54 = vadd.f32 %v1249_v45, %v8214_v44 }
 0x4a5   : > { %v1258_v55 = vsel %vm1257_vm2, %v1253_v54, -inf }
 0x4a6   : > { %1259 = vmax.xlane.f32.xlu1 %v1258_v55 }
 0x4a8   : > { %v1145_v57 = vpop.f32.mrb[8].mxu1 }
 0x4a9   : > { %v1250_v58 = vmul.f32 0.25, %v1145_v57  ;;  %v6939_v59 = vpop.f32.mrb[9].mxu1 }
 0x4aa   : > { %v1148_v60 = vpop.f32.mrb[10].mxu1 }
 0x4ab   : > { %v6940_v10 = vpop.f32.mrb[11].mxu1  ;;  %v1254_v61 = vadd.f32 %v1250_v58, %v8219_v56 }
 0x4ac   : > { %v8255_v10 = vpack.c.bf16 %v8116_v27, %v8116_v27 }
 0x4ad   : > { %v1261_v62 = vsel %vm1257_vm2, %v1254_v61, -inf }
 0x4ae   : > { %1262 = vmax.xlane.f32.xlu0 %v1261_v62 }
 0x4b0   : > { %v1194_v0 = vpop.f32.mrb[12].mxu1 }
 0x4b1   : > { %v1251_v1 = vmul.f32 0.25, %v1194_v0  ;;  %v6945_v2 = vpop.f32.mrb[13].mxu1  ;;  %v1403_v0 = vsel %vm1309_vm14, %v8255_v10, 0 }
 0x4b2   : > { %v1197_v4 = vpop.f32.mrb[14].mxu1  ;;  %v8265_v2 = vpack.c.bf16 %v8121_v29, %v8121_v29 }
 0x4b3   : > { %v6946_v5 = vpop.f32.mrb[15].mxu1  ;;  %v1255_v11 = vadd.f32 %v1251_v1, %v8224_v63 }
 0x4b4   : > { %v1449_v5 = vsel %vm1309_vm14, %v8265_v2, 0 }
 0x4b5   : > { %v1264_v6 = vsel %vm1257_vm2, %v1255_v11, -inf }
 0x4b6   : > { %1265 = vmax.xlane.f32.xlu0 %v1264_v6 }
 0x4b8   : > { %v1243_v9 = vpop.f32.mrb[16].mxu1 }
 0x4b9   : > { %v1252_v15 = vmul.f32 0.25, %v1243_v9  ;;  %v6951_v20 = vpop.f32.mrb[17].mxu1 }
 0x4ba   : > { %v1246_v21 = vpop.f32.mrb[18].mxu1 }
 0x4bb   : > { %v6952_v22 = vpop.f32.mrb[19].mxu1  ;;  %v1256_v12 = vadd.f32 %v1252_v15, %v8229_v7 }
 0x4bd   : > { %v1267_v8 = vsel %vm1257_vm2, %v1256_v12, -inf }
 0x4be   : > { %1268 = vmax.xlane.f32.xlu0 %v1267_v8 }
 0x533   : > { %v1260_v17 = vpop.xlane.xlu1 %1259 }
 0x534   : > { %v1270_v18 = vsub.f32 %v1253_v54, %v1260_v17 }
 0x536   : > { %v1274_v32 = vmul.f32 1.442695, %v1270_v18 }
 0x538   : > { %7649 = vpow2.f32 %v1274_v32 }
 0x53b   : > { %v1263_v28 = vpop.xlane.xlu0 %1262 }
 0x53c   : > { %v1271_v26 = vsub.f32 %v1254_v61, %v1263_v28 }
 0x53e   : > { %v1276_v34 = vmul.f32 1.442695, %v1271_v26 }
 0x540   : > { %7651 = vpow2.f32 %v1276_v34 }
 0x542   : > { %v7650_v14 = vpop.eup %7649 }
 0x543   : > { %v1282_v35 = vsel %vm1257_vm2, %v7650_v14, 0.0  ;;  %v1266_v37 = vpop.xlane.xlu0 %1265 }
 0x544   : > { %1283 = vadd.xlane.f32.xlu1 %v1282_v35  ;;  %v1272_v53 = vsub.f32 %v1255_v11, %v1266_v37 }
 0x546   : > { %v1278_v54 = vmul.f32 1.442695, %v1272_v53 }
 0x54a   : > { %v7652_v38 = vpop.eup %7651 }
 0x54b   : > { %v1269_v40 = vpop.xlane.xlu0 %1268  ;;  %v1285_v43 = vsel %vm1257_vm2, %v7652_v38, 0.0 }
 0x54c   : > { %v1273_v24 = vsub.f32 %v1256_v12, %v1269_v40  ;;  %1286 = vadd.xlane.f32.xlu0 %v1285_v43 }
 0x54e   : > { %v1280_v45 = vmul.f32 1.442695, %v1273_v24 }
 0x550   : > { %7653 = vpow2.f32 %v1280_v45 }
 0x551   : > { %7655 = vpow2.f32 %v1278_v54 }
 0x555   : > { %1496 = vrot.lane.b32.xlu1 %v8155_v19, %s7861_s25 }
 0x55a   : > { %v7654_v49 = vpop.eup %7653 }
 0x55b   : > { %v1291_v50 = vsel %vm1257_vm2, %v7654_v49, 0.0  ;;  %v7656_v55 = vpop.eup %7655 }
 0x55c   : > { %1292 = vadd.xlane.f32.xlu0 %v1291_v50  ;;  %v1288_v57 = vsel %vm1257_vm2, %v7656_v55, 0.0 }
 0x572   : > { %1547 = vrot.lane.b32.xlu0 %v8153_v16, %s7861_s25 }
 0x576   : > { %1649 = vrot.lane.b32.xlu0 %v8164_v23, %s7861_s25 }
 0x579   : > { %1289 = vadd.xlane.f32.xlu1 %v1288_v57 }
 0x57a   : > { %1647 = vrot.lane.b32.xlu0 %v8204_v42, %s7862_s26 }
 0x58a   : > { %1494 = vrot.lane.b32.xlu1 %v8174_v33, %s7862_s26 }
 0x58e   : > { %1545 = vrot.lane.b32.xlu1 %v8182_v36, %s7862_s26 }
 0x592   : > { %1598 = vrot.lane.b32.xlu1 %v8166_v25, %s7861_s25 }
 0x596   : > { %1596 = vrot.lane.b32.xlu1 %v8190_v39, %s7862_s26 }
 0x5d1   : > { %v1284_v58 = vpop.xlane.xlu1 %1283 }
 0x5d2   : > { %7657 = vrcp.f32 %v1284_v58 }
 0x5d5   : > { %v1497_v21 = vpop.permute.xlu1 %1496 }
 0x5d6   : > { %v1502_v34 = vsel %vm1055_vm0, %v1497_v21, 0 }
 0x5d9   : > { %v1287_v59 = vpop.xlane.xlu0 %1286 }
 0x5da   : > { %7659 = vrcp.f32 %v1287_v59 }
 0x5dc   : > { %v7658_v60 = vpop.eup %7657 }
 0x5dd   : > { %v1298_v61 = vmul.f32 %v7658_v60, %v7650_v14 }
 0x5df   : > { %v1302_v62 = vpack.c.bf16 %v1298_v61, %v1298_v61 }
 0x5e1   : > { %6956 = vmatmul.mubr.msk.bf16.vlgmr.msra.gmra.mrb[12].mxu0 %vm1257_vm2, %v1302_v62 }
 0x5e2   : > { %6966 = vmatpush3.bf16.msra.mxu0 %v1403_v0  ;;  %6967 = vmatprep.mubr.msk.bf16.mxu0 %vm7860_vm15, %v7858_v13 }
 0x5e3   : > { %6977 = vmatprep.subr.bf16.mxu0 %v7858_v13 }
 0x5e4   : > { %v7660_v1 = vpop.eup %7659 }
 0x5e5   : > { %v1299_v27 = vmul.f32 %v7660_v1, %v7652_v38 }
 0x5e7   : > { %v1303_v4 = vpack.c.bf16 %v1299_v27, %v1299_v27 }
 0x5e9   : > { %6962 = vmatmul.mubr.msk.bf16.vlgmr.msra.gmra.mrb[20].mxu1 %vm1257_vm2, %v1303_v4  ;;  %v1293_v11 = vpop.xlane.xlu0 %1292 }
 0x5ea   : > { %6972 = vmatpush3.bf16.msra.mxu1 %v1449_v5  ;;  %7661 = vrcp.f32 %v1293_v11  ;;  %6973 = vmatprep.mubr.msk.bf16.mxu1 %vm7860_vm15, %v7858_v13 }
 0x5eb   : > { %6983 = vmatprep.subr.bf16.mxu1 %v7858_v13 }
 0x5ed   : > { %v1548_v15 = vpop.permute.xlu0 %1547 }
 0x5ee   : > { %v1553_v20 = vsel %vm1055_vm0, %v1548_v15, 0 }
 0x5f1   : > { %v1650_v8 = vpop.permute.xlu0 %1649 }
 0x5f2   : > { %v1655_v18 = vsel %vm1055_vm0, %v1650_v8, 0 }
 0x5f4   : > { %v7662_v6 = vpop.eup %7661 }
 0x5f5   : > { %v1301_v9 = vmul.f32 %v7662_v6, %v7654_v49  ;;  %v1648_v14 = vpop.permute.xlu0 %1647 }
 0x5f7   : > { %v1305_v29 = vpack.c.bf16 %v1301_v9, %v1301_v9 }
 0x5f9   : > { %6974 = vmatmul.mubr.msk.bf16.vlgmr.msra.gmra.mrb[24].mxu1 %vm1257_vm2, %v1305_v29 }
 0x5fa   : > { %6984 = vmatpush3.bf16.xpose.msra.mxu1 %v1553_v20  ;;  %6985 = vmatprep.mubr.msk.bf16.mxu1 %vm7860_vm15, %v7858_v13 }
 0x5fb   : > { %6995 = vmatprep.subr.bf16.mxu1 %v7858_v13 }
 0x606   : > { %v1290_v22 = vpop.xlane.xlu1 %1289 }
 0x607   : > { %7663 = vrcp.f32 %v1290_v22 }
 0x60a   : > { %v1495_v12 = vpop.permute.xlu1 %1494 }
 0x60e   : > { %v1546_v17 = vpop.permute.xlu1 %1545 }
 0x60f   : > { %6986 = vmatmul.mubr.msk.bf16.vlgmr.msra.gmra.mrb[28].mxu1 %vm1055_vm0, %v1546_v17 }
 0x610   : > { %6996 = vmatpush3.bf16.xpose.msra.mxu1 %v1655_v18  ;;  %6997 = vmatprep.mubr.msk.bf16.mxu1 %vm7860_vm15, %v7858_v13 }
 0x611   : > { %v7664_v32 = vpop.eup %7663  ;;  %7007 = vmatprep.subr.bf16.mxu1 %v7858_v13 }
 0x612   : > { %v1300_v28 = vmul.f32 %v7664_v32, %v7656_v55  ;;  %v1599_v35 = vpop.permute.xlu1 %1598 }
 0x613   : > { %v1604_v37 = vsel %vm1055_vm0, %v1599_v35, 0 }
 0x614   : > { %v1304_v26 = vpack.c.bf16 %v1300_v28, %v1300_v28 }
 0x616   : > { %6968 = vmatmul.mubr.msk.bf16.vlgmr.msra.gmra.mrb[16].mxu0 %vm1257_vm2, %v1304_v26  ;;  %v1597_v38 = vpop.permute.xlu1 %1596 }
 0x617   : > { %6978 = vmatpush3.bf16.xpose.msra.mxu0 %v1502_v34  ;;  %6998 = vmatmul.mubr.msk.bf16.vlgmr.msra.gmra.mrb[32].mxu1 %vm1055_vm0, %v1648_v14 }
 0x618   : > { %6979 = vmatprep.mubr.msk.bf16.mxu0 %vm7860_vm15, %v7858_v13  ;;  %6989 = vmatprep.subr.bf16.mxu0 %v7858_v13 }
 0x619   : > { %7009 = vmatprep.mubr.msk.bf16.mxu1 %vm7860_vm15, %v7858_v13 }
 0x61e   : > { %6980 = vmatmul.mubr.msk.bf16.vlgmr.msra.gmra.mrb[20].mxu0 %vm1055_vm0, %v1495_v12 }
 0x61f   : > { %6990 = vmatpush3.bf16.xpose.msra.mxu0 %v1604_v37  ;;  %6991 = vmatprep.mubr.msk.bf16.mxu0 %vm7860_vm15, %v7858_v13 }
 0x620   : > { %7001 = vmatprep.subr.bf16.mxu0 %v7858_v13 }
 0x626   : > { %6992 = vmatmul.mubr.msk.bf16.vlgmr.msra.gmra.mrb[24].mxu0 %vm1055_vm0, %v1597_v38 }
 0x627   : > { %7003 = vmatprep.mubr.msk.bf16.mxu0 %vm7860_vm15, %v7858_v13 }
 0x6b4   : > { %v8299_v40 = vpop.f32.mrb[12].mxu0 }
 0x6b5   : > { %v6957_v43 = vpop.f32.mrb[13].mxu0 }
 0x6b6   : > { %v1350_v24 = vpop.f32.mrb[14].mxu0 }
 0x6b7   : > { %v6958_v45 = vpop.f32.mrb[15].mxu0 }
 0x6bc   : > { %v8301_v49 = vpop.f32.mrb[20].mxu1 }
 0x6bd   : > { %v1491_v50 = vpack.c.bf16 %v8301_v49, %v8299_v40  ;;  %v6963_v53 = vpop.f32.mrb[21].mxu1 }
 0x6be   : > { %v1396_v54 = vpop.f32.mrb[22].mxu1 }
 0x6bf   : > { %v6964_v55 = vpop.f32.mrb[23].mxu1 }
 0x6cc   : > { %v8305_v57 = vpop.f32.mrb[24].mxu1 }
 0x6cd   : > { %v6975_v58 = vpop.f32.mrb[25].mxu1 }
 0x6ce   : > { %v1488_v59 = vpop.f32.mrb[26].mxu1 }
 0x6cf   : > { %v6976_v60 = vpop.f32.mrb[27].mxu1 }
 0x6e2   : > { %v1589_v61 = vpop.f32.mrb[28].mxu1 }
 0x6e3   : > { %v1698_v62 = vmul.f32 0.25, %v1589_v61  ;;  %v6987_v0 = vpop.f32.mrb[29].mxu1 }
 0x6e4   : > { %v1592_v1 = vpop.f32.mrb[30].mxu1 }
 0x6e5   : > { %v6988_v27 = vpop.f32.mrb[31].mxu1  ;;  %v1702_v4 = vadd.f32 %v1698_v62, %v8219_v56 }
 0x6e7   : > { %v1708_v5 = vsel %vm1257_vm2, %v1702_v4, -inf }
 0x6e8   : > { %1709 = vmax.xlane.f32.xlu0 %v1708_v5 }
 0x6e9   : > { %v8309_v11 = vpop.f32.mrb[16].mxu0 }
 0x6ea   : > { %v1492_v6 = vpack.c.bf16 %v8305_v57, %v8309_v11  ;;  %v6969_v9 = vpop.f32.mrb[17].mxu0  ;;  %v1691_v15 = vpop.f32.mrb[32].mxu1 }
 0x6eb   : > { %v1442_v29 = vpop.f32.mrb[18].mxu0  ;;  %v6999_v20 = vpop.f32.mrb[33].mxu1  ;;  %v1700_v35 = vmul.f32 0.25, %v1691_v15 }
 0x6ec   : > { %v6970_v21 = vpop.f32.mrb[19].mxu0  ;;  %v1694_v22 = vpop.f32.mrb[34].mxu1 }
 0x6ed   : > { %v7000_v12 = vpop.f32.mrb[35].mxu1  ;;  %v1704_v54 = vadd.f32 %v1700_v35, %v8229_v7 }
 0x6ef   : > { %v1714_v55 = vsel %vm1257_vm2, %v1704_v54, -inf }
 0x6f1   : > { %v1538_v8 = vpop.f32.mrb[20].mxu0 }
 0x6f2   : > { %v1697_v17 = vmul.f32 0.25, %v1538_v8  ;;  %v6981_v18 = vpop.f32.mrb[21].mxu0 }
 0x6f3   : > { %v1541_v32 = vpop.f32.mrb[22].mxu0 }
 0x6f4   : > { %v6982_v28 = vpop.f32.mrb[23].mxu0  ;;  %v1701_v26 = vadd.f32 %v1697_v17, %v8214_v44 }
 0x6f6   : > { %v1705_v34 = vsel %vm1257_vm2, %v1701_v26, -inf }
 0x6f7   : > { %1706 = vmax.xlane.f32.xlu1 %v1705_v34 }
 0x6f9   : > { %v1640_v14 = vpop.f32.mrb[24].mxu0 }
 0x6fa   : > { %v1699_v37 = vmul.f32 0.25, %v1640_v14  ;;  %v6993_v38 = vpop.f32.mrb[25].mxu0 }
 0x6fb   : > { %v1643_v43 = vpop.f32.mrb[26].mxu0 }
 0x6fc   : > { %v6994_v24 = vpop.f32.mrb[27].mxu0  ;;  %v1703_v45 = vadd.f32 %v1699_v37, %v8224_v63 }
 0x6fe   : > { %v1711_v53 = vsel %vm1257_vm2, %v1703_v45, -inf }
 0x6ff   : > { %1712 = vmax.xlane.f32.xlu0 %v1711_v53 }
 0x703   : > { %1715 = vmax.xlane.f32.xlu0 %v1714_v55 }
 0x708   : > { %1754 = vrot.lane.b32.xlu1 %v8124_v31, %s7862_s26 }
 0x775   : > { %v1710_v58 = vpop.xlane.xlu0 %1709 }
 0x776   : > { %v1718_v59 = vsub.f32 %v1702_v4, %v1710_v58 }
 0x778   : > { %v1723_v60 = vmul.f32 1.442695, %v1718_v59 }
 0x77a   : > { %7665 = vpow2.f32 %v1723_v60 }
 0x784   : > { %v7666_v61 = vpop.eup %7665  ;;  %v1707_v62 = vpop.xlane.xlu1 %1706 }
 0x785   : > { %v1717_v0 = vsub.f32 %v1701_v26, %v1707_v62  ;;  %v1732_v1 = vsel %vm1257_vm2, %v7666_v61, 0.0 }
 0x786   : > { %1733 = vadd.xlane.f32.xlu0 %v1732_v1 }
 0x787   : > { %v1721_v27 = vmul.f32 1.442695, %v1717_v0 }
 0x788   : > { %v1755_v5 = vpop.permute.xlu1 %1754 }
 0x789   : > { %7667 = vpow2.f32 %v1721_v27  ;;  %v1760_v9 = vsel %vm1309_vm14, %v1755_v5, 0 }
 0x78a   : > { %7002 = vmatpush3.bf16.msra.mxu0 %v1760_v9 }
 0x78b   : > { %7013 = vmatprep.subr.bf16.mxu0 %v7858_v13 }
 0x78c   : > { %v1713_v15 = vpop.xlane.xlu0 %1712 }
 0x78d   : > { %v1719_v29 = vsub.f32 %v1703_v45, %v1713_v15 }
 0x78f   : > { %v1725_v20 = vmul.f32 1.442695, %v1719_v29 }
 0x790   : > { %v1716_v4 = vpop.xlane.xlu0 %1715 }
 0x791   : > { %7669 = vpow2.f32 %v1725_v20  ;;  %v1720_v21 = vsub.f32 %v1704_v54, %v1716_v4 }
 0x793   : > { %v7668_v22 = vpop.eup %7667  ;;  %v1727_v12 = vmul.f32 1.442695, %v1720_v21 }
 0x794   : > { %v1729_v8 = vsel %vm1257_vm2, %v7668_v22, 0.0 }
 0x795   : > { %7671 = vpow2.f32 %v1727_v12  ;;  %1730 = vadd.xlane.f32.xlu1 %v1729_v8 }
 0x79b   : > { %v7670_v17 = vpop.eup %7669 }
 0x79c   : > { %v1735_v18 = vsel %vm1257_vm2, %v7670_v17, 0.0 }
 0x79d   : > { %1736 = vadd.xlane.f32.xlu1 %v1735_v18  ;;  %v7577_v18 = vld [vmem:[%s9239_s6 + $0x8] sm:$0xff]  }
 0x79f   : > { %v7672_v32 = vpop.eup %7671 }
 0x7a0   : > { %v1738_v28 = vsel %vm1257_vm2, %v7672_v32, 0.0 }
 0x7a1   : > { %1739 = vadd.xlane.f32.xlu0 %v1738_v28 }
 0x7ae   : > { %1852 = vrot.lane.b32.xlu1 %v8255_v10, %s7862_s26 }
 0x7b2   : > { %1901 = vrot.lane.b32.xlu1 %v8265_v2, %s7862_s26 }
 0x7b6   : > { %2075 = vrot.lane.b32.xlu1 %v8155_v19, %s7863_s27 }
 0x7b7   : > { %1803 = vrot.lane.b32.xlu0 %v8200_v41, %s7862_s26 }
 0x7ba   : > { %2125 = vrot.lane.b32.xlu1 %v8153_v16, %s7863_s27 }
 0x7bb   : > { %2073 = vrot.lane.b32.xlu0 %v8174_v33, %s7864_s28 }
 0x7be   : > { %2175 = vrot.lane.b32.xlu1 %v8166_v25, %s7863_s27 }
 0x7bf   : > { %2123 = vrot.lane.b32.xlu0 %v8182_v36, %s7864_s28 }
 0x7c2   : > { %2173 = vrot.lane.b32.xlu1 %v8190_v39, %s7864_s28 }
 0x7c3   : > { %2225 = vrot.lane.b32.xlu0 %v8164_v23, %s7863_s27 }
 0x7c7   : > { %2223 = vrot.lane.b32.xlu0 %v8204_v42, %s7864_s28 }
 0x813   : > { %v1734_v26 = vpop.xlane.xlu0 %1733 }
 0x822   : > { %v1731_v34 = vpop.xlane.xlu1 %1730 }
 0x823   : > { %7673 = vrcp.f32 %v1731_v34 }
 0x824   : > { %7675 = vrcp.f32 %v1734_v26 }
 0x82a   : > { %v1737_v14 = vpop.xlane.xlu1 %1736 }
 0x82b   : > { %7677 = vrcp.f32 %v1737_v14 }
 0x82d   : > { %v7674_v35 = vpop.eup %7673 }
 0x82e   : > { %v7676_v37 = vpop.eup %7675  ;;  %v1740_v38 = vpop.xlane.xlu0 %1739  ;;  %v1745_v24 = vmul.f32 %v7674_v35, %v7668_v22 }
 0x82f   : > { %v1853_v43 = vpop.permute.xlu1 %1852  ;;  %7679 = vrcp.f32 %v1740_v38  ;;  %v1746_v53 = vmul.f32 %v7676_v37, %v7666_v61 }
 0x830   : > { %v1749_v45 = vpack.c.bf16 %v1745_v24, %v1745_v24  ;;  %v1858_v54 = vsel %vm1309_vm14, %v1853_v43, 0 }
 0x831   : > { %v1750_v62 = vpack.c.bf16 %v1746_v53, %v1746_v53 }
 0x832   : > { %v1804_v55 = vpop.permute.xlu0 %1803  ;;  %7004 = vmatmul.mubr.msk.bf16.vlgmr.msra.gmra.mrb[28].mxu0 %vm1257_vm2, %v1749_v45 }
 0x833   : > { %v1809_v58 = vsel %vm1309_vm14, %v1804_v55, 0  ;;  %7014 = vmatpush3.bf16.msra.mxu0 %v1858_v54  ;;  %7015 = vmatprep.mubr.msk.bf16.mxu0 %vm7860_vm15, %v7858_v13  ;;  %v1902_v59 = vpop.permute.xlu1 %1901 }
 0x834   : > { %7008 = vmatpush3.bf16.msra.mxu1 %v1809_v58  ;;  %v1907_v61 = vsel %vm1309_vm14, %v1902_v59, 0  ;;  %7025 = vmatprep.subr.bf16.mxu0 %v7577_v18 }
 0x835   : > { %v7678_v60 = vpop.eup %7677  ;;  %7019 = vmatprep.subr.bf16.mxu1 %v7858_v13 }
 0x836   : > { %v1747_v0 = vmul.f32 %v7678_v60, %v7670_v17  ;;  %v2074_v20 = vpop.permute.xlu0 %2073 }
 0x837   : > { %7010 = vmatmul.mubr.msk.bf16.vlgmr.msra.gmra.mrb[36].mxu1 %vm1257_vm2, %v1750_v62  ;;  %v2076_v15 = vpop.permute.xlu1 %2075 }
 0x838   : > { %7020 = vmatpush3.bf16.msra.mxu1 %v1907_v61  ;;  %v1751_v1 = vpack.c.bf16 %v1747_v0, %v1747_v0  ;;  %7021 = vmatprep.mubr.msk.bf16.mxu1 %vm7860_vm15, %v7858_v13  ;;  %v2081_v29 = vsel %vm1055_vm0, %v2076_v15, 0 }
 0x839   : > { %v7680_v27 = vpop.eup %7679  ;;  %7037 = vmatprep.subr.bf16.mxu1 %v7858_v13 }
 0x83a   : > { %7016 = vmatmul.mubr.msk.bf16.vlgmr.msra.gmra.mrb[32].mxu0 %vm1257_vm2, %v1751_v1  ;;  %v1748_v5 = vmul.f32 %v7680_v27, %v7672_v32  ;;  %v2124_v21 = vpop.permute.xlu0 %2123  ;;  %v7578_v32 = vld [vmem:[%s9239_s6] sm:$0xff]  }
 0x83b   : > { %v2126_v4 = vpop.permute.xlu1 %2125  ;;  %7026 = vmatpush3.bf16.msra.mxu0 %v7577_v18 }
 0x83c   : > { %v1752_v9 = vpack.c.bf16 %v1748_v5, %v1748_v5  ;;  %v2131_v22 = vsel %vm1055_vm0, %v2126_v4, 0  ;;  %7031 = vmatprep.subr.bf16.mxu0 %v7578_v32 }
 0x83e   : > { %v2226_v12 = vpop.permute.xlu0 %2225 }
 0x83f   : > { %7022 = vmatmul.mubr.msk.bf16.vlgmr.msra.gmra.mrb[40].mxu1 %vm1257_vm2, %v1752_v9  ;;  %v2231_v8 = vsel %vm1055_vm0, %v2226_v12, 0  ;;  %v2176_v9 = vpop.permute.xlu1 %2175 }
 0x840   : > { %7039 = vmatprep.mubr.msk.bf16.mxu1 %vm7860_vm15, %v7858_v13  ;;  %v2181_v4 = vsel %vm1055_vm0, %v2176_v9, 0 }
 0x841   : > { %7038 = vmatpush3.bf16.xpose.msra.mxu1 %v2081_v29 }
 0x842   : > { %7043 = vmatprep.subr.bf16.mxu1 %v7858_v13  ;;  %v2224_v17 = vpop.permute.xlu0 %2223 }
 0x848   : > { %7040 = vmatmul.mubr.msk.bf16.vlgmr.msra.gmra.mrb[44].mxu1 %vm1055_vm0, %v2074_v20 }
 0x849   : > { %7044 = vmatpush3.bf16.xpose.msra.mxu1 %v2131_v22  ;;  %7045 = vmatprep.mubr.msk.bf16.mxu1 %vm7860_vm15, %v7858_v13 }
 0x84a   : > { %7055 = vmatprep.subr.bf16.mxu1 %v7858_v13 }
 0x850   : > { %7046 = vmatmul.mubr.msk.bf16.vlgmr.msra.gmra.mrb[48].mxu1 %vm1055_vm0, %v2124_v21 }
 0x851   : > { %7056 = vmatpush3.bf16.xpose.msra.mxu1 %v2231_v8  ;;  %7057 = vmatprep.mubr.msk.bf16.mxu1 %vm7860_vm15, %v7858_v13  ;;  %v2174_v8 = vpop.permute.xlu1 %2173 }
 0x852   : > { %7067 = vmatprep.subr.bf16.mxu1 %v7858_v13 }
 0x858   : > { %7058 = vmatmul.mubr.msk.bf16.vlgmr.msra.gmra.mrb[52].mxu1 %vm1055_vm0, %v2224_v17 }
 0x859   : > { %7069 = vmatprep.mubr.msk.bf16.mxu1 %vm7860_vm15, %v7858_v13 }
 0x905   : > { %v1796_v28 = vpop.f32.mrb[28].mxu0 }
 0x906   : > { %v7005_v26 = vpop.f32.mrb[29].mxu0 }
 0x907   : > { %v1799_v34 = vpop.f32.mrb[30].mxu0 }
 0x908   : > { %v7006_v14 = vpop.f32.mrb[31].mxu0 }
 0x90a   : > { %v1845_v35 = vpop.f32.mrb[36].mxu1 }
 0x90b   : > { %v1949_v37 = vpack.c.bf16 %v1845_v35, %v1796_v28  ;;  %v7011_v38 = vpop.f32.mrb[37].mxu1 }
 0x90c   : > { %v1848_v43 = vpop.f32.mrb[38].mxu1 }
 0x90d   : > { %v7012_v24 = vpop.f32.mrb[39].mxu1  ;;  %v1894_v45 = vpop.f32.mrb[32].mxu0  ;;  %7027 = vmatprep.mubr.msk.bf16.mxu0 %vm1055_vm0, %v1949_v37 }
 0x90e   : > { %v7017_v53 = vpop.f32.mrb[33].mxu0 }
 0x90f   : > { %v1897_v54 = vpop.f32.mrb[34].mxu0 }
 0x910   : > { %v7018_v55 = vpop.f32.mrb[35].mxu0 }
 0x912   : > { %v1943_v58 = vpop.f32.mrb[40].mxu1 }
 0x913   : > { %v1950_v59 = vpack.c.bf16 %v1943_v58, %v1894_v45  ;;  %v7023_v60 = vpop.f32.mrb[41].mxu1 }
 0x914   : > { %v1946_v62 = vpop.f32.mrb[42].mxu1 }
 0x915   : > { %v7024_v0 = vpop.f32.mrb[43].mxu1  ;;  %7028 = vmatmul.mubr.msk.bf16.vlgmr.msra.gmra.mrb[36].mxu0 %vm1055_vm0, %v1950_v59 }
 0x916   : > { %7033 = vmatprep.mubr.msk.bf16.mxu0 %vm1055_vm0, %v1491_v50  ;;  %7032 = vmatpush3.bf16.msra.mxu0 %v7578_v32 }
 0x917   : > { %7049 = vmatprep.subr.bf16.mxu0 %v7858_v13 }
 0x91b   : > { %v2117_v61 = vpop.f32.mrb[44].mxu1 }
 0x91c   : > { %v2273_v1 = vmul.f32 0.25, %v2117_v61  ;;  %v7041_v27 = vpop.f32.mrb[45].mxu1 }
 0x91d   : > { %v2120_v5 = vpop.f32.mrb[46].mxu1 }
 0x91e   : > { %v7042_v15 = vpop.f32.mrb[47].mxu1  ;;  %v2277_v29 = vadd.f32 %v2273_v1, %v8214_v44 }
 0x920   : > { %v2281_v20 = vsel %vm1257_vm2, %v2277_v29, -inf }
 0x921   : > { %7034 = vmatmul.mubr.msk.bf16.vlgmr.msra.gmra.mrb[36].mxu0 %vm1055_vm0, %v1492_v6  ;;  %2282 = vmax.xlane.f32.xlu1 %v2281_v20 }
 0x922   : > { %7050 = vmatpush3.bf16.xpose.msra.mxu0 %v2181_v4  ;;  %7051 = vmatprep.mubr.msk.bf16.mxu0 %vm7860_vm15, %v7858_v13 }
 0x923   : > { %v2167_v40 = vpop.f32.mrb[48].mxu1  ;;  %7061 = vmatprep.subr.bf16.mxu0 %v7858_v13 }
 0x924   : > { %v2274_v49 = vmul.f32 0.25, %v2167_v40  ;;  %v7047_v50 = vpop.f32.mrb[49].mxu1 }
 0x925   : > { %v2170_v21 = vpop.f32.mrb[50].mxu1 }
 0x926   : > { %v7048_v22 = vpop.f32.mrb[51].mxu1  ;;  %v2278_v12 = vadd.f32 %v2274_v49, %v8219_v56 }
 0x928   : > { %v2284_v17 = vsel %vm1257_vm2, %v2278_v12, -inf }
 0x929   : > { %2285 = vmax.xlane.f32.xlu0 %v2284_v17  ;;  %7052 = vmatmul.mubr.msk.bf16.vlgmr.msra.gmra.mrb[40].mxu0 %vm1055_vm0, %v2174_v8 }
 0x92a   : > { %7063 = vmatprep.mubr.msk.bf16.mxu0 %vm7860_vm15, %v7858_v13 }
 0x92b   : > { %v2267_v57 = vpop.f32.mrb[52].mxu1 }
 0x92c   : > { %v7059_v11 = vpop.f32.mrb[53].mxu1  ;;  %v2276_v24 = vmul.f32 0.25, %v2267_v57 }
 0x92d   : > { %v2270_v6 = vpop.f32.mrb[54].mxu1 }
 0x92e   : > { %v7060_v18 = vpop.f32.mrb[55].mxu1  ;;  %v2280_v60 = vadd.f32 %v2276_v24, %v8229_v7 }
 0x930   : > { %v2290_v62 = vsel %vm1257_vm2, %v2280_v60, -inf }
 0x9ae   : > { %v2283_v32 = vpop.xlane.xlu1 %2282 }
 0x9af   : > { %v2293_v28 = vsub.f32 %v2277_v29, %v2283_v32 }
 0x9b1   : > { %v2297_v26 = vmul.f32 1.442695, %v2293_v28 }
 0x9b3   : > { %7681 = vpow2.f32 %v2297_v26 }
 0x9b6   : > { %v2286_v35 = vpop.xlane.xlu0 %2285 }
 0x9b7   : > { %v2294_v37 = vsub.f32 %v2278_v12, %v2286_v35 }
 0x9b9   : > { %v2299_v38 = vmul.f32 1.442695, %v2294_v37 }
 0x9bb   : > { %7683 = vpow2.f32 %v2299_v38 }
 0x9bd   : > { %v7682_v34 = vpop.eup %7681 }
 0x9be   : > { %v2305_v14 = vsel %vm1257_vm2, %v7682_v34, 0.0 }
 0x9bf   : > { %2306 = vadd.xlane.f32.xlu1 %v2305_v14 }
 0x9c5   : > { %v7684_v0 = vpop.eup %7683 }
 0x9c6   : > { %v2308_v61 = vsel %vm1257_vm2, %v7684_v0, 0.0 }
 0x9d0   : > { %2329 = vrot.lane.b32.xlu1 %v8124_v31, %s7864_s28 }
 0x9d4   : > { %2425 = vrot.lane.b32.xlu1 %v8255_v10, %s7864_s28 }
 0x9fc   : > { %v2217_v43 = vpop.f32.mrb[40].mxu0 }
 0x9fd   : > { %v2275_v45 = vmul.f32 0.25, %v2217_v43  ;;  %v7053_v53 = vpop.f32.mrb[41].mxu0 }
 0x9fe   : > { %v2220_v54 = vpop.f32.mrb[42].mxu0 }
 0x9ff   : > { %v7054_v55 = vpop.f32.mrb[43].mxu0  ;;  %v2279_v58 = vadd.f32 %v2275_v45, %v8224_v63 }
 0xa01   : > { %v2287_v59 = vsel %vm1257_vm2, %v2279_v58, -inf }
 0xa02   : > { %2288 = vmax.xlane.f32.xlu0 %v2287_v59 }
 0xa06   : > { %2291 = vmax.xlane.f32.xlu0 %v2290_v62 }
 0xa0a   : > { %2309 = vadd.xlane.f32.xlu0 %v2308_v61 }
 0xa4c   : > { %v2307_v1 = vpop.xlane.xlu1 %2306 }
 0xa4d   : > { %7685 = vrcp.f32 %v2307_v1 }
 0xa50   : > { %v2330_v27 = vpop.permute.xlu1 %2329 }
 0xa51   : > { %v2335_v5 = vsel %vm1309_vm14, %v2330_v27, 0 }
 0xa52   : > { %7062 = vmatpush3.bf16.msra.mxu0 %v2335_v5 }
 0xa53   : > { %7073 = vmatprep.subr.bf16.mxu0 %v7858_v13 }
 0xa54   : > { %v2426_v29 = vpop.permute.xlu1 %2425 }
 0xa55   : > { %v2431_v4 = vsel %vm1309_vm14, %v2426_v29, 0 }
 0xa57   : > { %v7686_v9 = vpop.eup %7685 }
 0xa58   : > { %v2321_v15 = vmul.f32 %v7686_v9, %v7682_v34 }
 0xa5a   : > { %v2325_v20 = vpack.c.bf16 %v2321_v15, %v2321_v15 }
 0xa5c   : > { %7064 = vmatmul.mubr.msk.bf16.vlgmr.msra.gmra.mrb[44].mxu0 %vm1257_vm2, %v2325_v20 }
 0xa5d   : > { %7074 = vmatpush3.bf16.msra.mxu0 %v2431_v4  ;;  %7075 = vmatprep.mubr.msk.bf16.mxu0 %vm7860_vm15, %v7858_v13 }
 0xa8f   : > { %v2289_v40 = vpop.xlane.xlu0 %2288 }
 0xa90   : > { %v2295_v49 = vsub.f32 %v2279_v58, %v2289_v40 }
 0xa92   : > { %v2301_v50 = vmul.f32 1.442695, %v2295_v49 }
 0xa93   : > { %v2292_v21 = vpop.xlane.xlu0 %2291 }
 0xa94   : > { %7687 = vpow2.f32 %v2301_v50  ;;  %v2296_v22 = vsub.f32 %v2280_v60, %v2292_v21  ;;  %v7579_v60 = vld [vmem:[%s9239_s6 + $0x10] sm:$0xff]  }
 0xa95   : > { %7085 = vmatprep.subr.bf16.mxu0 %v7579_v60 }
 0xa96   : > { %v2303_v12 = vmul.f32 1.442695, %v2296_v22 }
 0xa98   : > { %7689 = vpow2.f32 %v2303_v12 }
 0xa9e   : > { %v7688_v8 = vpop.eup %7687 }
 0xa9f   : > { %v2311_v17 = vsel %vm1257_vm2, %v7688_v8, 0.0 }
 0xaa0   : > { %2312 = vadd.xlane.f32.xlu1 %v2311_v17 }
 0xaa2   : > { %v7690_v57 = vpop.eup %7689 }
 0xaa3   : > { %v2314_v11 = vsel %vm1257_vm2, %v7690_v57, 0.0 }
 0xaa4   : > { %2315 = vadd.xlane.f32.xlu0 %v2314_v11 }
 0xab1   : > { %2473 = vrot.lane.b32.xlu1 %v8265_v2, %s7864_s28 }
 0xab5   : > { %2590 = vrot.lane.b32.xlu1 %v8155_v19, %s7865_s16  ;;  %v2310_v19 = vpop.xlane.xlu0 %2309 }
 0xab6   : > { %7691 = vrcp.f32 %v2310_v19 }
 0xab9   : > { %2588 = vrot.lane.b32.xlu1 %v8174_v33, %s9247_s18 }
 0xaba   : > { %2377 = vrot.lane.b32.xlu0 %v8200_v41, %s7864_s28 }
 0xabd   : > { %2690 = vrot.lane.b32.xlu1 %v8166_v25, %s7865_s16 }
 0xabe   : > { %2640 = vrot.lane.b32.xlu0 %v8153_v16, %s7865_s16 }
 0xac0   : > { %v7692_v18 = vpop.eup %7691 }
 0xac1   : > { %2688 = vrot.lane.b32.xlu1 %v8190_v39, %s9247_s18  ;;  %v2322_v28 = vmul.f32 %v7692_v18, %v7684_v0 }
 0xac2   : > { %2638 = vrot.lane.b32.xlu0 %v8182_v36, %s9247_s18 }
 0xac3   : > { %v2326_v14 = vpack.c.bf16 %v2322_v28, %v2322_v28 }
 0xac6   : > { %2740 = vrot.lane.b32.xlu0 %v8164_v23, %s7865_s16 }
 0xaca   : > { %2738 = vrot.lane.b32.xlu0 %v8204_v42, %s9247_s18 }
 0xb2d   : > { %v2313_v33 = vpop.xlane.xlu1 %2312 }
 0xb2e   : > { %7693 = vrcp.f32 %v2313_v33 }
 0xb2f   : > { %v2371_v25 = vpop.f32.mrb[44].mxu0 }
 0xb30   : > { %v7065_v6 = vpop.f32.mrb[45].mxu0 }
 0xb31   : > { %v2316_v16 = vpop.xlane.xlu0 %2315  ;;  %v2374_v32 = vpop.f32.mrb[46].mxu0 }
 0xb32   : > { %7695 = vrcp.f32 %v2316_v16  ;;  %v7066_v39 = vpop.f32.mrb[47].mxu0  ;;  %v2474_v36 = vpop.permute.xlu1 %2473 }
 0xb33   : > { %v2479_v35 = vsel %vm1309_vm14, %v2474_v36, 0 }
 0xb35   : > { %v2378_v26 = vpop.permute.xlu0 %2377 }
 0xb36   : > { %v2383_v34 = vsel %vm1309_vm14, %v2378_v26, 0  ;;  %v2591_v43 = vpop.permute.xlu1 %2590 }
 0xb37   : > { %7068 = vmatpush3.bf16.msra.mxu1 %v2383_v34  ;;  %v2596_v54 = vsel %vm1055_vm0, %v2591_v43, 0 }
 0xb38   : > { %v7694_v23 = vpop.eup %7693  ;;  %7079 = vmatprep.subr.bf16.mxu1 %v7858_v13 }
 0xb39   : > { %v2323_v42 = vmul.f32 %v7694_v23, %v7688_v8  ;;  %v2641_v9 = vpop.permute.xlu0 %2640 }
 0xb3a   : > { %7070 = vmatmul.mubr.msk.bf16.vlgmr.msra.gmra.mrb[56].mxu1 %vm1257_vm2, %v2326_v14  ;;  %v2589_v53 = vpop.permute.xlu1 %2588  ;;  %v2646_v22 = vsel %vm1055_vm0, %v2641_v9, 0 }
 0xb3b   : > { %7080 = vmatpush3.bf16.msra.mxu1 %v2479_v35  ;;  %v2327_v37 = vpack.c.bf16 %v2323_v42, %v2323_v42  ;;  %7081 = vmatprep.mubr.msk.bf16.mxu1 %vm7860_vm15, %v7858_v13 }
 0xb3c   : > { %v7696_v38 = vpop.eup %7695  ;;  %7091 = vmatprep.subr.bf16.mxu1 %v7858_v13 }
 0xb3d   : > { %7076 = vmatmul.mubr.msk.bf16.vlgmr.msra.gmra.mrb[48].mxu0 %vm1257_vm2, %v2327_v37  ;;  %v2324_v24 = vmul.f32 %v7696_v38, %v7690_v57  ;;  %v2639_v50 = vpop.permute.xlu0 %2638 }
 0xb3e   : > { %v2691_v55 = vpop.permute.xlu1 %2690  ;;  %7086 = vmatpush3.bf16.msra.mxu0 %v7579_v60 }
 0xb3f   : > { %v2328_v45 = vpack.c.bf16 %v2324_v24, %v2324_v24  ;;  %v2696_v58 = vsel %vm1055_vm0, %v2691_v55, 0  ;;  %7097 = vmatprep.subr.bf16.mxu0 %v7858_v13 }
 0xb41   : > { %v2741_v8 = vpop.permute.xlu0 %2740 }
 0xb42   : > { %7082 = vmatmul.mubr.msk.bf16.vlgmr.msra.gmra.mrb[60].mxu1 %vm1257_vm2, %v2328_v45  ;;  %v2689_v59 = vpop.permute.xlu1 %2688  ;;  %v2746_v19 = vsel %vm1055_vm0, %v2741_v8, 0 }
 0xb43   : > { %7093 = vmatprep.mubr.msk.bf16.mxu1 %vm7860_vm15, %v7858_v13 }
 0xb44   : > { %7092 = vmatpush3.bf16.xpose.msra.mxu1 %v2596_v54 }
 0xb45   : > { %7103 = vmatprep.subr.bf16.mxu1 %v7858_v13  ;;  %v2739_v32 = vpop.permute.xlu0 %2738 }
 0xb4b   : > { %7094 = vmatmul.mubr.msk.bf16.vlgmr.msra.gmra.mrb[64].mxu1 %vm1055_vm0, %v2589_v53 }
 0xb4c   : > { %7104 = vmatpush3.bf16.xpose.msra.mxu1 %v2696_v58  ;;  %7105 = vmatprep.mubr.msk.bf16.mxu1 %vm7860_vm15, %v7858_v13 }
 0xb4d   : > { %7115 = vmatprep.subr.bf16.mxu1 %v7858_v13 }
 0xb53   : > { %7106 = vmatmul.mubr.msk.bf16.vlgmr.msra.gmra.mrb[68].mxu1 %vm1055_vm0, %v2689_v59 }
 0xb54   : > { %7117 = vmatprep.mubr.msk.bf16.mxu1 %vm7860_vm15, %v7858_v13 }
 0xc0d   : > { %v2419_v62 = vpop.f32.mrb[56].mxu1 }
 0xc0e   : > { %v2521_v0 = vpack.c.bf16 %v2419_v62, %v2371_v25  ;;  %v7071_v61 = vpop.f32.mrb[57].mxu1 }
 0xc0f   : > { %v2422_v1 = vpop.f32.mrb[58].mxu1 }
 0xc10   : > { %v7072_v27 = vpop.f32.mrb[59].mxu1  ;;  %v2467_v5 = vpop.f32.mrb[48].mxu0  ;;  %7087 = vmatprep.mubr.msk.bf16.mxu0 %vm1055_vm0, %v2521_v0 }
 0xc11   : > { %v7077_v15 = vpop.f32.mrb[49].mxu0 }
 0xc12   : > { %v2470_v29 = vpop.f32.mrb[50].mxu0 }
 0xc13   : > { %v7078_v20 = vpop.f32.mrb[51].mxu0 }
 0xc15   : > { %v2515_v4 = vpop.f32.mrb[60].mxu1 }
 0xc16   : > { %v2522_v40 = vpack.c.bf16 %v2515_v4, %v2467_v5  ;;  %v7083_v49 = vpop.f32.mrb[61].mxu1 }
 0xc17   : > { %v2518_v21 = vpop.f32.mrb[62].mxu1 }
 0xc18   : > { %v7084_v12 = vpop.f32.mrb[63].mxu1  ;;  %7088 = vmatmul.mubr.msk.bf16.vlgmr.msra.gmra.mrb[36].mxu0 %vm1055_vm0, %v2522_v40 }
 0xc19   : > { %7098 = vmatpush3.bf16.xpose.msra.mxu0 %v2646_v22  ;;  %7099 = vmatprep.mubr.msk.bf16.mxu0 %vm7860_vm15, %v7858_v13 }
 0xc1a   : > { %7109 = vmatprep.subr.bf16.mxu0 %v7858_v13 }
 0xc1e   : > { %v2632_v17 = vpop.f32.mrb[64].mxu1 }
 0xc1f   : > { %v2788_v57 = vmul.f32 0.25, %v2632_v17  ;;  %v7095_v11 = vpop.f32.mrb[65].mxu1 }
 0xc20   : > { %v2635_v33 = vpop.f32.mrb[66].mxu1  ;;  %7100 = vmatmul.mubr.msk.bf16.vlgmr.msra.gmra.mrb[52].mxu0 %vm1055_vm0, %v2639_v50 }
 0xc21   : > { %7110 = vmatpush3.bf16.xpose.msra.mxu0 %v2746_v19  ;;  %v7096_v25 = vpop.f32.mrb[67].mxu1  ;;  %v2792_v6 = vadd.f32 %v2788_v57, %v8214_v44  ;;  %7111 = vmatprep.mubr.msk.bf16.mxu0 %vm7860_vm15, %v7858_v13 }
 0xc22   : > { %7121 = vmatprep.subr.bf16.mxu0 %v7858_v13 }
 0xc23   : > { %v2796_v18 = vsel %vm1257_vm2, %v2792_v6, -inf }
 0xc24   : > { %2797 = vmax.xlane.f32.xlu1 %v2796_v18 }
 0xc26   : > { %v2732_v16 = vpop.f32.mrb[68].mxu1 }
 0xc27   : > { %v7107_v39 = vpop.f32.mrb[69].mxu1  ;;  %v2790_v37 = vmul.f32 0.25, %v2732_v16 }
 0xc28   : > { %v2735_v28 = vpop.f32.mrb[70].mxu1  ;;  %7112 = vmatmul.mubr.msk.bf16.vlgmr.msra.gmra.mrb[56].mxu0 %vm1055_vm0, %v2739_v32 }
 0xc29   : > { %v7108_v26 = vpop.f32.mrb[71].mxu1  ;;  %7123 = vmatprep.mubr.msk.bf16.mxu0 %vm7860_vm15, %v7858_v13  ;;  %v2794_v55 = vadd.f32 %v2790_v37, %v8224_v63 }
 0xc2b   : > { %v2802_v62 = vsel %vm1257_vm2, %v2794_v55, -inf }
 0xcb1   : > { %v2798_v36 = vpop.xlane.xlu1 %2797 }
 0xcb2   : > { %v2808_v34 = vsub.f32 %v2792_v6, %v2798_v36 }
 0xcb4   : > { %v2812_v23 = vmul.f32 1.442695, %v2808_v34 }
 0xcb6   : > { %7697 = vpow2.f32 %v2812_v23 }
 0xcc0   : > { %v7698_v14 = vpop.eup %7697 }
 0xcc1   : > { %v2820_v42 = vsel %vm1257_vm2, %v7698_v14, 0.0 }
 0xcc2   : > { %2821 = vadd.xlane.f32.xlu1 %v2820_v42 }
 0xcf3   : > { %v2682_v35 = vpop.f32.mrb[52].mxu0 }
 0xcf4   : > { %v2789_v38 = vmul.f32 0.25, %v2682_v35  ;;  %v7101_v43 = vpop.f32.mrb[53].mxu0 }
 0xcf5   : > { %v2685_v24 = vpop.f32.mrb[54].mxu0 }
 0xcf6   : > { %v7102_v45 = vpop.f32.mrb[55].mxu0  ;;  %v2793_v53 = vadd.f32 %v2789_v38, %v8219_v56  ;;  %v7580_v24 = vld [vmem:[%s9239_s6 + $0x18] sm:$0xff]  }
 0xcf8   : > { %v2799_v54 = vsel %vm1257_vm2, %v2793_v53, -inf }
 0xcf9   : > { %2800 = vmax.xlane.f32.xlu0 %v2799_v54 }
 0xcfb   : > { %v2782_v58 = vpop.f32.mrb[56].mxu0 }
 0xcfc   : > { %v2791_v59 = vmul.f32 0.25, %v2782_v58  ;;  %v7113_v60 = vpop.f32.mrb[57].mxu0 }
 0xcfd   : > { %v2785_v0 = vpop.f32.mrb[58].mxu0  ;;  %2803 = vmax.xlane.f32.xlu0 %v2802_v62 }
 0xcfe   : > { %v7114_v61 = vpop.f32.mrb[59].mxu0  ;;  %v2795_v1 = vadd.f32 %v2791_v59, %v8229_v7 }
 0xd00   : > { %v2805_v27 = vsel %vm1257_vm2, %v2795_v1, -inf }
 0xd01   : > { %2806 = vmax.xlane.f32.xlu0 %v2805_v27 }
 0xd4f   : > { %v2822_v11 = vpop.xlane.xlu1 %2821 }
 0xd86   : > { %v2801_v5 = vpop.xlane.xlu0 %2800 }
 0xd87   : > { %v2809_v9 = vsub.f32 %v2793_v53, %v2801_v5 }
 0xd89   : > { %v2814_v15 = vmul.f32 1.442695, %v2809_v9 }
 0xd8a   : > { %v2804_v29 = vpop.xlane.xlu0 %2803 }
 0xd8b   : > { %7699 = vpow2.f32 %v2814_v15  ;;  %v2810_v20 = vsub.f32 %v2794_v55, %v2804_v29 }
 0xd8d   : > { %v2816_v4 = vmul.f32 1.442695, %v2810_v20 }
 0xd8e   : > { %v2807_v40 = vpop.xlane.xlu0 %2806 }
 0xd8f   : > { %7701 = vpow2.f32 %v2816_v4  ;;  %v2811_v49 = vsub.f32 %v2795_v1, %v2807_v40 }
 0xd91   : > { %v2818_v50 = vmul.f32 1.442695, %v2811_v49 }
 0xd93   : > { %7703 = vpow2.f32 %v2818_v50  ;;  %v7841_v50 = vld [vmem:[%s7955_s30] sm:$0xff] }
 0xd94   : > { %7705 = vrcp.f32 %v2822_v11 }
 0xd95   : > { %v7700_v21 = vpop.eup %7699 }
 0xd96   : > { %v2823_v22 = vsel %vm1257_vm2, %v7700_v21, 0.0 }
 0xd97   : > { %2824 = vadd.xlane.f32.xlu0 %v2823_v22 }
 0xd99   : > { %v7702_v12 = vpop.eup %7701 }
 0xd9a   : > { %v2826_v8 = vsel %vm1257_vm2, %v7702_v12, 0.0 }
 0xd9b   : > { %2827 = vadd.xlane.f32.xlu1 %v2826_v8  ;;  %v7842_v8 = vld [vmem:[%s7955_s30 + $0x10] sm:$0xff] }
 0xd9d   : > { %v7704_v17 = vpop.eup %7703 }
 0xd9e   : > { %v2829_v57 = vsel %vm1257_vm2, %v7704_v17, 0.0  ;;  %v7706_v33 = vpop.eup %7705 }
 0xd9f   : > { %2830 = vadd.xlane.f32.xlu0 %v2829_v57  ;;  %v2836_v6 = vmul.f32 %v7706_v33, %v7698_v14  ;;  %v7843_v57 = vld [vmem:[%s7955_s30 + $0x8] sm:$0xff] }
 0xda1   : > { %v2840_v32 = vpack.c.bf16 %v2836_v6, %v2836_v6  ;;  %v7844_v6 = vld [vmem:[%s7955_s30 + $0x18] sm:$0xff] }
 0xdac   : > { %2844 = vrot.lane.b32.xlu1 %v8124_v31, %s9247_s18 }
 0xdb0   : > { %2940 = vrot.lane.b32.xlu1 %v8255_v10, %s9247_s18 }
 0xdb4   : > { %2988 = vrot.lane.b32.xlu1 %v8265_v2, %s9247_s18 }
 0xdb5   : > { %2892 = vrot.lane.b32.xlu0 %v8200_v41, %s9247_s18 }
 0xe24   : > { %v2825_v19 = vpop.xlane.xlu0 %2824 }
 0xe25   : > { %7707 = vrcp.f32 %v2825_v19 }
 0xe28   : > { %v2828_v25 = vpop.xlane.xlu1 %2827 }
 0xe29   : > { %7709 = vrcp.f32 %v2828_v25 }
 0xe2c   : > { %v2831_v18 = vpop.xlane.xlu0 %2830  ;;  %v2845_v16 = vpop.permute.xlu1 %2844 }
 0xe2d   : > { %7711 = vrcp.f32 %v2831_v18  ;;  %v2850_v31 = vsel %vm1309_vm14, %v2845_v16, 0 }
 0xe2e   : > { %7116 = vmatpush3.bf16.msra.mxu1 %v2850_v31 }
 0xe2f   : > { %v7708_v10 = vpop.eup %7707  ;;  %7127 = vmatprep.subr.bf16.mxu1 %v7858_v13 }
 0xe30   : > { %v2893_v2 = vpop.permute.xlu0 %2892  ;;  %v2941_v41 = vpop.permute.xlu1 %2940  ;;  %v2837_v39 = vmul.f32 %v7708_v10, %v7700_v21 }
 0xe31   : > { %v2898_v28 = vsel %vm1309_vm14, %v2893_v2, 0  ;;  %v2946_v26 = vsel %vm1309_vm14, %v2941_v41, 0  ;;  %7118 = vmatmul.mubr.msk.bf16.vlgmr.msra.gmra.mrb[72].mxu1 %vm1257_vm2, %v2840_v32  ;;  %v7583_v41 = vld [vmem:[%s9241_s8 + $0x4] ss:$8 sps:$4 sm:$0xff]  }
 0xe32   : > { %7122 = vmatpush3.bf16.msra.mxu0 %v2898_v28  ;;  %7128 = vmatpush3.bf16.msra.mxu1 %v2946_v26  ;;  %v2841_v36 = vpack.c.bf16 %v2837_v39, %v2837_v39  ;;  %v7581_v39 = vld [vmem:[%s9241_s8] ss:$8 sps:$4 sm:$0xff]   ;;  %v7586_v28 = vld [vmem:[%s9241_s8 + $0x14] ss:$8 sps:$4 sm:$0xff]   ;;  %v7584_v26 = vld [vmem:[%s9241_s8 + $0x10] ss:$8 sps:$4 sm:$0xff]  }
 0xe33   : > { %v7710_v34 = vpop.eup %7709  ;;  %7133 = vmatprep.subr.bf16.mxu0 %v7858_v13  ;;  %7129 = vmatprep.mubr.msk.bf16.mxu1 %vm7860_vm15, %v7858_v13 }
 0xe34   : > { %v2989_v23 = vpop.permute.xlu1 %2988  ;;  %v2838_v14 = vmul.f32 %v7710_v34, %v7702_v12  ;;  %3206 = vmatprep.subr.bf16.mxu1 %v7583_v41  ;;  %v7587_v34 = vld [vmem:[%s9241_s8 + $0x20] ss:$8 sps:$4 sm:$0xff]  }
 0xe35   : > { %v2994_v42 = vsel %vm1309_vm14, %v2989_v23, 0  ;;  %7124 = vmatmul.mubr.msk.bf16.vlgmr.msra.gmra.mrb[60].mxu0 %vm1257_vm2, %v2841_v36  ;;  %v7589_v36 = vld [vmem:[%s9241_s8 + $0x24] ss:$8 sps:$4 sm:$0xff]   ;;  %v7590_v23 = vld [vmem:[%s9241_s8 + $0x30] ss:$8 sps:$4 sm:$0xff]  }
 0xe36   : > { %7134 = vmatpush3.bf16.msra.mxu0 %v2994_v42  ;;  %v2842_v35 = vpack.c.bf16 %v2838_v14, %v2838_v14  ;;  %7135 = vmatprep.mubr.msk.bf16.mxu0 %vm7860_vm15, %v7858_v13  ;;  %v7592_v14 = vld [vmem:[%s9241_s8 + $0x34] ss:$8 sps:$4 sm:$0xff]  }
 0xe37   : > { %v7712_v37 = vpop.eup %7711  ;;  %7139 = vmatprep.subr.bf16.mxu0 %v7580_v24 }
 0xe38   : > { %v2839_v38 = vmul.f32 %v7712_v37, %v7704_v17 }
 0xe39   : > { %7130 = vmatmul.mubr.msk.bf16.vlgmr.msra.gmra.mrb[76].mxu1 %vm1257_vm2, %v2842_v35 }
 0xe3a   : > { %v2843_v43 = vpack.c.bf16 %v2839_v38, %v2839_v38  ;;  %3238 = vmatprep.mubr.bf16.mxu1 %v7856_v30  ;;  %3207 = vmatpush1.bf16.msra.mxu1 %v7581_v39 }
 0xe3b   : > { %3208 = vmatprep.subr.bf16.mxu1 %v7586_v28 }
 0xe3d   : > { %7136 = vmatmul.mubr.msk.bf16.vlgmr.msra.gmra.mrb[64].mxu0 %vm1257_vm2, %v2843_v43 }
 0xe3e   : > { %7140 = vmatpush3.bf16.msra.mxu0 %v7580_v24  ;;  %3209 = vmatpush1.bf16.msra.mxu1 %v7584_v26 }
 0xe3f   : > { %3210 = vmatprep.subr.bf16.mxu1 %v7589_v36 }
 0xe42   : > { %3211 = vmatpush1.bf16.msra.mxu1 %v7587_v34 }
 0xe43   : > { %3212 = vmatprep.subr.bf16.mxu1 %v7592_v14 }
 0xe46   : > { %3213 = vmatpush1.bf16.msra.mxu1 %v7590_v23 }
 0xf04   : > { %v2886_v45 = vpop.f32.mrb[72].mxu1 }
 0xf05   : > { %v7119_v53 = vpop.f32.mrb[73].mxu1 }
 0xf06   : > { %v2889_v54 = vpop.f32.mrb[74].mxu1 }
 0xf07   : > { %v7120_v55 = vpop.f32.mrb[75].mxu1 }
 0xf08   : > { %v2934_v58 = vpop.f32.mrb[60].mxu0 }
 0xf09   : > { %v3036_v59 = vpack.c.bf16 %v2934_v58, %v2886_v45  ;;  %v7125_v60 = vpop.f32.mrb[61].mxu0 }
 0xf0a   : > { %v2937_v62 = vpop.f32.mrb[62].mxu0 }
 0xf0b   : > { %v7126_v0 = vpop.f32.mrb[63].mxu0  ;;  %7141 = vmatprep.mubr.msk.bf16.mxu0 %vm1055_vm0, %v3036_v59 }
 0xf0c   : > { %v2982_v61 = vpop.f32.mrb[76].mxu1 }
 0xf0d   : > { %v7131_v1 = vpop.f32.mrb[77].mxu1 }
 0xf0e   : > { %v2985_v27 = vpop.f32.mrb[78].mxu1 }
 0xf0f   : > { %v7132_v5 = vpop.f32.mrb[79].mxu1 }
 0xf10   : > { %v3030_v9 = vpop.f32.mrb[64].mxu0 }
 0xf11   : > { %v3037_v15 = vpack.c.bf16 %v3030_v9, %v2982_v61  ;;  %v7137_v29 = vpop.f32.mrb[65].mxu0  ;;  %v6483_v61 = vld [vmem:[%s9240_s7] ss:$0 sm:$0xff] }
 0xf12   : > { %v3033_v20 = vpop.f32.mrb[66].mxu0 }
 0xf13   : > { %v7138_v4 = vpop.f32.mrb[67].mxu0  ;;  %7142 = vmatmul.mubr.msk.bf16.vlgmr.msra.gmra.mrb[36].mxu0 %vm1055_vm0, %v3037_v15 }
 0xfe6   : > { %v7143_v40 = vpop.f32.mrb[36].mxu0 }
 0xfe7   : > { %v3084_v49 = vpop.f32.mrb[37].mxu0  ;;  %v8528_v17 = vadd.f32 %v7842_v8, %v7143_v40  ;;  %v7595_v8 = vld [vmem:[%s9242_s9 + $0x10] sm:$0xff]  }
 0xfe8   : > { %v8525_v21 = vadd.f32 %v7841_v50, %v3084_v49  ;;  %v7144_v22 = vpop.f32.mrb[38].mxu0 }
 0xfe9   : > { %v3087_v12 = vpop.f32.mrb[39].mxu0  ;;  %v8539_v18 = vadd.f32 %v7844_v6, %v7144_v22  ;;  %v3110_v31 = vmul.f32 %v8528_v17, %v8528_v17  ;;  %v7593_v22 = vld [vmem:[%s9242_s9] sm:$0xff]   ;;  %v7600_v6 = vld [vmem:[%s9242_s9 + $0x38] sm:$0xff]  }
 0xfea   : > { %v8531_v11 = vadd.f32 %v7843_v57, %v3087_v12  ;;  %v3108_v19 = vmul.f32 %v8525_v21, %v8525_v21  ;;  %7145 = vmatprep.subr.bf16.mxu0 %v7593_v22  ;;  %v7594_v12 = vld [vmem:[%s9242_s9 + $0x8] sm:$0xff]   ;;  %v7596_v57 = vld [vmem:[%s9242_s9 + $0x18] sm:$0xff]  }
 0xfeb   : > { %v3118_v10 = vsel %vm641_vm1, %v3110_v31, 0.0  ;;  %v3111_v32 = vmul.f32 %v8539_v18, %v8539_v18  ;;  %7146 = vmatpush3.bf16.msra.mxu0 %v7593_v22 }
 0xfec   : > { %v3112_v33 = vsel %vm641_vm1, %v3108_v19, 0.0  ;;  %v3109_v25 = vmul.f32 %v8531_v11, %v8531_v11  ;;  %7147 = vmatprep.subr.bf16.mxu0 %v7594_v12  ;;  %v7597_v19 = vld [vmem:[%s9242_s9 + $0x20] sm:$0xff]  }
 0xfed   : > { %3113 = vadd.xlane.f32.xlu1 %v3112_v33  ;;  %v3121_v2 = vsel %vm641_vm1, %v3111_v32, 0.0  ;;  %v7598_v33 = vld [vmem:[%s9242_s9 + $0x28] sm:$0xff]  }
 0xfee   : > { %v3115_v16 = vsel %vm641_vm1, %v3109_v25, 0.0  ;;  %v7599_v25 = vld [vmem:[%s9242_s9 + $0x30] sm:$0xff]  }
 0xfef   : > { %3116 = vadd.xlane.f32.xlu0 %v3115_v16  ;;  %7148 = vmatpush3.bf16.msra.mxu0 %v7594_v12 }
 0xff0   : > { %7149 = vmatprep.subr.bf16.mxu0 %v7595_v8 }
 0xff3   : > { %3119 = vadd.xlane.f32.xlu0 %v3118_v10  ;;  %7150 = vmatpush3.bf16.msra.mxu0 %v7595_v8 }
 0xff4   : > { %7151 = vmatprep.subr.bf16.mxu0 %v7596_v57 }
 0xff7   : > { %3122 = vadd.xlane.f32.xlu0 %v3121_v2  ;;  %7152 = vmatpush3.bf16.msra.mxu0 %v7596_v57 }
 0xff8   : > { %7153 = vmatprep.subr.bf16.mxu0 %v7597_v19 }
 0xffb   : > { %7154 = vmatpush3.bf16.msra.mxu0 %v7597_v19 }
 0xffc   : > { %7155 = vmatprep.subr.bf16.mxu0 %v7598_v33 }
 0xfff   : > { %7156 = vmatpush3.bf16.msra.mxu0 %v7598_v33 }
0x1000   : > { %7157 = vmatprep.subr.bf16.mxu0 %v7599_v25 }
0x1003   : > { %7158 = vmatpush3.bf16.msra.mxu0 %v7599_v25  ;;  %v7603_v25 = vld [vmem:[%s9238_s5 + $0x44] ss:$8 sps:$4 sm:$0xff]  }
0x1004   : > { %7159 = vmatprep.subr.bf16.mxu0 %v7600_v6  ;;  %3511 = vmatprep.subr.bf16.mxu1 %v7603_v25 }
0x1007   : > { %7160 = vmatpush3.bf16.msra.mxu0 %v7600_v6  ;;  %v7601_v6 = vld [vmem:[%s9238_s5 + $0x40] ss:$8 sps:$4 sm:$0xff]  }
0x1008   : > { %7506 = vmatprep.subr.msk.bf16.mxu0 %vm8018_vm6, %v7857_v47 }
0x107a   : > { %v3114_v42 = vpop.xlane.xlu1 %3113 }
0x107b   : > { %v3124_v35 = vmul.f32 0.015625, %v3114_v42 }
0x107c   : > { %v3117_v37 = vpop.xlane.xlu0 %3116 }
0x107d   : > { %v3128_v38 = vadd.f32 1e-06, %v3124_v35  ;;  %v3125_v43 = vmul.f32 0.015625, %v3117_v37 }
0x107f   : > { %7713 = vrsqrt.f32 %v3128_v38  ;;  %v3129_v24 = vadd.f32 1e-06, %v3125_v43 }
0x1080   : > { %v3120_v45 = vpop.xlane.xlu0 %3119 }
0x1081   : > { %7715 = vrsqrt.f32 %v3129_v24  ;;  %v3126_v53 = vmul.f32 0.015625, %v3120_v45 }
0x1083   : > { %v3130_v54 = vadd.f32 1e-06, %v3126_v53 }
0x1084   : > { %v3123_v55 = vpop.xlane.xlu0 %3122 }
0x1085   : > { %7717 = vrsqrt.f32 %v3130_v54  ;;  %v3127_v58 = vmul.f32 0.015625, %v3123_v55 }
0x1087   : > { %v3131_v59 = vadd.f32 1e-06, %v3127_v58 }
0x1089   : > { %v7714_v60 = vpop.eup %7713  ;;  %7719 = vrsqrt.f32 %v3131_v59 }
0x108a   : > { %v3136_v62 = vmul.f32 %v7714_v60, %v8525_v21 }
0x108b   : > { %v7716_v0 = vpop.eup %7715 }
0x108c   : > { %v3137_v1 = vmul.f32 %v7716_v0, %v8531_v11  ;;  %v3146_v27 = vmul.f32 %v6483_v61, %v3136_v62 }
0x108e   : > { %v3147_v5 = vmul.f32 %v6483_v61, %v3137_v1 }
0x108f   : > { %v7718_v9 = vpop.eup %7717 }
0x1090   : > { %v3150_v15 = vpack.c.bf16 %v3147_v5, %v3146_v27  ;;  %v3138_v29 = vmul.f32 %v7718_v9, %v8528_v17 }
0x1092   : > { %6492 = vmatmul.mubr.msk.bf16.vlgmr.msra.gmra.mrb[80].mxu1 %vm641_vm1, %v3150_v15  ;;  %v3148_v40 = vmul.f32 %v6483_v61, %v3138_v29 }
0x1093   : > { %v7720_v20 = vpop.eup %7719  ;;  %3248 = vmatprep.mubr.bf16.mxu1 %v7856_v30  ;;  %3512 = vmatpush1.bf16.msra.mxu1 %v7601_v6 }
0x1094   : > { %v3139_v4 = vmul.f32 %v7720_v20, %v8539_v18 }
0x1096   : > { %v3149_v49 = vmul.f32 %v6483_v61, %v3139_v4 }
0x1098   : > { %v3151_v50 = vpack.c.bf16 %v3149_v49, %v3148_v40 }
0x109a   : > { %6493 = vmatmul.mubr.msk.bf16.gmra.mrb[84].mxu1 %vm641_vm1, %v3151_v50 }
0x109b   : > { %3543 = vmatprep.mubr.bf16.mxu1 %v7856_v30 }
0x1165   : > { %v3240_v16 = vpop.f32.mrb[80].mxu1 }
0x1166   : > { %v6494_v31 = vmul.f32 -1.442695, %v3240_v16  ;;  %v3242_v10 = vpop.f32.mrb[81].mxu1 }
0x1167   : > { %v3244_v32 = vpop.f32.mrb[82].mxu1 }
0x1168   : > { %7721 = vpow2.f32 %v6494_v31  ;;  %v6495_v2 = vmul.f32 -1.442695, %v3244_v32  ;;  %v3246_v41 = vpop.f32.mrb[83].mxu1  ;;  %v7604_v31 = vld [vmem:[%s9238_s5 + $0x50] ss:$8 sps:$4 sm:$0xff]  }
0x116a   : > { %7723 = vpow2.f32 %v6495_v2  ;;  %v7612_v2 = vld [vmem:[%s9238_s5 + $0x74] ss:$8 sps:$4 sm:$0xff]  }
0x116d   : > { %v3250_v39 = vpop.f32.mrb[84].mxu1 }
0x116e   : > { %v6496_v28 = vmul.f32 -1.442695, %v3250_v39  ;;  %v3252_v26 = vpop.f32.mrb[85].mxu1 }
0x116f   : > { %v3254_v36 = vpop.f32.mrb[86].mxu1 }
0x1170   : > { %7725 = vpow2.f32 %v6496_v28  ;;  %v6497_v34 = vmul.f32 -1.442695, %v3254_v36  ;;  %v3256_v23 = vpop.f32.mrb[87].mxu1 }
0x1172   : > { %v7722_v14 = vpop.eup %7721  ;;  %7727 = vpow2.f32 %v6497_v34 }
0x1173   : > { %v3271_v42 = vadd.f32 1.0, %v7722_v14 }
0x1174   : > { %v7724_v35 = vpop.eup %7723 }
0x1175   : > { %7729 = vrcp.f32 %v3271_v42  ;;  %v3272_v37 = vadd.f32 1.0, %v7724_v35 }
0x1177   : > { %7731 = vrcp.f32 %v3272_v37 }
0x117a   : > { %v7726_v38 = vpop.eup %7725 }
0x117b   : > { %v3273_v43 = vadd.f32 1.0, %v7726_v38 }
0x117c   : > { %v7728_v24 = vpop.eup %7727 }
0x117d   : > { %7733 = vrcp.f32 %v3273_v43  ;;  %v3274_v45 = vadd.f32 1.0, %v7728_v24 }
0x117f   : > { %v7730_v53 = vpop.eup %7729  ;;  %7735 = vrcp.f32 %v3274_v45 }
0x1180   : > { %v3283_v54 = vmul.f32 %v7730_v53, %v3240_v16  ;;  %v7606_v16 = vld [vmem:[%s9238_s5 + $0x54] ss:$8 sps:$4 sm:$0xff]  }
0x1181   : > { %v7732_v55 = vpop.eup %7731  ;;  %3513 = vmatprep.subr.bf16.mxu1 %v7606_v16 }
0x1182   : > { %v3287_v58 = vmul.f32 %v3283_v54, %v3242_v10  ;;  %v3284_v59 = vmul.f32 %v7732_v55, %v3244_v32  ;;  %3514 = vmatpush1.bf16.msra.mxu1 %v7604_v31  ;;  %v7609_v10 = vld [vmem:[%s9238_s5 + $0x64] ss:$8 sps:$4 sm:$0xff]   ;;  %v7607_v32 = vld [vmem:[%s9238_s5 + $0x60] ss:$8 sps:$4 sm:$0xff]  }
0x1183   : > { %3515 = vmatprep.subr.bf16.mxu1 %v7609_v10  ;;  %v6507_v54 = vld [vmem:[%s9237_s4 + $0x1] ss:$0 sm:$0xff] }
0x1184   : > { %v3288_v60 = vmul.f32 %v3284_v59, %v3246_v41  ;;  %v7610_v41 = vld [vmem:[%s9238_s5 + $0x70] ss:$8 sps:$4 sm:$0xff]  }
0x1186   : > { %v3291_v62 = vpack.c.bf16 %v3288_v60, %v3287_v58  ;;  %3516 = vmatpush1.bf16.msra.mxu1 %v7607_v32 }
0x1187   : > { %v7734_v0 = vpop.eup %7733  ;;  %3517 = vmatprep.subr.bf16.mxu1 %v7612_v2 }
0x1188   : > { %v3285_v61 = vmul.f32 %v7734_v0, %v3250_v39  ;;  %7161 = vmatprep.mubr.bf16.mxu0 %v3291_v62 }
0x1189   : > { %v7736_v1 = vpop.eup %7735 }
0x118a   : > { %v3289_v27 = vmul.f32 %v3285_v61, %v3252_v26  ;;  %v3286_v5 = vmul.f32 %v7736_v1, %v3254_v36  ;;  %3518 = vmatpush1.bf16.msra.mxu1 %v7610_v41 }
0x118b   : > { %7490 = vmatprep.subr.msk.bf16.mxu1 %vm8018_vm6, %v7857_v47 }
0x118c   : > { %v3290_v9 = vmul.f32 %v3286_v5, %v3256_v23 }
0x118e   : > { %v3292_v15 = vpack.c.bf16 %v3290_v9, %v3289_v27 }
0x1190   : > { %7162 = vmatmul.mubr.bf16.vlgmr.msra.gmra.mrb[68].mxu0 %v3292_v15 }
0x1191   : > { %7508 = vmatpush3.bf16.msk.msra.mxu0 %vm8018_vm6, %v7857_v47 }
0x1192   : > { %7510 = vmatprep.subr.msk.bf16.mxu0 %vm8025_vm7, %v7857_v47 }
0x1195   : > { %7512 = vmatpush3.bf16.msk.msra.mxu0 %vm8025_vm7, %v7857_v47 }
0x1196   : > { %7514 = vmatprep.subr.msk.bf16.mxu0 %vm8040_vm10, %v7857_v47 }
0x1199   : > { %7516 = vmatpush3.bf16.msk.msra.mxu0 %vm8040_vm10, %v7857_v47 }
0x119a   : > { %7518 = vmatprep.subr.msk.bf16.mxu0 %vm8052_vm13, %v7857_v47 }
0x119d   : > { %7520 = vmatpush3.bf16.msk.msra.mxu0 %vm8052_vm13, %v7857_v47 }
0x119e   : > { %7221 = vmatprep.subr.bf16.mxu0 %v7858_v13 }
0x1263   : > { %v7163_v29 = vpop.f32.mrb[68].mxu0 }
0x1264   : > { %v3391_v20 = vpop.f32.mrb[69].mxu0  ;;  %v8633_v4 = vadd.f32 %v7163_v29, %v8528_v17 }
0x1265   : > { %v8636_v40 = vadd.f32 %v3391_v20, %v8525_v21  ;;  %v7164_v49 = vpop.f32.mrb[70].mxu0 }
0x1266   : > { %v3394_v50 = vpop.f32.mrb[71].mxu0  ;;  %v8639_v22 = vadd.f32 %v7164_v49, %v8539_v18  ;;  %v3414_v21 = vmul.f32 %v8633_v4, %v8633_v4 }
0x1267   : > { %v8642_v12 = vadd.f32 %v3394_v50, %v8531_v11  ;;  %v3412_v8 = vmul.f32 %v8636_v40, %v8636_v40 }
0x1268   : > { %v3415_v18 = vmul.f32 %v8639_v22, %v8639_v22  ;;  %v3422_v11 = vsel %vm641_vm1, %v3414_v21, 0.0  ;;  %v7845_v21 = vld [vmem:[%s9235_s2] sm:$0xff] }
0x1269   : > { %v3416_v57 = vsel %vm641_vm1, %v3412_v8, 0.0  ;;  %v3413_v17 = vmul.f32 %v8642_v12, %v8642_v12 }
0x126a   : > { %3417 = vadd.xlane.f32.xlu1 %v3416_v57  ;;  %v3425_v33 = vsel %vm641_vm1, %v3415_v18, 0.0  ;;  %v7846_v18 = vld [vmem:[%s9236_s3] sm:$0xff] }
0x126b   : > { %v3419_v19 = vsel %vm641_vm1, %v3413_v17, 0.0 }
0x126c   : > { %3420 = vadd.xlane.f32.xlu0 %v3419_v19 }
0x126e   : > { %3423 = vadd.xlane.f32.xlu1 %v3422_v11 }
0x1270   : > { %3426 = vadd.xlane.f32.xlu0 %v3425_v33 }
0x12f7   : > { %v3418_v39 = vpop.xlane.xlu1 %3417 }
0x12f8   : > { %v3428_v28 = vmul.f32 0.015625, %v3418_v39 }
0x12f9   : > { %v3421_v26 = vpop.xlane.xlu0 %3420 }
0x12fa   : > { %v3432_v36 = vadd.f32 1e-06, %v3428_v28  ;;  %v3429_v34 = vmul.f32 0.015625, %v3421_v26 }
0x12fb   : > { %v3424_v23 = vpop.xlane.xlu1 %3423 }
0x12fc   : > { %7737 = vrsqrt.f32 %v3432_v36  ;;  %v3433_v14 = vadd.f32 1e-06, %v3429_v34  ;;  %v3430_v42 = vmul.f32 0.015625, %v3424_v23 }
0x12fd   : > { %v3427_v35 = vpop.xlane.xlu0 %3426 }
0x12fe   : > { %7739 = vrsqrt.f32 %v3433_v14  ;;  %v3434_v37 = vadd.f32 1e-06, %v3430_v42  ;;  %v3431_v38 = vmul.f32 0.015625, %v3427_v35 }
0x1300   : > { %v3435_v43 = vadd.f32 1e-06, %v3431_v38  ;;  %7741 = vrsqrt.f32 %v3434_v37 }
0x1302   : > { %7743 = vrsqrt.f32 %v3435_v43 }
0x1306   : > { %v7738_v24 = vpop.eup %7737 }
0x1307   : > { %v3440_v45 = vmul.f32 %v7738_v24, %v8636_v40 }
0x1308   : > { %v7740_v53 = vpop.eup %7739 }
0x1309   : > { %v3441_v55 = vmul.f32 %v7740_v53, %v8642_v12  ;;  %v3450_v59 = vmul.f32 %v6507_v54, %v3440_v45 }
0x130a   : > { %v7742_v58 = vpop.eup %7741 }
0x130b   : > { %v3451_v60 = vmul.f32 %v6507_v54, %v3441_v55  ;;  %v3442_v1 = vmul.f32 %v7742_v58, %v8633_v4 }
0x130c   : > { %v7744_v62 = vpop.eup %7743 }
0x130d   : > { %v3454_v0 = vpack.c.bf16 %v3451_v60, %v3450_v59  ;;  %v3443_v61 = vmul.f32 %v7744_v62, %v8639_v22  ;;  %v3452_v5 = vmul.f32 %v6507_v54, %v3442_v1 }
0x130f   : > { %6524 = vmatmul.mubr.msk.bf16.vlgmr.msra.gmra.mrb[88].mxu1 %vm641_vm1, %v3454_v0  ;;  %v3453_v27 = vmul.f32 %v6507_v54, %v3443_v61 }
0x1310   : > { %3553 = vmatprep.mubr.bf16.mxu1 %v7856_v30  ;;  %7492 = vmatpush3.bf16.msk.msra.mxu1 %vm8018_vm6, %v7857_v47 }
0x1311   : > { %7494 = vmatprep.subr.msk.bf16.mxu1 %vm8025_vm7, %v7857_v47  ;;  %v3455_v9 = vpack.c.bf16 %v3453_v27, %v3452_v5 }
0x1314   : > { %7496 = vmatpush3.bf16.msk.msra.mxu1 %vm8025_vm7, %v7857_v47 }
0x1315   : > { %7498 = vmatprep.subr.msk.bf16.mxu1 %vm8040_vm10, %v7857_v47 }
0x1317   : > { %6525 = vmatmul.mubr.msk.bf16.gmra.mrb[92].mxu1 %vm641_vm1, %v3455_v9 }
0x1318   : > { %7500 = vmatpush3.bf16.msk.msra.mxu1 %vm8040_vm10, %v7857_v47 }
0x1319   : > { %7502 = vmatprep.subr.msk.bf16.mxu1 %vm8052_vm13, %v7857_v47 }
0x131c   : > { %7504 = vmatpush3.bf16.msk.msra.mxu1 %vm8052_vm13, %v7857_v47 }
0x131d   : > { %7209 = vmatprep.subr.bf16.mxu1 %v7858_v13 }
0x13e2   : > { %v3545_v46 = vpop.f32.mrb[88].mxu1 }
0x13e3   : > { %3661 = vrot.lane.b32.xlu1 %v3545_v46, %s7859_s17  ;;  %v8716_v48 = vpop.f32.mrb[89].mxu1  ;;  %7181 = vmatprep.mubr.msk.f32.mxu1 %vm641_vm1, %v3545_v46  ;;  %v3762_v25 = vmul.f32 %v7845_v21, %v3545_v46  ;;  %v3774_v53 = vmul.f32 %v3545_v46, %v8148_v3 }
0x13e4   : > { %v3549_v15 = vpop.f32.mrb[90].mxu1 }
0x13e5   : > { %3663 = vrot.lane.b32.xlu0 %v3549_v15, %s7859_s17  ;;  %v8720_v51 = vpop.f32.mrb[91].mxu1  ;;  %7182 = vmatmul.mubr.msk.f32.vlgmr.msra.gmra.mrb[96].mxu1 %vm641_vm1, %v3549_v15  ;;  %v3763_v19 = vmul.f32 %v7845_v21, %v3549_v15  ;;  %v3775_v24 = vmul.f32 %v3549_v15, %v8148_v3 }
0x13ea   : > { %v3555_v29 = vpop.f32.mrb[92].mxu1 }
0x13eb   : > { %3665 = vrot.lane.b32.xlu1 %v3555_v29, %s7859_s17  ;;  %v8724_v47 = vpop.f32.mrb[93].mxu1  ;;  %7184 = vmatprep.mubr.msk.f32.mxu1 %vm641_vm1, %v3555_v29  ;;  %v3764_v39 = vmul.f32 %v7845_v21, %v3555_v29  ;;  %v3776_v61 = vmul.f32 %v3555_v29, %v8148_v3 }
0x13ec   : > { %v3559_v52 = vpop.f32.mrb[94].mxu1 }
0x13ed   : > { %v8727_v20 = vpop.f32.mrb[95].mxu1  ;;  %7185 = vmatmul.mubr.msk.f32.gmra.mrb[98].mxu1 %vm641_vm1, %v3559_v52  ;;  %v3765_v32 = vmul.f32 %v7845_v21, %v3559_v52  ;;  %v3777_v62 = vmul.f32 %v3559_v52, %v8148_v3 }
0x13ee   : > { %7211 = vmatprep.mubr.msk.bf16.mxu1 %vm7860_vm15, %v7858_v13 }
0x13ef   : > { %3667 = vrot.lane.b32.xlu1 %v3559_v52, %s7859_s17 }
0x1455   : > { %v3662_v49 = vpop.permute.xlu1 %3661 }
0x1456   : > { %7203 = vmatprep.mubr.msk.f32.mxu0 %vm641_vm1, %v3662_v49 }
0x1457   : > { %v3664_v50 = vpop.permute.xlu0 %3663 }
0x1458   : > { %7204 = vmatmul.mubr.msk.f32.vlgmr.msra.gmra.mrb[72].mxu0 %vm641_vm1, %v3664_v50 }
0x145d   : > { %v3666_v8 = vpop.permute.xlu1 %3665 }
0x145e   : > { %7206 = vmatprep.mubr.msk.f32.mxu0 %vm641_vm1, %v3666_v8 }
0x1461   : > { %v3668_v57 = vpop.permute.xlu1 %3667 }
0x1462   : > { %7207 = vmatmul.mubr.msk.f32.gmra.mrb[74].mxu0 %vm641_vm1, %v3668_v57 }
0x1463   : > { %7223 = vmatprep.mubr.msk.bf16.mxu0 %vm7860_vm15, %v7858_v13 }
0x14b8   : > { %v7183_v17 = vpop.f32.mrb[96].mxu1 }
0x14b9   : > { %v3767_v11 = vmul.f32 %v7846_v18, %v7183_v17  ;;  %v3642_v33 = vpop.f32.mrb[97].mxu1  ;;  %v8785_v17 = vpack.c.bf16 %v8716_v48, %v8716_v48 }
0x14ba   : > { %v3766_v6 = vmul.f32 %v7846_v18, %v3642_v33 }
0x14bb   : > { %v3771_v16 = vadd.f32 %v3767_v11, %v3763_v19  ;;  %v4079_v48 = vsel %vm1309_vm14, %v8785_v17, 0  ;;  %v8805_v11 = vpack.c.bf16 %v8720_v51, %v8720_v51 }
0x14bc   : > { %v3770_v31 = vadd.f32 %v3766_v6, %v3762_v25 }
0x14bd   : > { %v8787_v21 = vpack.c.bf16 %v3771_v16, %v3771_v16  ;;  %v4125_v25 = vsel %vm1309_vm14, %v8805_v11, 0 }
0x14be   : > { %v8773_v29 = vpack.c.bf16 %v3770_v31, %v3770_v31 }
0x14c0   : > { %v7186_v10 = vpop.f32.mrb[98].mxu1 }
0x14c1   : > { %v3769_v2 = vmul.f32 %v7846_v18, %v7186_v10  ;;  %v3652_v41 = vpop.f32.mrb[99].mxu1 }
0x14c2   : > { %v3768_v28 = vmul.f32 %v7846_v18, %v3652_v41 }
0x14c3   : > { %v8745_v26 = vadd.f32 %v3769_v2, %v3765_v32 }
0x14c4   : > { %v3772_v36 = vadd.f32 %v3768_v28, %v3764_v39 }
0x14c5   : > { %v8810_v33 = vpack.c.bf16 %v8745_v26, %v8745_v26 }
0x14c6   : > { %v8789_v19 = vpack.c.bf16 %v3772_v36, %v3772_v36 }
0x152b   : > { %v7205_v34 = vpop.f32.mrb[72].mxu0 }
0x152c   : > { %v3779_v23 = vmul.f32 %v7846_v18, %v7205_v34  ;;  %v3743_v14 = vpop.f32.mrb[73].mxu0 }
0x152d   : > { %v3778_v42 = vmul.f32 %v7846_v18, %v3743_v14 }
0x152e   : > { %3788 = vrot.lane.b32.xlu0 %v3779_v23, %s7859_s17 }
0x152f   : > { %3786 = vrot.lane.b32.xlu1 %v3778_v42, %s7859_s17 }
0x1535   : > { %v7208_v35 = vpop.f32.mrb[74].mxu0 }
0x1536   : > { %v3781_v37 = vmul.f32 %v7846_v18, %v7208_v35  ;;  %v3753_v38 = vpop.f32.mrb[75].mxu0 }
0x1537   : > { %v3780_v43 = vmul.f32 %v7846_v18, %v3753_v38 }
0x1538   : > { %3792 = vrot.lane.b32.xlu0 %v3781_v37, %s7859_s17 }
0x1539   : > { %3790 = vrot.lane.b32.xlu1 %v3780_v43, %s7859_s17 }
0x15a0   : > { %v3789_v45 = vpop.permute.xlu0 %3788 }
0x15a1   : > { %v3799_v54 = vadd.f32 %v3789_v45, %v3775_v24  ;;  %v3787_v55 = vpop.permute.xlu1 %3786 }
0x15a2   : > { %v3798_v58 = vadd.f32 %v3787_v55, %v3774_v53 }
0x15a3   : > { %v8753_v59 = vpack.c.bf16 %v3799_v54, %v3799_v54 }
0x15a4   : > { %v8755_v60 = vpack.c.bf16 %v3798_v58, %v3798_v58 }
0x15a5   : > { %3873 = vrot.lane.b32.xlu0 %v8753_v59, %s7859_s17 }
0x15a6   : > { %3824 = vrot.lane.b32.xlu1 %v8755_v60, %s7859_s17 }
0x15aa   : > { %v3793_v0 = vpop.permute.xlu0 %3792 }
0x15ab   : > { %v3801_v1 = vadd.f32 %v3793_v0, %v3777_v62  ;;  %v3791_v27 = vpop.permute.xlu1 %3790 }
0x15ac   : > { %v3800_v5 = vadd.f32 %v3791_v27, %v3776_v61 }
0x15ad   : > { %v8763_v9 = vpack.c.bf16 %v3801_v1, %v3801_v1 }
0x15ae   : > { %v8765_v46 = vpack.c.bf16 %v3800_v5, %v3800_v5 }
0x15af   : > { %3971 = vrot.lane.b32.xlu0 %v8763_v9, %s7859_s17 }
0x15b0   : > { %3922 = vrot.lane.b32.xlu1 %v8765_v46, %s7859_s17 }
0x1617   : > { %v3874_v3 = vpop.permute.xlu0 %3873 }
0x1618   : > { %v3825_v15 = vpop.permute.xlu1 %3824  ;;  %v3879_v52 = vsel %vm1055_vm0, %v3874_v3, 0 }
0x1619   : > { %v3830_v49 = vsel %vm1055_vm0, %v3825_v15, 0 }
0x161a   : > { %7210 = vmatpush3.bf16.xpose.msra.mxu1 %v3830_v49 }
0x161b   : > { %7215 = vmatprep.subr.bf16.mxu1 %v7858_v13 }
0x1621   : > { %7212 = vmatmul.mubr.msk.bf16.vlgmr.msra.gmra.mrb[100].mxu1 %vm1055_vm0, %v8773_v29  ;;  %v3972_v57 = vpop.permute.xlu0 %3971 }
0x1622   : > { %7216 = vmatpush3.bf16.xpose.msra.mxu1 %v3879_v52  ;;  %v3923_v50 = vpop.permute.xlu1 %3922  ;;  %7217 = vmatprep.mubr.msk.bf16.mxu1 %vm7860_vm15, %v7858_v13  ;;  %v3977_v18 = vsel %vm1055_vm0, %v3972_v57, 0 }
0x1623   : > { %v3928_v8 = vsel %vm1055_vm0, %v3923_v50, 0  ;;  %7227 = vmatprep.subr.bf16.mxu1 %v7858_v13 }
0x1624   : > { %7222 = vmatpush3.bf16.xpose.msra.mxu0 %v3928_v8 }
0x1625   : > { %7233 = vmatprep.subr.bf16.mxu0 %v7858_v13 }
0x1629   : > { %7218 = vmatmul.mubr.msk.bf16.vlgmr.msra.gmra.mrb[104].mxu1 %vm1055_vm0, %v8787_v21 }
0x162a   : > { %7228 = vmatpush3.bf16.xpose.msra.mxu1 %v3977_v18  ;;  %7229 = vmatprep.mubr.msk.bf16.mxu1 %vm7860_vm15, %v7858_v13 }
0x162b   : > { %7224 = vmatmul.mubr.msk.bf16.vlgmr.msra.gmra.mrb[76].mxu0 %vm1055_vm0, %v8789_v19  ;;  %7239 = vmatprep.subr.bf16.mxu1 %v7858_v13 }
0x162c   : > { %7234 = vmatpush3.bf16.msra.mxu0 %v4079_v48  ;;  %7235 = vmatprep.mubr.msk.bf16.mxu0 %vm7860_vm15, %v7858_v13 }
0x162d   : > { %7245 = vmatprep.subr.bf16.mxu0 %v7858_v13 }
0x1631   : > { %7230 = vmatmul.mubr.msk.bf16.vlgmr.msra.gmra.mrb[108].mxu1 %vm1055_vm0, %v8810_v33 }
0x1632   : > { %7240 = vmatpush3.bf16.msra.mxu1 %v4125_v25  ;;  %7241 = vmatprep.mubr.msk.bf16.mxu1 %vm7860_vm15, %v7858_v13 }
0x1633   : > { %7251 = vmatprep.subr.bf16.mxu1 %v7858_v13 }
0x16f4   : > { %v3866_v51 = vpop.f32.mrb[100].mxu1 }
0x16f5   : > { %v4019_v6 = vmul.f32 0.25, %v3866_v51  ;;  %v7213_v16 = vpop.f32.mrb[101].mxu1 }
0x16f6   : > { %v3869_v31 = vpop.f32.mrb[102].mxu1 }
0x16f7   : > { %v4023_v10 = vadd.f32 %v4019_v6, %v8214_v44  ;;  %v7214_v32 = vpop.f32.mrb[103].mxu1 }
0x16f9   : > { %v4027_v2 = vsel %vm1257_vm2, %v4023_v10, -inf }
0x16fa   : > { %4028 = vmax.xlane.f32.xlu1 %v4027_v2 }
0x16fc   : > { %v3915_v41 = vpop.f32.mrb[104].mxu1 }
0x16fd   : > { %v4020_v39 = vmul.f32 0.25, %v3915_v41  ;;  %v7219_v28 = vpop.f32.mrb[105].mxu1 }
0x16fe   : > { %v3918_v26 = vpop.f32.mrb[106].mxu1  ;;  %v3964_v36 = vpop.f32.mrb[76].mxu0  ;;  %v8849_v28 = vpack.c.bf16 %v8724_v47, %v8724_v47  ;;  %v8859_v47 = vpack.c.bf16 %v8727_v20, %v8727_v20 }
0x16ff   : > { %v4024_v34 = vadd.f32 %v4020_v39, %v8219_v56  ;;  %v4021_v23 = vmul.f32 0.25, %v3964_v36  ;;  %v7220_v14 = vpop.f32.mrb[107].mxu1  ;;  %v7225_v42 = vpop.f32.mrb[77].mxu0 }
0x1700   : > { %v3967_v35 = vpop.f32.mrb[78].mxu0 }
0x1701   : > { %v4025_v37 = vadd.f32 %v4021_v23, %v8224_v63  ;;  %v7226_v38 = vpop.f32.mrb[79].mxu0  ;;  %v4030_v43 = vsel %vm1257_vm2, %v4024_v34, -inf  ;;  %v4171_v23 = vsel %vm1309_vm14, %v8849_v28, 0 }
0x1702   : > { %4031 = vmax.xlane.f32.xlu0 %v4030_v43 }
0x1703   : > { %v4033_v54 = vsel %vm1257_vm2, %v4025_v37, -inf }
0x1704   : > { %v4013_v24 = vpop.f32.mrb[108].mxu1 }
0x1705   : > { %v4022_v45 = vmul.f32 0.25, %v4013_v24  ;;  %v7231_v53 = vpop.f32.mrb[109].mxu1 }
0x1706   : > { %v4016_v55 = vpop.f32.mrb[110].mxu1  ;;  %4034 = vmax.xlane.f32.xlu0 %v4033_v54 }
0x1707   : > { %v4026_v58 = vadd.f32 %v4022_v45, %v8229_v7  ;;  %v7232_v62 = vpop.f32.mrb[111].mxu1 }
0x1709   : > { %v4036_v0 = vsel %vm1257_vm2, %v4026_v58, -inf }
0x170a   : > { %4037 = vmax.xlane.f32.xlu0 %v4036_v0 }
0x1787   : > { %v4029_v61 = vpop.xlane.xlu1 %4028 }
0x1788   : > { %v4039_v1 = vsub.f32 %v4023_v10, %v4029_v61 }
0x178a   : > { %v4043_v27 = vmul.f32 1.442695, %v4039_v1 }
0x178c   : > { %7745 = vpow2.f32 %v4043_v27 }
0x178f   : > { %v4032_v5 = vpop.xlane.xlu0 %4031 }
0x1790   : > { %v4040_v15 = vsub.f32 %v4024_v34, %v4032_v5 }
0x1792   : > { %v4045_v49 = vmul.f32 1.442695, %v4040_v15 }
0x1793   : > { %v4035_v3 = vpop.xlane.xlu0 %4034 }
0x1794   : > { %7747 = vpow2.f32 %v4045_v49  ;;  %v4041_v16 = vsub.f32 %v4025_v37, %v4035_v3  ;;  %v4217_v37 = vsel %vm1309_vm14, %v8859_v47, 0 }
0x1796   : > { %v7746_v52 = vpop.eup %7745  ;;  %v4047_v31 = vmul.f32 1.442695, %v4041_v16 }
0x1797   : > { %v4038_v50 = vpop.xlane.xlu0 %4037  ;;  %v4051_v8 = vsel %vm1257_vm2, %v7746_v52, 0.0 }
0x1798   : > { %v4042_v57 = vsub.f32 %v4026_v58, %v4038_v50  ;;  %4052 = vadd.xlane.f32.xlu1 %v4051_v8 }
0x179a   : > { %v4049_v18 = vmul.f32 1.442695, %v4042_v57 }
0x179c   : > { %7749 = vpow2.f32 %v4049_v18 }
0x179d   : > { %7751 = vpow2.f32 %v4047_v31 }
0x179e   : > { %v7748_v48 = vpop.eup %7747 }
0x179f   : > { %v4054_v25 = vsel %vm1257_vm2, %v7748_v48, 0.0 }
0x17a0   : > { %4055 = vadd.xlane.f32.xlu0 %v4054_v25 }
0x17a6   : > { %v7750_v51 = vpop.eup %7749 }
0x17a7   : > { %v4060_v6 = vsel %vm1257_vm2, %v7750_v51, 0.0  ;;  %v7752_v10 = vpop.eup %7751 }
0x17a8   : > { %4061 = vadd.xlane.f32.xlu0 %v4060_v6  ;;  %v4057_v32 = vsel %vm1257_vm2, %v7752_v10, 0.0 }
0x17a9   : > { %4264 = vrot.lane.b32.xlu1 %v8755_v60, %s7861_s25 }
0x17be   : > { %4315 = vrot.lane.b32.xlu0 %v8753_v59, %s7861_s25 }
0x17c2   : > { %4417 = vrot.lane.b32.xlu0 %v8763_v9, %s7861_s25 }
0x17c6   : > { %4415 = vrot.lane.b32.xlu0 %v8810_v33, %s7862_s26 }
0x17cd   : > { %4058 = vadd.xlane.f32.xlu1 %v4057_v32 }
0x17de   : > { %4262 = vrot.lane.b32.xlu1 %v8773_v29, %s7862_s26 }
0x17e2   : > { %4313 = vrot.lane.b32.xlu1 %v8787_v21, %s7862_s26 }
0x17e6   : > { %4366 = vrot.lane.b32.xlu1 %v8765_v46, %s7861_s25 }
0x17ea   : > { %4364 = vrot.lane.b32.xlu1 %v8789_v19, %s7862_s26 }
0x1825   : > { %v4053_v2 = vpop.xlane.xlu1 %4052 }
0x1826   : > { %7753 = vrcp.f32 %v4053_v2 }
0x1829   : > { %v4265_v53 = vpop.permute.xlu1 %4264 }
0x182a   : > { %v4270_v5 = vsel %vm1055_vm0, %v4265_v53, 0 }
0x182d   : > { %v4056_v41 = vpop.xlane.xlu0 %4055 }
0x182e   : > { %7755 = vrcp.f32 %v4056_v41 }
0x1830   : > { %v7754_v39 = vpop.eup %7753 }
0x1831   : > { %v4067_v26 = vmul.f32 %v7754_v39, %v7746_v52 }
0x1833   : > { %v4071_v36 = vpack.c.bf16 %v4067_v26, %v4067_v26 }
0x1835   : > { %v4062_v34 = vpop.xlane.xlu0 %4061  ;;  %7236 = vmatmul.mubr.msk.bf16.vlgmr.msra.gmra.mrb[80].mxu0 %vm1257_vm2, %v4071_v36 }
0x1836   : > { %7757 = vrcp.f32 %v4062_v34  ;;  %7246 = vmatpush3.bf16.msra.mxu0 %v4171_v23  ;;  %7247 = vmatprep.mubr.msk.bf16.mxu0 %vm7860_vm15, %v7858_v13 }
0x1837   : > { %7257 = vmatprep.subr.bf16.mxu0 %v7858_v13 }
0x1838   : > { %v7756_v14 = vpop.eup %7755 }
0x1839   : > { %v4068_v42 = vmul.f32 %v7756_v14, %v7748_v48  ;;  %v4316_v24 = vpop.permute.xlu0 %4315 }
0x183a   : > { %v4321_v20 = vsel %vm1055_vm0, %v4316_v24, 0 }
0x183b   : > { %v4072_v35 = vpack.c.bf16 %v4068_v42, %v4068_v42 }
0x183d   : > { %7242 = vmatmul.mubr.msk.bf16.vlgmr.msra.gmra.mrb[112].mxu1 %vm1257_vm2, %v4072_v35  ;;  %v4418_v58 = vpop.permute.xlu0 %4417 }
0x183e   : > { %7252 = vmatpush3.bf16.msra.mxu1 %v4217_v37  ;;  %7253 = vmatprep.mubr.msk.bf16.mxu1 %vm7860_vm15, %v7858_v13  ;;  %v4423_v0 = vsel %vm1055_vm0, %v4418_v58, 0 }
0x183f   : > { %7263 = vmatprep.subr.bf16.mxu1 %v7858_v13 }
0x1840   : > { %v7758_v38 = vpop.eup %7757 }
0x1841   : > { %v4070_v43 = vmul.f32 %v7758_v38, %v7750_v51  ;;  %v4416_v15 = vpop.permute.xlu0 %4415 }
0x1843   : > { %v4074_v45 = vpack.c.bf16 %v4070_v43, %v4070_v43 }
0x1845   : > { %7254 = vmatmul.mubr.msk.bf16.vlgmr.msra.gmra.mrb[116].mxu1 %vm1257_vm2, %v4074_v45 }
0x1846   : > { %7265 = vmatprep.mubr.msk.bf16.mxu1 %vm7860_vm15, %v7858_v13 }
0x1847   : > { %7264 = vmatpush3.bf16.xpose.msra.mxu1 %v4321_v20 }
0x1848   : > { %7275 = vmatprep.subr.bf16.mxu1 %v7858_v13 }
0x185a   : > { %v4059_v54 = vpop.xlane.xlu1 %4058 }
0x185b   : > { %7759 = vrcp.f32 %v4059_v54 }
0x185e   : > { %v4263_v55 = vpop.permute.xlu1 %4262 }
0x1862   : > { %v4314_v62 = vpop.permute.xlu1 %4313 }
0x1863   : > { %7266 = vmatmul.mubr.msk.bf16.vlgmr.msra.gmra.mrb[120].mxu1 %vm1055_vm0, %v4314_v62 }
0x1864   : > { %7276 = vmatpush3.bf16.xpose.msra.mxu1 %v4423_v0  ;;  %7277 = vmatprep.mubr.msk.bf16.mxu1 %vm7860_vm15, %v7858_v13 }
0x1865   : > { %v7760_v61 = vpop.eup %7759  ;;  %7287 = vmatprep.subr.bf16.mxu1 %v7858_v13 }
0x1866   : > { %v4069_v1 = vmul.f32 %v7760_v61, %v7752_v10  ;;  %v4367_v49 = vpop.permute.xlu1 %4366 }
0x1867   : > { %v4372_v3 = vsel %vm1055_vm0, %v4367_v49, 0 }
0x1868   : > { %v4073_v27 = vpack.c.bf16 %v4069_v1, %v4069_v1 }
0x186a   : > { %7248 = vmatmul.mubr.msk.bf16.vlgmr.msra.gmra.mrb[84].mxu0 %vm1257_vm2, %v4073_v27  ;;  %v4365_v52 = vpop.permute.xlu1 %4364 }
0x186b   : > { %7258 = vmatpush3.bf16.xpose.msra.mxu0 %v4270_v5  ;;  %7278 = vmatmul.mubr.msk.bf16.vlgmr.msra.gmra.mrb[124].mxu1 %vm1055_vm0, %v4416_v15 }
0x186c   : > { %7259 = vmatprep.mubr.msk.bf16.mxu0 %vm7860_vm15, %v7858_v13  ;;  %7269 = vmatprep.subr.bf16.mxu0 %v7858_v13 }
0x186d   : > { %7289 = vmatprep.mubr.msk.bf16.mxu1 %vm7860_vm15, %v7858_v13 }
0x1872   : > { %7260 = vmatmul.mubr.msk.bf16.vlgmr.msra.gmra.mrb[88].mxu0 %vm1055_vm0, %v4263_v55 }
0x1873   : > { %7270 = vmatpush3.bf16.xpose.msra.mxu0 %v4372_v3  ;;  %7271 = vmatprep.mubr.msk.bf16.mxu0 %vm7860_vm15, %v7858_v13 }
0x1874   : > { %7281 = vmatprep.subr.bf16.mxu0 %v7858_v13 }
0x187a   : > { %7272 = vmatmul.mubr.msk.bf16.vlgmr.msra.gmra.mrb[92].mxu0 %vm1055_vm0, %v4365_v52 }
0x187b   : > { %7283 = vmatprep.mubr.msk.bf16.mxu0 %vm7860_vm15, %v7858_v13 }
0x1908   : > { %v8893_v50 = vpop.f32.mrb[80].mxu0 }
0x1909   : > { %v7237_v8 = vpop.f32.mrb[81].mxu0 }
0x190a   : > { %v4118_v57 = vpop.f32.mrb[82].mxu0 }
0x190b   : > { %v7238_v18 = vpop.f32.mrb[83].mxu0 }
0x1910   : > { %v8895_v48 = vpop.f32.mrb[112].mxu1 }
0x1911   : > { %v4259_v25 = vpack.c.bf16 %v8895_v48, %v8893_v50  ;;  %v7243_v51 = vpop.f32.mrb[113].mxu1 }
0x1912   : > { %v4164_v6 = vpop.f32.mrb[114].mxu1 }
0x1913   : > { %v7244_v16 = vpop.f32.mrb[115].mxu1 }
0x1918   : > { %v8899_v31 = vpop.f32.mrb[116].mxu1 }
0x1919   : > { %v7255_v10 = vpop.f32.mrb[117].mxu1 }
0x191a   : > { %v4256_v32 = vpop.f32.mrb[118].mxu1 }
0x191b   : > { %v7256_v2 = vpop.f32.mrb[119].mxu1 }
0x1936   : > { %v4357_v41 = vpop.f32.mrb[120].mxu1 }
0x1937   : > { %v4466_v39 = vmul.f32 0.25, %v4357_v41  ;;  %v7267_v26 = vpop.f32.mrb[121].mxu1 }
0x1938   : > { %v4360_v36 = vpop.f32.mrb[122].mxu1 }
0x1939   : > { %v4470_v34 = vadd.f32 %v4466_v39, %v8219_v56  ;;  %v7268_v23 = vpop.f32.mrb[123].mxu1 }
0x193b   : > { %v4476_v14 = vsel %vm1257_vm2, %v4470_v34, -inf }
0x193c   : > { %4477 = vmax.xlane.f32.xlu0 %v4476_v14 }
0x193d   : > { %v8903_v42 = vpop.f32.mrb[84].mxu0 }
0x193e   : > { %v4260_v35 = vpack.c.bf16 %v8899_v31, %v8903_v42  ;;  %v7249_v37 = vpop.f32.mrb[85].mxu0  ;;  %v4459_v38 = vpop.f32.mrb[124].mxu1 }
0x193f   : > { %v4210_v43 = vpop.f32.mrb[86].mxu0  ;;  %v7279_v24 = vpop.f32.mrb[125].mxu1  ;;  %v4468_v5 = vmul.f32 0.25, %v4459_v38 }
0x1940   : > { %v7250_v45 = vpop.f32.mrb[87].mxu0  ;;  %v4462_v20 = vpop.f32.mrb[126].mxu1 }
0x1941   : > { %v7280_v53 = vpop.f32.mrb[127].mxu1  ;;  %v4472_v57 = vadd.f32 %v4468_v5, %v8229_v7 }
0x1943   : > { %v4482_v51 = vsel %vm1257_vm2, %v4472_v57, -inf }
0x1945   : > { %v4306_v54 = vpop.f32.mrb[88].mxu0 }
0x1946   : > { %v4465_v55 = vmul.f32 0.25, %v4306_v54  ;;  %v7261_v58 = vpop.f32.mrb[89].mxu0 }
0x1947   : > { %v4309_v62 = vpop.f32.mrb[90].mxu0 }
0x1948   : > { %v4469_v0 = vadd.f32 %v4465_v55, %v8214_v44  ;;  %v7262_v61 = vpop.f32.mrb[91].mxu0 }
0x194a   : > { %v4473_v1 = vsel %vm1257_vm2, %v4469_v0, -inf }
0x194b   : > { %4474 = vmax.xlane.f32.xlu1 %v4473_v1 }
0x194d   : > { %v4408_v27 = vpop.f32.mrb[92].mxu0 }
0x194e   : > { %v4467_v15 = vmul.f32 0.25, %v4408_v27  ;;  %v7273_v49 = vpop.f32.mrb[93].mxu0 }
0x194f   : > { %v4411_v3 = vpop.f32.mrb[94].mxu0 }
0x1950   : > { %v4471_v52 = vadd.f32 %v4467_v15, %v8224_v63  ;;  %v7274_v8 = vpop.f32.mrb[95].mxu0 }
0x1952   : > { %v4479_v18 = vsel %vm1257_vm2, %v4471_v52, -inf }
0x1953   : > { %4480 = vmax.xlane.f32.xlu0 %v4479_v18 }
0x1957   : > { %4483 = vmax.xlane.f32.xlu0 %v4482_v51 }
0x195c   : > { %4522 = vrot.lane.b32.xlu1 %v8785_v17, %s7862_s26 }
0x19c9   : > { %v4478_v6 = vpop.xlane.xlu0 %4477 }
0x19ca   : > { %v4486_v16 = vsub.f32 %v4470_v34, %v4478_v6 }
0x19cc   : > { %v4491_v10 = vmul.f32 1.442695, %v4486_v16 }
0x19ce   : > { %7761 = vpow2.f32 %v4491_v10 }
0x19d8   : > { %v7762_v32 = vpop.eup %7761  ;;  %v4475_v2 = vpop.xlane.xlu1 %4474 }
0x19d9   : > { %v4485_v41 = vsub.f32 %v4469_v0, %v4475_v2  ;;  %v4500_v39 = vsel %vm1257_vm2, %v7762_v32, 0.0 }
0x19da   : > { %4501 = vadd.xlane.f32.xlu0 %v4500_v39 }
0x19db   : > { %v4489_v26 = vmul.f32 1.442695, %v4485_v41 }
0x19dc   : > { %v4523_v36 = vpop.permute.xlu1 %4522 }
0x19dd   : > { %7763 = vpow2.f32 %v4489_v26  ;;  %v4528_v23 = vsel %vm1309_vm14, %v4523_v36, 0 }
0x19de   : > { %7282 = vmatpush3.bf16.msra.mxu0 %v4528_v23 }
0x19df   : > { %7293 = vmatprep.subr.bf16.mxu0 %v7858_v13 }
0x19e0   : > { %v4481_v14 = vpop.xlane.xlu0 %4480 }
0x19e1   : > { %v4487_v37 = vsub.f32 %v4471_v52, %v4481_v14 }
0x19e3   : > { %v4493_v38 = vmul.f32 1.442695, %v4487_v37 }
0x19e4   : > { %v4484_v34 = vpop.xlane.xlu0 %4483 }
0x19e5   : > { %7765 = vpow2.f32 %v4493_v38  ;;  %v4488_v43 = vsub.f32 %v4472_v57, %v4484_v34 }
0x19e7   : > { %v7764_v24 = vpop.eup %7763  ;;  %v4495_v45 = vmul.f32 1.442695, %v4488_v43 }
0x19e8   : > { %v4497_v20 = vsel %vm1257_vm2, %v7764_v24, 0.0 }
0x19e9   : > { %7767 = vpow2.f32 %v4495_v45  ;;  %4498 = vadd.xlane.f32.xlu1 %v4497_v20  ;;  %v7613_v20 = vld [vmem:[%s9239_s6 + $0x28] sm:$0xff]  }
0x19ef   : > { %v7766_v53 = vpop.eup %7765 }
0x19f0   : > { %v4503_v54 = vsel %vm1257_vm2, %v7766_v53, 0.0 }
0x19f1   : > { %4504 = vadd.xlane.f32.xlu1 %v4503_v54 }
0x19f3   : > { %v7768_v55 = vpop.eup %7767 }
0x19f4   : > { %v4506_v58 = vsel %vm1257_vm2, %v7768_v55, 0.0 }
0x19f5   : > { %4507 = vadd.xlane.f32.xlu0 %v4506_v58 }
0x1a02   : > { %4620 = vrot.lane.b32.xlu1 %v8849_v28, %s7862_s26 }
0x1a06   : > { %4669 = vrot.lane.b32.xlu1 %v8859_v47, %s7862_s26 }
0x1a0a   : > { %4843 = vrot.lane.b32.xlu1 %v8755_v60, %s7863_s27 }
0x1a0b   : > { %4571 = vrot.lane.b32.xlu0 %v8805_v11, %s7862_s26 }
0x1a0e   : > { %4893 = vrot.lane.b32.xlu1 %v8753_v59, %s7863_s27 }
0x1a0f   : > { %4841 = vrot.lane.b32.xlu0 %v8773_v29, %s7864_s28 }
0x1a12   : > { %4943 = vrot.lane.b32.xlu1 %v8765_v46, %s7863_s27 }
0x1a13   : > { %4891 = vrot.lane.b32.xlu0 %v8787_v21, %s7864_s28 }
0x1a16   : > { %4941 = vrot.lane.b32.xlu1 %v8789_v19, %s7864_s28 }
0x1a17   : > { %4993 = vrot.lane.b32.xlu0 %v8763_v9, %s7863_s27 }
0x1a1b   : > { %4991 = vrot.lane.b32.xlu0 %v8810_v33, %s7864_s28 }
0x1a67   : > { %v4502_v62 = vpop.xlane.xlu0 %4501 }
0x1a76   : > { %v4499_v0 = vpop.xlane.xlu1 %4498 }
0x1a77   : > { %7769 = vrcp.f32 %v4499_v0 }
0x1a78   : > { %7771 = vrcp.f32 %v4502_v62 }
0x1a7e   : > { %v4505_v61 = vpop.xlane.xlu1 %4504 }
0x1a7f   : > { %7773 = vrcp.f32 %v4505_v61 }
0x1a81   : > { %v7770_v1 = vpop.eup %7769 }
0x1a82   : > { %v7772_v27 = vpop.eup %7771  ;;  %v4513_v5 = vmul.f32 %v7770_v1, %v7764_v24  ;;  %v4508_v15 = vpop.xlane.xlu0 %4507 }
0x1a83   : > { %v4621_v49 = vpop.permute.xlu1 %4620  ;;  %7775 = vrcp.f32 %v4508_v15  ;;  %v4514_v52 = vmul.f32 %v7772_v27, %v7762_v32 }
0x1a84   : > { %v4517_v3 = vpack.c.bf16 %v4513_v5, %v4513_v5  ;;  %v4626_v8 = vsel %vm1309_vm14, %v4621_v49, 0 }
0x1a85   : > { %v4518_v16 = vpack.c.bf16 %v4514_v52, %v4514_v52 }
0x1a86   : > { %v4572_v57 = vpop.permute.xlu0 %4571  ;;  %7284 = vmatmul.mubr.msk.bf16.vlgmr.msra.gmra.mrb[96].mxu0 %vm1257_vm2, %v4517_v3 }
0x1a87   : > { %v4577_v18 = vsel %vm1309_vm14, %v4572_v57, 0  ;;  %7294 = vmatpush3.bf16.msra.mxu0 %v4626_v8  ;;  %7295 = vmatprep.mubr.msk.bf16.mxu0 %vm7860_vm15, %v7858_v13  ;;  %v4670_v51 = vpop.permute.xlu1 %4669 }
0x1a88   : > { %7288 = vmatpush3.bf16.msra.mxu1 %v4577_v18  ;;  %v4675_v32 = vsel %vm1309_vm14, %v4670_v51, 0  ;;  %7305 = vmatprep.subr.bf16.mxu0 %v7613_v20 }
0x1a89   : > { %v7774_v6 = vpop.eup %7773  ;;  %7299 = vmatprep.subr.bf16.mxu1 %v7858_v13 }
0x1a8a   : > { %v4515_v10 = vmul.f32 %v7774_v6, %v7766_v53  ;;  %v4842_v14 = vpop.permute.xlu0 %4841  ;;  %v7614_v53 = vld [vmem:[%s9239_s6 + $0x20] sm:$0xff]  }
0x1a8b   : > { %7290 = vmatmul.mubr.msk.bf16.vlgmr.msra.gmra.mrb[128].mxu1 %vm1257_vm2, %v4518_v16  ;;  %v4844_v36 = vpop.permute.xlu1 %4843 }
0x1a8c   : > { %7300 = vmatpush3.bf16.msra.mxu1 %v4675_v32  ;;  %v4519_v2 = vpack.c.bf16 %v4515_v10, %v4515_v10  ;;  %7301 = vmatprep.mubr.msk.bf16.mxu1 %vm7860_vm15, %v7858_v13  ;;  %v4849_v23 = vsel %vm1055_vm0, %v4844_v36, 0 }
0x1a8d   : > { %v7776_v41 = vpop.eup %7775  ;;  %7317 = vmatprep.subr.bf16.mxu1 %v7858_v13 }
0x1a8e   : > { %v4516_v39 = vmul.f32 %v7776_v41, %v7768_v55  ;;  %7296 = vmatmul.mubr.msk.bf16.vlgmr.msra.gmra.mrb[100].mxu0 %vm1257_vm2, %v4519_v2  ;;  %v4892_v38 = vpop.permute.xlu0 %4891 }
0x1a8f   : > { %v4894_v37 = vpop.permute.xlu1 %4893  ;;  %7306 = vmatpush3.bf16.msra.mxu0 %v7613_v20 }
0x1a90   : > { %v4520_v26 = vpack.c.bf16 %v4516_v39, %v4516_v39  ;;  %v4899_v34 = vsel %vm1055_vm0, %v4894_v37, 0  ;;  %7311 = vmatprep.subr.bf16.mxu0 %v7614_v53 }
0x1a92   : > { %v4994_v43 = vpop.permute.xlu0 %4993 }
0x1a93   : > { %7302 = vmatmul.mubr.msk.bf16.vlgmr.msra.gmra.mrb[132].mxu1 %vm1257_vm2, %v4520_v26  ;;  %v4999_v24 = vsel %vm1055_vm0, %v4994_v43, 0  ;;  %v4944_v41 = vpop.permute.xlu1 %4943 }
0x1a94   : > { %7319 = vmatprep.mubr.msk.bf16.mxu1 %vm7860_vm15, %v7858_v13 }
0x1a95   : > { %7318 = vmatpush3.bf16.xpose.msra.mxu1 %v4849_v23  ;;  %v4949_v23 = vsel %vm1055_vm0, %v4944_v41, 0 }
0x1a96   : > { %7323 = vmatprep.subr.bf16.mxu1 %v7858_v13  ;;  %v4992_v45 = vpop.permute.xlu0 %4991 }
0x1a9c   : > { %7320 = vmatmul.mubr.msk.bf16.vlgmr.msra.gmra.mrb[136].mxu1 %vm1055_vm0, %v4842_v14 }
0x1a9d   : > { %7324 = vmatpush3.bf16.xpose.msra.mxu1 %v4899_v34  ;;  %7325 = vmatprep.mubr.msk.bf16.mxu1 %vm7860_vm15, %v7858_v13  ;;  %v4942_v34 = vpop.permute.xlu1 %4941 }
0x1a9e   : > { %7335 = vmatprep.subr.bf16.mxu1 %v7858_v13 }
0x1aa4   : > { %7326 = vmatmul.mubr.msk.bf16.vlgmr.msra.gmra.mrb[140].mxu1 %vm1055_vm0, %v4892_v38 }
0x1aa5   : > { %7336 = vmatpush3.bf16.xpose.msra.mxu1 %v4999_v24  ;;  %7337 = vmatprep.mubr.msk.bf16.mxu1 %vm7860_vm15, %v7858_v13 }
0x1aa6   : > { %7347 = vmatprep.subr.bf16.mxu1 %v7858_v13 }
0x1aac   : > { %7338 = vmatmul.mubr.msk.bf16.vlgmr.msra.gmra.mrb[144].mxu1 %vm1055_vm0, %v4992_v45 }
0x1aad   : > { %7349 = vmatprep.mubr.msk.bf16.mxu1 %vm7860_vm15, %v7858_v13 }
0x1b59   : > { %v4564_v54 = vpop.f32.mrb[96].mxu0 }
0x1b5a   : > { %v7285_v55 = vpop.f32.mrb[97].mxu0 }
0x1b5b   : > { %v4567_v58 = vpop.f32.mrb[98].mxu0 }
0x1b5c   : > { %v7286_v62 = vpop.f32.mrb[99].mxu0 }
0x1b5e   : > { %v4613_v0 = vpop.f32.mrb[128].mxu1 }
0x1b5f   : > { %v4717_v61 = vpack.c.bf16 %v4613_v0, %v4564_v54  ;;  %v7291_v1 = vpop.f32.mrb[129].mxu1 }
0x1b60   : > { %v4616_v27 = vpop.f32.mrb[130].mxu1 }
0x1b61   : > { %v7292_v5 = vpop.f32.mrb[131].mxu1  ;;  %v4662_v15 = vpop.f32.mrb[100].mxu0  ;;  %7307 = vmatprep.mubr.msk.bf16.mxu0 %vm1055_vm0, %v4717_v61 }
0x1b62   : > { %v7297_v49 = vpop.f32.mrb[101].mxu0 }
0x1b63   : > { %v4665_v3 = vpop.f32.mrb[102].mxu0 }
0x1b64   : > { %v7298_v52 = vpop.f32.mrb[103].mxu0 }
0x1b66   : > { %v4711_v8 = vpop.f32.mrb[132].mxu1 }
0x1b67   : > { %v4718_v57 = vpack.c.bf16 %v4711_v8, %v4662_v15  ;;  %v7303_v18 = vpop.f32.mrb[133].mxu1 }
0x1b68   : > { %v4714_v51 = vpop.f32.mrb[134].mxu1 }
0x1b69   : > { %v7304_v6 = vpop.f32.mrb[135].mxu1  ;;  %7308 = vmatmul.mubr.msk.bf16.vlgmr.msra.gmra.mrb[104].mxu0 %vm1055_vm0, %v4718_v57 }
0x1b6a   : > { %7313 = vmatprep.mubr.msk.bf16.mxu0 %vm1055_vm0, %v4259_v25  ;;  %7312 = vmatpush3.bf16.msra.mxu0 %v7614_v53 }
0x1b6b   : > { %7329 = vmatprep.subr.bf16.mxu0 %v7858_v13 }
0x1b6f   : > { %v4885_v16 = vpop.f32.mrb[136].mxu1 }
0x1b70   : > { %v5041_v10 = vmul.f32 0.25, %v4885_v16  ;;  %v7321_v32 = vpop.f32.mrb[137].mxu1 }
0x1b71   : > { %v4888_v2 = vpop.f32.mrb[138].mxu1 }
0x1b72   : > { %v5045_v39 = vadd.f32 %v5041_v10, %v8214_v44  ;;  %v7322_v26 = vpop.f32.mrb[139].mxu1 }
0x1b74   : > { %v5049_v36 = vsel %vm1257_vm2, %v5045_v39, -inf }
0x1b75   : > { %7314 = vmatmul.mubr.msk.bf16.vlgmr.msra.gmra.mrb[104].mxu0 %vm1055_vm0, %v4260_v35  ;;  %5050 = vmax.xlane.f32.xlu1 %v5049_v36 }
0x1b76   : > { %7330 = vmatpush3.bf16.xpose.msra.mxu0 %v4949_v23  ;;  %7331 = vmatprep.mubr.msk.bf16.mxu0 %vm7860_vm15, %v7858_v13 }
0x1b77   : > { %v4935_v50 = vpop.f32.mrb[140].mxu1  ;;  %7341 = vmatprep.subr.bf16.mxu0 %v7858_v13 }
0x1b78   : > { %v5042_v48 = vmul.f32 0.25, %v4935_v50  ;;  %v7327_v25 = vpop.f32.mrb[141].mxu1 }
0x1b79   : > { %v4938_v14 = vpop.f32.mrb[142].mxu1 }
0x1b7a   : > { %v5046_v37 = vadd.f32 %v5042_v48, %v8219_v56  ;;  %v7328_v38 = vpop.f32.mrb[143].mxu1 }
0x1b7c   : > { %v5052_v43 = vsel %vm1257_vm2, %v5046_v37, -inf }
0x1b7d   : > { %5053 = vmax.xlane.f32.xlu0 %v5052_v43  ;;  %7332 = vmatmul.mubr.msk.bf16.vlgmr.msra.gmra.mrb[108].mxu0 %vm1055_vm0, %v4942_v34 }
0x1b7e   : > { %7343 = vmatprep.mubr.msk.bf16.mxu0 %vm7860_vm15, %v7858_v13 }
0x1b7f   : > { %v5035_v31 = vpop.f32.mrb[144].mxu1 }
0x1b80   : > { %v7339_v42 = vpop.f32.mrb[145].mxu1  ;;  %v5044_v1 = vmul.f32 0.25, %v5035_v31 }
0x1b81   : > { %v5038_v35 = vpop.f32.mrb[146].mxu1 }
0x1b82   : > { %v7340_v24 = vpop.f32.mrb[147].mxu1  ;;  %v5048_v52 = vadd.f32 %v5044_v1, %v8229_v7 }
0x1b84   : > { %v5058_v57 = vsel %vm1257_vm2, %v5048_v52, -inf }
0x1c02   : > { %v5051_v45 = vpop.xlane.xlu1 %5050 }
0x1c03   : > { %v5061_v20 = vsub.f32 %v5045_v39, %v5051_v45 }
0x1c05   : > { %v5065_v53 = vmul.f32 1.442695, %v5061_v20 }
0x1c07   : > { %7777 = vpow2.f32 %v5065_v53 }
0x1c0a   : > { %v5054_v58 = vpop.xlane.xlu0 %5053 }
0x1c0b   : > { %v5062_v62 = vsub.f32 %v5046_v37, %v5054_v58 }
0x1c0d   : > { %v5067_v0 = vmul.f32 1.442695, %v5062_v62 }
0x1c0f   : > { %7779 = vpow2.f32 %v5067_v0 }
0x1c11   : > { %v7778_v54 = vpop.eup %7777 }
0x1c12   : > { %v5073_v55 = vsel %vm1257_vm2, %v7778_v54, 0.0 }
0x1c13   : > { %5074 = vadd.xlane.f32.xlu1 %v5073_v55 }
0x1c19   : > { %v7780_v18 = vpop.eup %7779 }
0x1c1a   : > { %v5076_v51 = vsel %vm1257_vm2, %v7780_v18, 0.0 }
0x1c24   : > { %5097 = vrot.lane.b32.xlu1 %v8785_v17, %s7864_s28 }
0x1c28   : > { %5193 = vrot.lane.b32.xlu1 %v8849_v28, %s7864_s28 }
0x1c50   : > { %v4985_v61 = vpop.f32.mrb[108].mxu0 }
0x1c51   : > { %v5043_v27 = vmul.f32 0.25, %v4985_v61  ;;  %v7333_v5 = vpop.f32.mrb[109].mxu0 }
0x1c52   : > { %v4988_v15 = vpop.f32.mrb[110].mxu0 }
0x1c53   : > { %v5047_v49 = vadd.f32 %v5043_v27, %v8224_v63  ;;  %v7334_v3 = vpop.f32.mrb[111].mxu0 }
0x1c54   : > { %v7615_v3 = vld [vmem:[%s9239_s6 + $0x30] sm:$0xff]  }
0x1c55   : > { %v5055_v8 = vsel %vm1257_vm2, %v5047_v49, -inf }
0x1c56   : > { %5056 = vmax.xlane.f32.xlu0 %v5055_v8 }
0x1c5a   : > { %5059 = vmax.xlane.f32.xlu0 %v5058_v57 }
0x1c5e   : > { %5077 = vadd.xlane.f32.xlu0 %v5076_v51 }
0x1ca0   : > { %v5075_v6 = vpop.xlane.xlu1 %5074 }
0x1ca1   : > { %7781 = vrcp.f32 %v5075_v6 }
0x1ca4   : > { %v5098_v16 = vpop.permute.xlu1 %5097 }
0x1ca5   : > { %v5103_v10 = vsel %vm1309_vm14, %v5098_v16, 0 }
0x1ca6   : > { %7342 = vmatpush3.bf16.msra.mxu0 %v5103_v10 }
0x1ca7   : > { %7353 = vmatprep.subr.bf16.mxu0 %v7858_v13 }
0x1ca8   : > { %v5194_v41 = vpop.permute.xlu1 %5193 }
0x1ca9   : > { %v5199_v26 = vsel %vm1309_vm14, %v5194_v41, 0 }
0x1cab   : > { %v7782_v32 = vpop.eup %7781 }
0x1cac   : > { %v5089_v2 = vmul.f32 %v7782_v32, %v7778_v54 }
0x1cae   : > { %v5093_v39 = vpack.c.bf16 %v5089_v2, %v5089_v2 }
0x1cb0   : > { %7344 = vmatmul.mubr.msk.bf16.vlgmr.msra.gmra.mrb[112].mxu0 %vm1257_vm2, %v5093_v39 }
0x1cb1   : > { %7354 = vmatpush3.bf16.msra.mxu0 %v5199_v26  ;;  %7355 = vmatprep.mubr.msk.bf16.mxu0 %vm7860_vm15, %v7858_v13 }
0x1cb2   : > { %7365 = vmatprep.subr.bf16.mxu0 %v7615_v3 }
0x1ce3   : > { %v5057_v36 = vpop.xlane.xlu0 %5056 }
0x1ce4   : > { %v5063_v23 = vsub.f32 %v5047_v49, %v5057_v36 }
0x1ce6   : > { %v5069_v50 = vmul.f32 1.442695, %v5063_v23 }
0x1ce7   : > { %v5060_v48 = vpop.xlane.xlu0 %5059 }
0x1ce8   : > { %7783 = vpow2.f32 %v5069_v50  ;;  %v5064_v25 = vsub.f32 %v5048_v52, %v5060_v48 }
0x1cea   : > { %v5071_v14 = vmul.f32 1.442695, %v5064_v25 }
0x1cec   : > { %7785 = vpow2.f32 %v5071_v14 }
0x1cf2   : > { %v7784_v37 = vpop.eup %7783 }
0x1cf3   : > { %v5079_v38 = vsel %vm1257_vm2, %v7784_v37, 0.0 }
0x1cf4   : > { %5080 = vadd.xlane.f32.xlu1 %v5079_v38 }
0x1cf6   : > { %v7786_v34 = vpop.eup %7785 }
0x1cf7   : > { %v5082_v43 = vsel %vm1257_vm2, %v7786_v34, 0.0 }
0x1cf8   : > { %5083 = vadd.xlane.f32.xlu0 %v5082_v43 }
0x1d05   : > { %5241 = vrot.lane.b32.xlu1 %v8859_v47, %s7864_s28 }
0x1d09   : > { %5358 = vrot.lane.b32.xlu1 %v8755_v60, %s7865_s16  ;;  %v5078_v60 = vpop.xlane.xlu0 %5077 }
0x1d0a   : > { %7787 = vrcp.f32 %v5078_v60 }
0x1d0d   : > { %5356 = vrot.lane.b32.xlu1 %v8773_v29, %s9257_s24 }
0x1d0e   : > { %5145 = vrot.lane.b32.xlu0 %v8805_v11, %s7864_s28  ;;  %s9258_s28 = sshll.u32 %s9260_s23, 3 }
0x1d0f   : > { %s434_s22 = scalar_lea.vmem %s9245_s12, %s9258_s28 }
0x1d11   : > { %5458 = vrot.lane.b32.xlu1 %v8765_v46, %s7865_s16 }
0x1d12   : > { %5408 = vrot.lane.b32.xlu0 %v8753_v59, %s7865_s16 }
0x1d14   : > { %v7788_v42 = vpop.eup %7787 }
0x1d15   : > { %5456 = vrot.lane.b32.xlu1 %v8789_v19, %s9257_s24  ;;  %v5090_v24 = vmul.f32 %v7788_v42, %v7780_v18 }
0x1d16   : > { %5406 = vrot.lane.b32.xlu0 %v8787_v21, %s9257_s24 }
0x1d17   : > { %v5094_v53 = vpack.c.bf16 %v5090_v24, %v5090_v24 }
0x1d1a   : > { %5508 = vrot.lane.b32.xlu0 %v8763_v9, %s7865_s16 }
0x1d1e   : > { %5506 = vrot.lane.b32.xlu0 %v8810_v33, %s9257_s24 }
0x1d81   : > { %v5081_v29 = vpop.xlane.xlu1 %5080 }
0x1d82   : > { %7789 = vrcp.f32 %v5081_v29 }
0x1d83   : > { %v5139_v46 = vpop.f32.mrb[112].mxu0 }
0x1d84   : > { %v7345_v31 = vpop.f32.mrb[113].mxu0 }
0x1d85   : > { %v5084_v59 = vpop.xlane.xlu0 %5083  ;;  %v5142_v35 = vpop.f32.mrb[114].mxu0 }
0x1d86   : > { %7791 = vrcp.f32 %v5084_v59  ;;  %v7346_v19 = vpop.f32.mrb[115].mxu0  ;;  %v5242_v21 = vpop.permute.xlu1 %5241 }
0x1d87   : > { %v5247_v54 = vsel %vm1309_vm14, %v5242_v21, 0 }
0x1d89   : > { %v5146_v45 = vpop.permute.xlu0 %5145 }
0x1d8a   : > { %v5151_v20 = vsel %vm1309_vm14, %v5146_v45, 0  ;;  %v5359_v62 = vpop.permute.xlu1 %5358 }
0x1d8b   : > { %7348 = vmatpush3.bf16.msra.mxu1 %v5151_v20  ;;  %v5364_v27 = vsel %vm1055_vm0, %v5359_v62, 0 }
0x1d8c   : > { %v7790_v9 = vpop.eup %7789  ;;  %7359 = vmatprep.subr.bf16.mxu1 %v7858_v13 }
0x1d8d   : > { %v5091_v33 = vmul.f32 %v7790_v9, %v7784_v37  ;;  %v5409_v16 = vpop.permute.xlu0 %5408 }
0x1d8e   : > { %7350 = vmatmul.mubr.msk.bf16.vlgmr.msra.gmra.mrb[148].mxu1 %vm1257_vm2, %v5094_v53  ;;  %v5357_v1 = vpop.permute.xlu1 %5356  ;;  %v5414_v50 = vsel %vm1055_vm0, %v5409_v16, 0 }
0x1d8f   : > { %7360 = vmatpush3.bf16.msra.mxu1 %v5247_v54  ;;  %v5095_v55 = vpack.c.bf16 %v5091_v33, %v5091_v33  ;;  %7361 = vmatprep.mubr.msk.bf16.mxu1 %vm7860_vm15, %v7858_v13 }
0x1d90   : > { %v7792_v58 = vpop.eup %7791  ;;  %7371 = vmatprep.subr.bf16.mxu1 %v7858_v13 }
0x1d91   : > { %v5092_v0 = vmul.f32 %v7792_v58, %v7786_v34  ;;  %7356 = vmatmul.mubr.msk.bf16.vlgmr.msra.gmra.mrb[116].mxu0 %vm1257_vm2, %v5095_v55  ;;  %v5407_v36 = vpop.permute.xlu0 %5406 }
0x1d92   : > { %v5459_v5 = vpop.permute.xlu1 %5458  ;;  %7366 = vmatpush3.bf16.msra.mxu0 %v7615_v3 }
0x1d93   : > { %v5096_v61 = vpack.c.bf16 %v5092_v0, %v5092_v0  ;;  %v5464_v15 = vsel %vm1055_vm0, %v5459_v5, 0  ;;  %7377 = vmatprep.subr.bf16.mxu0 %v7858_v13 }
0x1d95   : > { %v5509_v25 = vpop.permute.xlu0 %5508 }
0x1d96   : > { %7362 = vmatmul.mubr.msk.bf16.vlgmr.msra.gmra.mrb[152].mxu1 %vm1257_vm2, %v5096_v61  ;;  %v5457_v49 = vpop.permute.xlu1 %5456  ;;  %v5514_v34 = vsel %vm1055_vm0, %v5509_v25, 0 }
0x1d97   : > { %7373 = vmatprep.mubr.msk.bf16.mxu1 %vm7860_vm15, %v7858_v13 }
0x1d98   : > { %7372 = vmatpush3.bf16.xpose.msra.mxu1 %v5364_v27 }
0x1d99   : > { %7383 = vmatprep.subr.bf16.mxu1 %v7858_v13  ;;  %v5507_v42 = vpop.permute.xlu0 %5506 }
0x1d9f   : > { %7374 = vmatmul.mubr.msk.bf16.vlgmr.msra.gmra.mrb[156].mxu1 %vm1055_vm0, %v5357_v1 }
0x1da0   : > { %7384 = vmatpush3.bf16.xpose.msra.mxu1 %v5464_v15  ;;  %7385 = vmatprep.mubr.msk.bf16.mxu1 %vm7860_vm15, %v7858_v13 }
0x1da1   : > { %7395 = vmatprep.subr.bf16.mxu1 %v7858_v13 }
0x1da7   : > { %7386 = vmatmul.mubr.msk.bf16.vlgmr.msra.gmra.mrb[160].mxu1 %vm1055_vm0, %v5457_v49 }
0x1da8   : > { %7397 = vmatprep.mubr.msk.bf16.mxu1 %vm7860_vm15, %v7858_v13 }
0x1e61   : > { %v5187_v52 = vpop.f32.mrb[148].mxu1 }
0x1e62   : > { %v5289_v8 = vpack.c.bf16 %v5187_v52, %v5139_v46  ;;  %v7351_v57 = vpop.f32.mrb[149].mxu1 }
0x1e63   : > { %v5190_v18 = vpop.f32.mrb[150].mxu1 }
0x1e64   : > { %v7352_v51 = vpop.f32.mrb[151].mxu1  ;;  %v5235_v6 = vpop.f32.mrb[116].mxu0  ;;  %7367 = vmatprep.mubr.msk.bf16.mxu0 %vm1055_vm0, %v5289_v8 }
0x1e65   : > { %v7357_v10 = vpop.f32.mrb[117].mxu0 }
0x1e66   : > { %v5238_v32 = vpop.f32.mrb[118].mxu0 }
0x1e67   : > { %v7358_v2 = vpop.f32.mrb[119].mxu0 }
0x1e69   : > { %v5283_v41 = vpop.f32.mrb[152].mxu1 }
0x1e6a   : > { %v5290_v39 = vpack.c.bf16 %v5283_v41, %v5235_v6  ;;  %v7363_v26 = vpop.f32.mrb[153].mxu1 }
0x1e6b   : > { %v5286_v23 = vpop.f32.mrb[154].mxu1 }
0x1e6c   : > { %v7364_v48 = vpop.f32.mrb[155].mxu1  ;;  %7368 = vmatmul.mubr.msk.bf16.vlgmr.msra.gmra.mrb[104].mxu0 %vm1055_vm0, %v5290_v39 }
0x1e6d   : > { %7378 = vmatpush3.bf16.xpose.msra.mxu0 %v5414_v50  ;;  %7379 = vmatprep.mubr.msk.bf16.mxu0 %vm7860_vm15, %v7858_v13 }
0x1e6e   : > { %7389 = vmatprep.subr.bf16.mxu0 %v7858_v13 }
0x1e72   : > { %v5400_v14 = vpop.f32.mrb[156].mxu1 }
0x1e73   : > { %v5556_v37 = vmul.f32 0.25, %v5400_v14  ;;  %v7375_v38 = vpop.f32.mrb[157].mxu1 }
0x1e74   : > { %v5403_v43 = vpop.f32.mrb[158].mxu1  ;;  %7380 = vmatmul.mubr.msk.bf16.vlgmr.msra.gmra.mrb[120].mxu0 %vm1055_vm0, %v5407_v36 }
0x1e75   : > { %v5560_v60 = vadd.f32 %v5556_v37, %v8214_v44  ;;  %7390 = vmatpush3.bf16.xpose.msra.mxu0 %v5514_v34  ;;  %v7376_v29 = vpop.f32.mrb[159].mxu1  ;;  %7391 = vmatprep.mubr.msk.bf16.mxu0 %vm7860_vm15, %v7858_v13 }
0x1e76   : > { %7401 = vmatprep.subr.bf16.mxu0 %v7858_v13 }
0x1e77   : > { %v5564_v46 = vsel %vm1257_vm2, %v5560_v60, -inf }
0x1e78   : > { %5565 = vmax.xlane.f32.xlu1 %v5564_v46 }
0x1e7a   : > { %v5500_v31 = vpop.f32.mrb[160].mxu1 }
0x1e7b   : > { %v7387_v59 = vpop.f32.mrb[161].mxu1  ;;  %v5558_v53 = vmul.f32 0.25, %v5500_v31 }
0x1e7c   : > { %v5503_v35 = vpop.f32.mrb[162].mxu1  ;;  %7392 = vmatmul.mubr.msk.bf16.vlgmr.msra.gmra.mrb[124].mxu0 %vm1055_vm0, %v5507_v42 }
0x1e7d   : > { %v7388_v19 = vpop.f32.mrb[163].mxu1  ;;  %7403 = vmatprep.mubr.msk.bf16.mxu0 %vm7860_vm15, %v7858_v13  ;;  %v5562_v0 = vadd.f32 %v5558_v53, %v8224_v63 }
0x1e7f   : > { %v5570_v15 = vsel %vm1257_vm2, %v5562_v0, -inf }
0x1f05   : > { %v5566_v44 = vpop.xlane.xlu1 %5565 }
0x1f06   : > { %v5576_v24 = vsub.f32 %v5560_v60, %v5566_v44 }
0x1f08   : > { %v5580_v45 = vmul.f32 1.442695, %v5576_v24 }
0x1f0a   : > { %7793 = vpow2.f32 %v5580_v45 }
0x1f14   : > { %v7794_v21 = vpop.eup %7793 }
0x1f15   : > { %v5588_v20 = vsel %vm1257_vm2, %v7794_v21, 0.0 }
0x1f16   : > { %5589 = vadd.xlane.f32.xlu1 %v5588_v20 }
0x1f47   : > { %v5450_v9 = vpop.f32.mrb[120].mxu0 }
0x1f48   : > { %v5557_v33 = vmul.f32 0.25, %v5450_v9  ;;  %v7381_v54 = vpop.f32.mrb[121].mxu0 }
0x1f49   : > { %v5453_v55 = vpop.f32.mrb[122].mxu0 }
0x1f4a   : > { %v5561_v58 = vadd.f32 %v5557_v33, %v8219_v56  ;;  %v7382_v62 = vpop.f32.mrb[123].mxu0 }
0x1f4c   : > { %v5567_v61 = vsel %vm1257_vm2, %v5561_v58, -inf }
0x1f4d   : > { %5568 = vmax.xlane.f32.xlu0 %v5567_v61 }
0x1f4f   : > { %v5550_v1 = vpop.f32.mrb[124].mxu0 }
0x1f50   : > { %v5559_v27 = vmul.f32 0.25, %v5550_v1  ;;  %v7393_v5 = vpop.f32.mrb[125].mxu0 }
0x1f51   : > { %v5553_v49 = vpop.f32.mrb[126].mxu0  ;;  %5571 = vmax.xlane.f32.xlu0 %v5570_v15 }
0x1f52   : > { %v5563_v3 = vadd.f32 %v5559_v27, %v8229_v7  ;;  %v7394_v52 = vpop.f32.mrb[127].mxu0 }
0x1f54   : > { %v5573_v8 = vsel %vm1257_vm2, %v5563_v3, -inf }
0x1f55   : > { %5574 = vmax.xlane.f32.xlu0 %v5573_v8 }
0x1fa3   : > { %v5590_v23 = vpop.xlane.xlu1 %5589 }
0x1fda   : > { %v5569_v56 = vpop.xlane.xlu0 %5568 }
0x1fdb   : > { %v5577_v57 = vsub.f32 %v5561_v58, %v5569_v56 }
0x1fdd   : > { %v5582_v18 = vmul.f32 1.442695, %v5577_v57 }
0x1fde   : > { %v5572_v63 = vpop.xlane.xlu0 %5571 }
0x1fdf   : > { %7795 = vpow2.f32 %v5582_v18  ;;  %v5578_v51 = vsub.f32 %v5562_v0, %v5572_v63 }
0x1fe1   : > { %v5584_v6 = vmul.f32 1.442695, %v5578_v51 }
0x1fe2   : > { %v5575_v16 = vpop.xlane.xlu0 %5574 }
0x1fe3   : > { %7797 = vpow2.f32 %v5584_v6  ;;  %v5579_v10 = vsub.f32 %v5563_v3, %v5575_v16 }
0x1fe5   : > { %v5586_v32 = vmul.f32 1.442695, %v5579_v10 }
0x1fe7   : > { %7799 = vpow2.f32 %v5586_v32 }
0x1fe8   : > { %7801 = vrcp.f32 %v5590_v23  ;;  %v7625_v23 = vld [vmem:[%s9241_s8 + $0x64] ss:$8 sps:$4 sm:$0xff]  }
0x1fe9   : > { %v7796_v2 = vpop.eup %7795 }
0x1fea   : > { %v5591_v41 = vsel %vm1257_vm2, %v7796_v2, 0.0 }
0x1feb   : > { %5592 = vadd.xlane.f32.xlu0 %v5591_v41 }
0x1fed   : > { %v7798_v7 = vpop.eup %7797 }
0x1fee   : > { %v5594_v39 = vsel %vm1257_vm2, %v7798_v7, 0.0 }
0x1fef   : > { %5595 = vadd.xlane.f32.xlu1 %v5594_v39  ;;  %v7617_v39 = vld [vmem:[%s9241_s8 + $0x40] ss:$8 sps:$4 sm:$0xff]  }
0x1ff1   : > { %v7800_v26 = vpop.eup %7799 }
0x1ff2   : > { %v5597_v36 = vsel %vm1257_vm2, %v7800_v26, 0.0  ;;  %v7802_v48 = vpop.eup %7801 }
0x1ff3   : > { %5598 = vadd.xlane.f32.xlu0 %v5597_v36  ;;  %v5604_v14 = vmul.f32 %v7802_v48, %v7794_v21  ;;  %v7616_v21 = vld [vmem:[%s9239_s6 + $0x38] sm:$0xff]  }
0x1ff4   : > { %v7620_v36 = vld [vmem:[%s9241_s8 + $0x50] ss:$8 sps:$4 sm:$0xff]  }
0x1ff5   : > { %v5608_v34 = vpack.c.bf16 %v5604_v14, %v5604_v14  ;;  %v7626_v48 = vld [vmem:[%s9241_s8 + $0x70] ss:$8 sps:$4 sm:$0xff]  }
0x2000   : > { %5612 = vrot.lane.b32.xlu1 %v8785_v17, %s9257_s24 }
0x2004   : > { %5708 = vrot.lane.b32.xlu1 %v8849_v28, %s9257_s24 }
0x2008   : > { %5756 = vrot.lane.b32.xlu1 %v8859_v47, %s9257_s24 }
0x2009   : > { %5660 = vrot.lane.b32.xlu0 %v8805_v11, %s9257_s24 }
0x2078   : > { %v5593_v50 = vpop.xlane.xlu0 %5592 }
0x2079   : > { %7803 = vrcp.f32 %v5593_v50  ;;  %v7623_v50 = vld [vmem:[%s9241_s8 + $0x60] ss:$8 sps:$4 sm:$0xff]  }
0x207c   : > { %v5596_v25 = vpop.xlane.xlu1 %5595 }
0x207d   : > { %7805 = vrcp.f32 %v5596_v25  ;;  %v7628_v25 = vld [vmem:[%s9241_s8 + $0x74] ss:$8 sps:$4 sm:$0xff]  }
0x2080   : > { %v5599_v37 = vpop.xlane.xlu0 %5598  ;;  %v5613_v38 = vpop.permute.xlu1 %5612 }
0x2081   : > { %7807 = vrcp.f32 %v5599_v37  ;;  %v5618_v17 = vsel %vm1309_vm14, %v5613_v38, 0 }
0x2082   : > { %7396 = vmatpush3.bf16.msra.mxu1 %v5618_v17 }
0x2083   : > { %v7804_v28 = vpop.eup %7803  ;;  %7407 = vmatprep.subr.bf16.mxu1 %v7858_v13 }
0x2084   : > { %v5605_v47 = vmul.f32 %v7804_v28, %v7796_v2  ;;  %v5661_v11 = vpop.permute.xlu0 %5660  ;;  %v5709_v43 = vpop.permute.xlu1 %5708 }
0x2085   : > { %v5666_v60 = vsel %vm1309_vm14, %v5661_v11, 0  ;;  %v5714_v29 = vsel %vm1309_vm14, %v5709_v43, 0  ;;  %7398 = vmatmul.mubr.msk.bf16.vlgmr.msra.gmra.mrb[164].mxu1 %vm1257_vm2, %v5608_v34 }
0x2086   : > { %7402 = vmatpush3.bf16.msra.mxu0 %v5666_v60  ;;  %7408 = vmatpush3.bf16.msra.mxu1 %v5714_v29  ;;  %v5609_v46 = vpack.c.bf16 %v5605_v47, %v5605_v47 }
0x2087   : > { %v7806_v31 = vpop.eup %7805  ;;  %7413 = vmatprep.subr.bf16.mxu0 %v7858_v13  ;;  %7409 = vmatprep.mubr.msk.bf16.mxu1 %vm7860_vm15, %v7858_v13 }
0x2088   : > { %v5606_v42 = vmul.f32 %v7806_v31, %v7798_v7  ;;  %v5757_v59 = vpop.permute.xlu1 %5756 }
0x2089   : > { %v5762_v35 = vsel %vm1309_vm14, %v5757_v59, 0  ;;  %7404 = vmatmul.mubr.msk.bf16.vlgmr.msra.gmra.mrb[128].mxu0 %vm1257_vm2, %v5609_v46 }
0x208a   : > { %7414 = vmatpush3.bf16.msra.mxu0 %v5762_v35  ;;  %v5610_v19 = vpack.c.bf16 %v5606_v42, %v5606_v42  ;;  %7415 = vmatprep.mubr.msk.bf16.mxu0 %vm7860_vm15, %v7858_v13  ;;  %v6603_v35 = vld [vmem:[%s9240_s7 + $0x1] ss:$0 sm:$0xff] }
0x208b   : > { %v7808_v44 = vpop.eup %7807  ;;  %7419 = vmatprep.subr.bf16.mxu0 %v7616_v21 }
0x208c   : > { %v5607_v24 = vmul.f32 %v7808_v44, %v7800_v26  ;;  %v7622_v26 = vld [vmem:[%s9241_s8 + $0x54] ss:$8 sps:$4 sm:$0xff]  }
0x208d   : > { %7410 = vmatmul.mubr.msk.bf16.vlgmr.msra.gmra.mrb[168].mxu1 %vm1257_vm2, %v5610_v19 }
0x208e   : > { %v5611_v45 = vpack.c.bf16 %v5607_v24, %v5607_v24  ;;  %6008 = vmatprep.mubr.bf16.mxu1 %v7856_v30 }
0x2091   : > { %7416 = vmatmul.mubr.msk.bf16.vlgmr.msra.gmra.mrb[132].mxu0 %vm1257_vm2, %v5611_v45 }
0x2092   : > { %7420 = vmatpush3.bf16.msra.mxu0 %v7616_v21 }
0x2158   : > { %v5654_v20 = vpop.f32.mrb[164].mxu1 }
0x2159   : > { %v7399_v9 = vpop.f32.mrb[165].mxu1 }
0x215a   : > { %v5657_v53 = vpop.f32.mrb[166].mxu1 }
0x215b   : > { %v7400_v33 = vpop.f32.mrb[167].mxu1 }
0x215c   : > { %v5702_v13 = vpop.f32.mrb[128].mxu0 }
0x215d   : > { %v5804_v54 = vpack.c.bf16 %v5702_v13, %v5654_v20  ;;  %v7405_v55 = vpop.f32.mrb[129].mxu0 }
0x215e   : > { %v5705_v58 = vpop.f32.mrb[130].mxu0  ;;  %v7629_v55 = vld [vmem:[%s9242_s9 + $0x40] sm:$0xff]  }
0x215f   : > { %v7406_v62 = vpop.f32.mrb[131].mxu0  ;;  %7421 = vmatprep.mubr.msk.bf16.mxu0 %vm1055_vm0, %v5804_v54  ;;  %7425 = vmatprep.subr.bf16.mxu0 %v7629_v55  ;;  %v7630_v58 = vld [vmem:[%s9242_s9 + $0x48] sm:$0xff]  }
0x2160   : > { %v5750_v0 = vpop.f32.mrb[168].mxu1  ;;  %v7632_v62 = vld [vmem:[%s9242_s9 + $0x58] sm:$0xff]  }
0x2161   : > { %v7411_v61 = vpop.f32.mrb[169].mxu1 }
0x2162   : > { %v5753_v1 = vpop.f32.mrb[170].mxu1  ;;  %v7634_v61 = vld [vmem:[%s9242_s9 + $0x68] sm:$0xff]  }
0x2163   : > { %v7412_v27 = vpop.f32.mrb[171].mxu1  ;;  %v7635_v1 = vld [vmem:[%s9242_s9 + $0x70] sm:$0xff]  }
0x2164   : > { %v5798_v5 = vpop.f32.mrb[132].mxu0  ;;  %v7636_v27 = vld [vmem:[%s9242_s9 + $0x78] sm:$0xff]  }
0x2165   : > { %v5805_v15 = vpack.c.bf16 %v5798_v5, %v5750_v0  ;;  %v7417_v49 = vpop.f32.mrb[133].mxu0  ;;  %v7633_v0 = vld [vmem:[%s9242_s9 + $0x60] sm:$0xff]  }
0x2166   : > { %v5801_v3 = vpop.f32.mrb[134].mxu0 }
0x2167   : > { %v7418_v52 = vpop.f32.mrb[135].mxu0  ;;  %7422 = vmatmul.mubr.msk.bf16.vlgmr.msra.gmra.mrb[104].mxu0 %vm1055_vm0, %v5805_v15 }
0x2168   : > { %7426 = vmatpush3.bf16.msra.mxu0 %v7629_v55 }
0x2169   : > { %7427 = vmatprep.subr.bf16.mxu0 %v7630_v58 }
0x216c   : > { %7428 = vmatpush3.bf16.msra.mxu0 %v7630_v58 }
0x223a   : > { %v7423_v8 = vpop.f32.mrb[104].mxu0 }
0x223b   : > { %v5852_v56 = vpop.f32.mrb[105].mxu0  ;;  %v9122_v51 = vadd.f32 %v7423_v8, %v8633_v4 }
0x223c   : > { %v9119_v57 = vadd.f32 %v5852_v56, %v8636_v40  ;;  %v7424_v18 = vpop.f32.mrb[106].mxu0 }
0x223d   : > { %v5855_v63 = vpop.f32.mrb[107].mxu0  ;;  %v9133_v40 = vadd.f32 %v7424_v18, %v8639_v22  ;;  %v5879_v4 = vmul.f32 %v9122_v51, %v9122_v51  ;;  %v7619_v22 = vld [vmem:[%s9241_s8 + $0x44] ss:$8 sps:$4 sm:$0xff]  }
0x223e   : > { %v9125_v6 = vadd.f32 %v5855_v63, %v8642_v12  ;;  %v5877_v16 = vmul.f32 %v9119_v57, %v9119_v57  ;;  %5976 = vmatprep.subr.bf16.mxu1 %v7619_v22 }
0x223f   : > { %v5887_v12 = vsel %vm641_vm1, %v5879_v4, 0.0  ;;  %v5880_v41 = vmul.f32 %v9133_v40, %v9133_v40  ;;  %5977 = vmatpush1.bf16.msra.mxu1 %v7617_v39 }
0x2240   : > { %v5881_v10 = vsel %vm641_vm1, %v5877_v16, 0.0  ;;  %v5878_v32 = vmul.f32 %v9125_v6, %v9125_v6  ;;  %5978 = vmatprep.subr.bf16.mxu1 %v7622_v26 }
0x2241   : > { %5882 = vadd.xlane.f32.xlu1 %v5881_v10  ;;  %v5890_v7 = vsel %vm641_vm1, %v5880_v41, 0.0 }
0x2242   : > { %v5884_v2 = vsel %vm641_vm1, %v5878_v32, 0.0 }
0x2243   : > { %5885 = vadd.xlane.f32.xlu0 %v5884_v2  ;;  %5979 = vmatpush1.bf16.msra.mxu1 %v7620_v36 }
0x2244   : > { %5980 = vmatprep.subr.bf16.mxu1 %v7625_v23 }
0x2247   : > { %5888 = vadd.xlane.f32.xlu0 %v5887_v12  ;;  %5981 = vmatpush1.bf16.msra.mxu1 %v7623_v50 }
0x2248   : > { %5982 = vmatprep.subr.bf16.mxu1 %v7628_v25 }
0x224b   : > { %5891 = vadd.xlane.f32.xlu0 %v5890_v7  ;;  %5983 = vmatpush1.bf16.msra.mxu1 %v7626_v48 }
0x22ce   : > { %v5883_v14 = vpop.xlane.xlu1 %5882 }
0x22cf   : > { %v5893_v37 = vmul.f32 0.015625, %v5883_v14 }
0x22d0   : > { %v5886_v38 = vpop.xlane.xlu0 %5885 }
0x22d1   : > { %v5897_v17 = vadd.f32 1e-06, %v5893_v37  ;;  %v5894_v28 = vmul.f32 0.015625, %v5886_v38 }
0x22d3   : > { %7809 = vrsqrt.f32 %v5897_v17  ;;  %v5898_v34 = vadd.f32 1e-06, %v5894_v28 }
0x22d4   : > { %v5889_v47 = vpop.xlane.xlu0 %5888 }
0x22d5   : > { %7811 = vrsqrt.f32 %v5898_v34  ;;  %v5895_v11 = vmul.f32 0.015625, %v5889_v47 }
0x22d7   : > { %v5899_v43 = vadd.f32 1e-06, %v5895_v11 }
0x22d8   : > { %v5892_v60 = vpop.xlane.xlu0 %5891 }
0x22d9   : > { %7813 = vrsqrt.f32 %v5899_v43  ;;  %v5896_v29 = vmul.f32 0.015625, %v5892_v60 }
0x22db   : > { %v5900_v46 = vadd.f32 1e-06, %v5896_v29 }
0x22dd   : > { %v7810_v31 = vpop.eup %7809  ;;  %7815 = vrsqrt.f32 %v5900_v46 }
0x22de   : > { %v5905_v42 = vmul.f32 %v7810_v31, %v9119_v57 }
0x22df   : > { %v7812_v59 = vpop.eup %7811 }
0x22e0   : > { %v5906_v19 = vmul.f32 %v7812_v59, %v9125_v6  ;;  %v5915_v44 = vmul.f32 %v6603_v35, %v5905_v42 }
0x22e2   : > { %v5916_v24 = vmul.f32 %v6603_v35, %v5906_v19 }
0x22e3   : > { %v7814_v45 = vpop.eup %7813 }
0x22e4   : > { %v5919_v21 = vpack.c.bf16 %v5916_v24, %v5915_v44  ;;  %v5907_v20 = vmul.f32 %v7814_v45, %v9122_v51 }
0x22e6   : > { %6620 = vmatmul.mubr.msk.bf16.vlgmr.msra.gmra.mrb[172].mxu1 %vm641_vm1, %v5919_v21  ;;  %v5917_v33 = vmul.f32 %v6603_v35, %v5907_v20 }
0x22e7   : > { %v7816_v9 = vpop.eup %7815  ;;  %6018 = vmatprep.mubr.bf16.mxu1 %v7856_v30  ;;  %v7631_v30 = vld [vmem:[%s9242_s9 + $0x50] sm:$0xff]  }
0x22e8   : > { %v5908_v53 = vmul.f32 %v7816_v9, %v9133_v40  ;;  %7429 = vmatprep.subr.bf16.mxu0 %v7631_v30 }
0x22e9   : > { %7430 = vmatpush3.bf16.msra.mxu0 %v7631_v30 }
0x22ea   : > { %v5918_v13 = vmul.f32 %v6603_v35, %v5908_v53  ;;  %7431 = vmatprep.subr.bf16.mxu0 %v7632_v62  ;;  %v7639_v53 = vld [vmem:[%s9244_s11 + $0x10] sm:$0xff]  }
0x22ec   : > { %v5920_v54 = vpack.c.bf16 %v5918_v13, %v5917_v33  ;;  %v7640_v33 = vld [vmem:[%s9244_s11 + $0x18] sm:$0xff]  }
0x22ed   : > { %7432 = vmatpush3.bf16.msra.mxu0 %v7632_v62 }
0x22ee   : > { %6621 = vmatmul.mubr.msk.bf16.gmra.mrb[176].mxu1 %vm641_vm1, %v5920_v54  ;;  %7433 = vmatprep.subr.bf16.mxu0 %v7633_v0 }
0x22f1   : > { %7434 = vmatpush3.bf16.msra.mxu0 %v7633_v0 }
0x22f2   : > { %7435 = vmatprep.subr.bf16.mxu0 %v7634_v61 }
0x22f5   : > { %7436 = vmatpush3.bf16.msra.mxu0 %v7634_v61 }
0x22f6   : > { %7437 = vmatprep.subr.bf16.mxu0 %v7635_v1 }
0x22f9   : > { %7438 = vmatpush3.bf16.msra.mxu0 %v7635_v1 }
0x22fa   : > { %7439 = vmatprep.subr.bf16.mxu0 %v7636_v27 }
0x22fd   : > { %7440 = vmatpush3.bf16.msra.mxu0 %v7636_v27 }
0x23b9   : > { %v6010_v5 = vpop.f32.mrb[172].mxu1 }
0x23ba   : > { %v6622_v15 = vmul.f32 -1.442695, %v6010_v5  ;;  %v6012_v49 = vpop.f32.mrb[173].mxu1 }
0x23bb   : > { %v6014_v3 = vpop.f32.mrb[174].mxu1 }
0x23bc   : > { %7817 = vpow2.f32 %v6622_v15  ;;  %v6623_v52 = vmul.f32 -1.442695, %v6014_v3  ;;  %v6016_v8 = vpop.f32.mrb[175].mxu1 }
0x23be   : > { %7819 = vpow2.f32 %v6623_v52 }
0x23c1   : > { %v6020_v56 = vpop.f32.mrb[176].mxu1 }
0x23c2   : > { %v6624_v18 = vmul.f32 -1.442695, %v6020_v56  ;;  %v6022_v63 = vpop.f32.mrb[177].mxu1 }
0x23c3   : > { %v6024_v16 = vpop.f32.mrb[178].mxu1 }
0x23c4   : > { %7821 = vpow2.f32 %v6624_v18  ;;  %v6625_v10 = vmul.f32 -1.442695, %v6024_v16  ;;  %v6026_v32 = vpop.f32.mrb[179].mxu1 }
0x23c6   : > { %v7818_v2 = vpop.eup %7817  ;;  %7823 = vpow2.f32 %v6625_v10 }
0x23c7   : > { %v6041_v4 = vadd.f32 1.0, %v7818_v2 }
0x23c8   : > { %v7820_v12 = vpop.eup %7819 }
0x23c9   : > { %7825 = vrcp.f32 %v6041_v4  ;;  %v6042_v41 = vadd.f32 1.0, %v7820_v12 }
0x23cb   : > { %7827 = vrcp.f32 %v6042_v41 }
0x23ce   : > { %v7822_v7 = vpop.eup %7821 }
0x23cf   : > { %v6043_v22 = vadd.f32 1.0, %v7822_v7 }
0x23d0   : > { %v7824_v39 = vpop.eup %7823 }
0x23d1   : > { %7829 = vrcp.f32 %v6043_v22  ;;  %v6044_v26 = vadd.f32 1.0, %v7824_v39 }
0x23d3   : > { %v7826_v36 = vpop.eup %7825  ;;  %7831 = vrcp.f32 %v6044_v26 }
0x23d4   : > { %v6053_v23 = vmul.f32 %v7826_v36, %v6010_v5 }
0x23d5   : > { %v7828_v50 = vpop.eup %7827 }
0x23d6   : > { %v6057_v48 = vmul.f32 %v6053_v23, %v6012_v49  ;;  %v6054_v25 = vmul.f32 %v7828_v50, %v6014_v3 }
0x23d8   : > { %v6058_v14 = vmul.f32 %v6054_v25, %v6016_v8  ;;  %v6650_v8 = vld [vmem:[%s9243_s10] ss:$0 sm:$0xff] }
0x23da   : > { %v6061_v37 = vpack.c.bf16 %v6058_v14, %v6057_v48 }
0x23db   : > { %v7830_v38 = vpop.eup %7829 }
0x23dc   : > { %v6055_v17 = vmul.f32 %v7830_v38, %v6020_v56  ;;  %7441 = vmatprep.mubr.bf16.mxu0 %v6061_v37 }
0x23dd   : > { %v7832_v28 = vpop.eup %7831 }
0x23de   : > { %v6059_v34 = vmul.f32 %v6055_v17, %v6022_v63  ;;  %v6056_v47 = vmul.f32 %v7832_v28, %v6024_v16 }
0x23e0   : > { %v6060_v11 = vmul.f32 %v6056_v47, %v6026_v32 }
0x23e2   : > { %v6062_v43 = vpack.c.bf16 %v6060_v11, %v6059_v34 }
0x23e4   : > { %7442 = vmatmul.mubr.bf16.vlgmr.msra.gmra.mrb[136].mxu0 %v6062_v43 }
0x24b7   : > { %v7443_v60 = vpop.f32.mrb[136].mxu0 }
0x24b8   : > { %v6162_v29 = vpop.f32.mrb[137].mxu0  ;;  %v6179_v46 = vadd.f32 %v7443_v60, %v9122_v51 }
0x24b9   : > { %v6177_v31 = vadd.f32 %v6162_v29, %v9119_v57  ;;  %v7444_v42 = vpop.f32.mrb[138].mxu0 }
0x24ba   : > { %v6165_v59 = vpop.f32.mrb[139].mxu0  ;;  %v6180_v19 = vadd.f32 %v7444_v42, %v9133_v40  ;;  %v6184_v24 = vmul.f32 %v6179_v46, %v6179_v46  ;;  %v7637_v40 = vld [vmem:[%s9244_s11] sm:$0xff]  }
0x24bb   : > { %v6182_v35 = vmul.f32 %v6177_v31, %v6177_v31  ;;  %v6178_v44 = vadd.f32 %v6165_v59, %v9125_v6  ;;  %7445 = vmatprep.subr.bf16.mxu1 %v7637_v40  ;;  %v7638_v6 = vld [vmem:[%s9244_s11 + $0x8] sm:$0xff]  }
0x24bc   : > { %v6185_v20 = vmul.f32 %v6180_v19, %v6180_v19  ;;  %v6192_v51 = vsel %vm641_vm1, %v6184_v24, 0.0  ;;  %7446 = vmatpush3.bf16.msra.mxu1 %v7637_v40 }
0x24bd   : > { %v6183_v45 = vmul.f32 %v6178_v44, %v6178_v44  ;;  %v6186_v21 = vsel %vm641_vm1, %v6182_v35, 0.0  ;;  %7447 = vmatprep.subr.bf16.mxu1 %v7638_v6 }
0x24be   : > { %6187 = vadd.xlane.f32.xlu1 %v6186_v21  ;;  %v6195_v57 = vsel %vm641_vm1, %v6185_v20, 0.0 }
0x24bf   : > { %v6189_v9 = vsel %vm641_vm1, %v6183_v45, 0.0 }
0x24c0   : > { %6190 = vadd.xlane.f32.xlu0 %v6189_v9  ;;  %7448 = vmatpush3.bf16.msra.mxu1 %v7638_v6 }
0x24c1   : > { %7449 = vmatprep.subr.bf16.mxu1 %v7639_v53 }
0x24c2   : > { %6193 = vadd.xlane.f32.xlu1 %v6192_v51 }
0x24c4   : > { %6196 = vadd.xlane.f32.xlu0 %v6195_v57  ;;  %7450 = vmatpush3.bf16.msra.mxu1 %v7639_v53 }
0x24c5   : > { %7451 = vmatprep.subr.bf16.mxu1 %v7640_v33 }
0x24c8   : > { %7452 = vmatpush3.bf16.msra.mxu1 %v7640_v33 }
0x254b   : > { %v6188_v13 = vpop.xlane.xlu1 %6187 }
0x254c   : > { %v6198_v54 = vmul.f32 0.015625, %v6188_v13 }
0x254d   : > { %v6191_v55 = vpop.xlane.xlu0 %6190 }
0x254e   : > { %v6202_v58 = vadd.f32 1e-06, %v6198_v54  ;;  %v6199_v30 = vmul.f32 0.015625, %v6191_v55 }
0x254f   : > { %v6194_v62 = vpop.xlane.xlu1 %6193 }
0x2550   : > { %7833 = vrsqrt.f32 %v6202_v58  ;;  %v6203_v0 = vadd.f32 1e-06, %v6199_v30  ;;  %v6200_v61 = vmul.f32 0.015625, %v6194_v62 }
0x2551   : > { %v6197_v1 = vpop.xlane.xlu0 %6196 }
0x2552   : > { %7835 = vrsqrt.f32 %v6203_v0  ;;  %v6204_v27 = vadd.f32 1e-06, %v6200_v61  ;;  %v6201_v5 = vmul.f32 0.015625, %v6197_v1 }
0x2554   : > { %7837 = vrsqrt.f32 %v6204_v27  ;;  %v6205_v15 = vadd.f32 1e-06, %v6201_v5 }
0x2556   : > { %7839 = vrsqrt.f32 %v6205_v15 }
0x255a   : > { %v7834_v49 = vpop.eup %7833 }
0x255b   : > { %v6210_v3 = vmul.f32 %v7834_v49, %v6177_v31 }
0x255c   : > { %v7836_v52 = vpop.eup %7835 }
0x255d   : > { %v6211_v56 = vmul.f32 %v7836_v52, %v6178_v44  ;;  %v6220_v16 = vmul.f32 %v6650_v8, %v6210_v3 }
0x255e   : > { %v7838_v18 = vpop.eup %7837 }
0x255f   : > { %v6212_v63 = vmul.f32 %v7838_v18, %v6179_v46  ;;  %v6221_v10 = vmul.f32 %v6650_v8, %v6211_v56 }
0x2560   : > { %v7840_v32 = vpop.eup %7839 }
0x2561   : > { %v6213_v2 = vmul.f32 %v7840_v32, %v6180_v19  ;;  %v6224_v4 = vpack.c.bf16 %v6221_v10, %v6220_v16  ;;  %v6222_v12 = vmul.f32 %v6650_v8, %v6212_v63 }
0x2563   : > { %v6223_v41 = vmul.f32 %v6650_v8, %v6213_v2  ;;  %7453 = vmatprep.mubr.msk.bf16.mxu1 %vm641_vm1, %v6224_v4 }
0x2565   : > { %v6225_v7 = vpack.c.bf16 %v6223_v41, %v6222_v12 }
0x2567   : > { %7454 = vmatmul.mubr.msk.bf16.vlgmr.msra.gmra.mrb[180].mxu1 %vm641_vm1, %v6225_v7 }
0x263a   : > { %v7455_v22 = vpop.f32.mrb[180].mxu1 }
0x263b   : > { %v6298_v39 = vpop.f32.mrb[181].mxu1  ;;  %6315 = vst [vmem:[%s434_s22 + $0x10] sm:$0xff] %v7455_v22 }
0x263c   : > { %6313 = vst [vmem:[%s434_s22] sm:$0xff] %v6298_v39  ;;  %v7456_v26 = vpop.f32.mrb[182].mxu1 }
0x263d   : > { %v6301_v36 = vpop.f32.mrb[183].mxu1  ;;  %6316 = vst [vmem:[%s434_s22 + $0x18] sm:$0xff] %v7456_v26 }
0x263e   : > { %6314 = vst [vmem:[%s434_s22 + $0x8] sm:$0xff] %v6301_v36 }
0x263f PF: > { %s22_s21 = sadd.s32 1, %s7853_s21  }
0x2640   : > { %p19_p4 = scmp.ge.s32.totalorder %s22_s21, 4  }
0x2642   :  { %21 = sbr.rel (!%p19_p4) target bundleno = 1 (0x1), region = 107 }

</bundles_post_ra>
